<compile_context>
chip_gen: v7x
topology: tpu7x:2x2x1
jax: 0.10.0
libtpu: 0.0.40
codegen_flags: <defaults>
</compile_context>

<pallas_src>
import numpy as np
import jax
import jax.numpy as jnp
from jax.experimental import pallas as pl
from jax.experimental.pallas import tpu as pltpu

# ----------------------------- configuration -------------------------------
FEATURE_VECTOR_SIZE = 32
D_IN = 3
D_OUT = 4                      # number of objects
HIDDEN_DIMS = [64, 64]         # `dims` argument of the module
NUM_LEVELS = 16
LEVEL_DIM = 2
BASE_RES = 16
END_RES = 256
LOG2_HASHMAP = 10              # small hash map for the synthetic test
DIVIDE_FACTOR = 1.5
BIAS_INIT = 1.0
GRID_FEATURE_DIM = NUM_LEVELS * LEVEL_DIM      # 32
TABLE_SIZE = 1 << LOG2_HASHMAP
PER_LEVEL_SCALE = float(np.exp2(np.log2(END_RES / BASE_RES) / (NUM_LEVELS - 1)))

MLP_DIMS = [D_IN + GRID_FEATURE_DIM] + HIDDEN_DIMS + [D_OUT + FEATURE_VECTOR_SIZE]
NUM_LIN = len(MLP_DIMS) - 1    # 3 linear layers

X_PAD = 8                      # sublane-friendly padded width for raw xyz
OUT_PAD = 128                  # lane-dense padded output width (true cols = 36)
MAX_TILE_N = 1024              # large N tile amortizes per-grid-step overhead


# ------------------------------ Pallas kernel ------------------------------
def _softplus_beta100(v):
    # torch.nn.Softplus(beta=100, threshold=20): x if 100*x > 20 else log1p(exp(100*x))/100
    z = 100.0 * v
    return jnp.where(z > 20.0, v, jnp.log1p(jnp.exp(jnp.minimum(z, 20.0))) / 100.0)


def _fused_mlp_kernel(x_ref, f_ref, w0x_ref, w0f_ref, b0_ref,
                      w1_ref, b1_ref, w2_ref, b2_ref, out_ref):
    # layer 0: concat(x, feature) @ W0 == x @ W0[:3] + feature @ W0[3:]
    h = (jnp.dot(x_ref[...], w0x_ref[...], preferred_element_type=jnp.float32)
         + jnp.dot(f_ref[...], w0f_ref[...], preferred_element_type=jnp.float32)
         + b0_ref[...])
    h = _softplus_beta100(h)
    h = jnp.dot(h, w1_ref[...], preferred_element_type=jnp.float32) + b1_ref[...]
    h = _softplus_beta100(h)
    # layer 2: output channels zero-padded to 128 lanes -> unmasked full stores
    out_ref[...] = (jnp.dot(h, w2_ref[...], preferred_element_type=jnp.float32)
                    + b2_ref[...])


def _round_up(v, m):
    return ((v + m - 1) // m) * m


def mlp_forward_pallas(x_pad, feat, kparams, max_tile_n=MAX_TILE_N):
    """x_pad: [N, X_PAD] f32, feat: [N, GRID_FEATURE_DIM] f32 -> [N, OUT_PAD] f32."""
    N = x_pad.shape[0]
    tile_n = min(max_tile_n, _round_up(N, 8))      # whole batch when small -> grid=(1,)
    n_pad = (-N) % tile_n
    if n_pad:
        x_pad = jnp.pad(x_pad, ((0, n_pad), (0, 0)))
        feat = jnp.pad(feat, ((0, n_pad), (0, 0)))
    Np = N + n_pad
    w0x, w0f, b0, w1, b1, w2, b2 = kparams

    def row_spec(width):
        return pl.BlockSpec((tile_n, width), lambda i: (i, 0))

    def resident_spec(arr):            # constant index_map -> stays in VMEM
        return pl.BlockSpec(arr.shape, lambda i: (0, 0))

    out = pl.pallas_call(
        _fused_mlp_kernel,
        out_shape=jax.ShapeDtypeStruct((Np, OUT_PAD), jnp.float32),
        grid_spec=pltpu.PrefetchScalarGridSpec(
            num_scalar_prefetch=0,
            grid=(Np // tile_n,),
            in_specs=[row_spec(X_PAD),
                      row_spec(GRID_FEATURE_DIM),
                      resident_spec(w0x), resident_spec(w0f), resident_spec(b0),
                      resident_spec(w1), resident_spec(b1),
                      resident_spec(w2), resident_spec(b2)],
            out_specs=pl.BlockSpec((tile_n, OUT_PAD), lambda i: (i, 0)),
        ),
        compiler_params=pltpu.CompilerParams(
            dimension_semantics=("parallel",)),
    )(x_pad, feat, w0x, w0f, b0, w1, b1, w2, b2)
    return out[:N] if n_pad else out


# --------------------------- HashEncoder (JAX glue) -------------------------
_PRIMES = np.array([1, 2654435761, 805459861], dtype=np.uint32)
_RES = np.array([int(np.floor(BASE_RES * (PER_LEVEL_SCALE ** l)))
                 for l in range(NUM_LEVELS)], dtype=np.float32)
_CORNERS = np.array([[(c >> d) & 1 for d in range(3)] for c in range(8)],
                    dtype=np.uint32)                                   # [8, 3]


def hash_encode(x, flat_table):
    """x: [N,3] (already divided by divide_factor); flat_table: [L*T, LEVEL_DIM].

    All 16 levels x 8 corners resolved with ONE jnp.take over the flattened
    table (previously 128 separate gathers, each a full HBM round trip)."""
    xn = jnp.clip((x + 1.0) * 0.5, 0.0, 1.0)                           # [N,3]
    scales = jnp.asarray(_RES - 1.0, jnp.float32)                      # [L]
    pos = xn[:, None, :] * scales[None, :, None]                       # [N,L,3]
    p0 = jnp.floor(pos)
    w = pos - p0                                                       # [N,L,3]
    p0u = p0.astype(jnp.uint32)

    offs = jnp.asarray(_CORNERS)                                       # [8,3] u32
    c = p0u[:, :, None, :] + offs[None, None, :, :]                    # [N,L,8,3]
    primes = jnp.asarray(_PRIMES)
    idx = ((c[..., 0] * primes[0]) ^ (c[..., 1] * primes[1])
           ^ (c[..., 2] * primes[2])) & np.uint32(TABLE_SIZE - 1)      # [N,L,8]
    level_off = (jnp.arange(NUM_LEVELS, dtype=jnp.uint32)
                 * np.uint32(TABLE_SIZE))[None, :, None]
    flat_idx = (idx + level_off).astype(jnp.int32)                     # [N,L,8]

    gathered = jnp.take(flat_table, flat_idx, axis=0)                  # [N,L,8,D]
    offs_f = jnp.asarray(_CORNERS, jnp.float32)
    cw = jnp.prod(jnp.where(offs_f[None, None, :, :] == 1.0,
                            w[:, :, None, :], 1.0 - w[:, :, None, :]),
                  axis=-1)                                             # [N,L,8]
    feat = jnp.sum(cw[..., None] * gathered, axis=2)                   # [N,L,D]
    return feat.reshape(x.shape[0], NUM_LEVELS * LEVEL_DIM)


# ------------------------------ parameter init ------------------------------
def init_params(key):
    """Deterministic geometric init matching the module's __init__ (inside_outside=False)."""
    weights, biases = [], []
    for l in range(NUM_LIN):
        in_dim, out_dim = MLP_DIMS[l], MLP_DIMS[l + 1]
        key, k1, k2 = jax.random.split(key, 3)
        if l == NUM_LIN - 1:
            mean = np.sqrt(np.pi) / np.sqrt(MLP_DIMS[l])
            w_row0 = -mean + 1e-4 * jax.random.normal(k1, (1, in_dim))
            w_rest = mean + 1e-4 * jax.random.normal(k2, (out_dim - 1, in_dim))
            w = jnp.concatenate([w_row0, w_rest], axis=0)
            b = jnp.concatenate([jnp.full((1,), BIAS_INIT),
                                 jnp.full((out_dim - 1,), -0.5 * BIAS_INIT)])
        else:
            w = (np.sqrt(2.0) / np.sqrt(out_dim)) * jax.random.normal(k1, (out_dim, in_dim))
            b = jnp.zeros((out_dim,))
        # weight_norm: g initialised to ||v|| row-wise -> effective W == v (exact).
        weights.append(jnp.asarray(w, jnp.float32).T)        # store as [in, out]
        biases.append(jnp.asarray(b, jnp.float32).reshape(1, -1))
    key, kt = jax.random.split(key)
    tables = jax.random.uniform(kt, (NUM_LEVELS, TABLE_SIZE, LEVEL_DIM),
                                minval=-1e-4, maxval=1e-4, dtype=jnp.float32)
    return weights, biases, tables


def prepare_kernel_params(weights, biases):
    """Split W0 (avoids the HBM concat of inputs) and lane-pad the last layer."""
    w0, w1, w2 = weights
    b0, b1, b2 = biases
    w0x = jnp.pad(w0[:D_IN], ((0, X_PAD - D_IN), (0, 0)))              # [8, 64]
    w0f = w0[D_IN:]                                                    # [32, 64]
    w2p = jnp.pad(w2, ((0, 0), (0, OUT_PAD - w2.shape[1])))            # [64, 128]
    b2p = jnp.pad(b2, ((0, 0), (0, OUT_PAD - b2.shape[1])))            # [1, 128]
    return (w0x, w0f, b0, w1, b1, w2p, b2p)


# ------------------------------ full forward --------------------------------
def object_implicit_forward(x, weights, biases, tables):
    flat_table = tables.reshape(NUM_LEVELS * TABLE_SIZE, LEVEL_DIM)
    # feature = self.encoding(input / self.divide_factor)
    feature = hash_encode(x / DIVIDE_FACTOR, flat_table)
    # first-layer concat folded into the kernel via split W0 -> no [N,35] round trip
    x_pad = jnp.pad(x, ((0, 0), (0, X_PAD - D_IN)))
    kparams = prepare_kernel_params(weights, biases)
    out_padded = mlp_forward_pallas(x_pad, feature, kparams)
    return out_padded[:, :D_OUT + FEATURE_VECTOR_SIZE]


def _reference_forward(x, weights, biases, tables):
    flat_table = tables.reshape(NUM_LEVELS * TABLE_SIZE, LEVEL_DIM)
    feature = hash_encode(x / DIVIDE_FACTOR, flat_table)
    h = jnp.concatenate([x, feature], axis=-1)
    for l in range(NUM_LIN):
        h = h @ weights[l] + biases[l]
        if l < NUM_LIN - 1:
            h = _softplus_beta100(h)
    return h


# ----------------------------------- main ------------------------------------
if __name__ == "__main__":
    key = jax.random.PRNGKey(0)
    key, kx = jax.random.split(key)
    N = 512
    x = jax.random.uniform(kx, (N, D_IN), minval=-1.0, maxval=1.0, dtype=jnp.float32)

    weights, biases, tables = init_params(key)

    fwd = jax.jit(object_implicit_forward)
    out = jax.block_until_ready(fwd(x, weights, biases, tables))

    assert out.shape == (N, D_OUT + FEATURE_VECTOR_SIZE), out.shape

    ref = jax.block_until_ready(_reference_forward(x, weights, biases, tables))
    np.testing.assert_allclose(np.asarray(out), np.asarray(ref), rtol=1e-5, atol=1e-5)

    print("KERNEL_OK")
</pallas_src>

<mosaic_0001>
module attributes {stable_mosaic.version = 11 : i64} {
  func.func @_fused_mlp_kernel(%arg0: i32, %arg1: memref<512x8xf32, #tpu.memory_space<vmem>>, %arg2: memref<512x32xf32, #tpu.memory_space<vmem>>, %arg3: memref<8x64xf32, #tpu.memory_space<vmem>>, %arg4: memref<32x64xf32, #tpu.memory_space<vmem>>, %arg5: memref<1x64xf32, #tpu.memory_space<vmem>>, %arg6: memref<64x64xf32, #tpu.memory_space<vmem>>, %arg7: memref<1x64xf32, #tpu.memory_space<vmem>>, %arg8: memref<64x128xf32, #tpu.memory_space<vmem>>, %arg9: memref<1x128xf32, #tpu.memory_space<vmem>>, %arg10: memref<512x128xf32, #tpu.memory_space<vmem>>) attributes {dimension_semantics = [#tpu.dimension_semantics<parallel>], iteration_bounds = array<i64: 1>, scalar_prefetch = 0 : i64, scratch_operands = 0 : i64, tpu.core_type = #tpu.core_type<tc>, window_params = [{transform_indices = @transform_0, window_bounds = array<i64: 512, 8>}, {transform_indices = @transform_1, window_bounds = array<i64: 512, 32>}, {pipeline_mode = #tpu.pipeline_mode<synchronous>, transform_indices = @transform_2, window_bounds = array<i64: 8, 64>}, {pipeline_mode = #tpu.pipeline_mode<synchronous>, transform_indices = @transform_3, window_bounds = array<i64: 32, 64>}, {pipeline_mode = #tpu.pipeline_mode<synchronous>, transform_indices = @transform_4, window_bounds = array<i64: 1, 64>}, {pipeline_mode = #tpu.pipeline_mode<synchronous>, transform_indices = @transform_5, window_bounds = array<i64: 64, 64>}, {pipeline_mode = #tpu.pipeline_mode<synchronous>, transform_indices = @transform_6, window_bounds = array<i64: 1, 64>}, {pipeline_mode = #tpu.pipeline_mode<synchronous>, transform_indices = @transform_7, window_bounds = array<i64: 64, 128>}, {pipeline_mode = #tpu.pipeline_mode<synchronous>, transform_indices = @transform_8, window_bounds = array<i64: 1, 128>}, {transform_indices = @transform_9, window_bounds = array<i64: 512, 128>}]} {
    %c0 = arith.constant 0 : index
    %c0_0 = arith.constant 0 : index
    %0 = vector.load %arg1[%c0, %c0_0] : memref<512x8xf32, #tpu.memory_space<vmem>>, vector<512x8xf32>
    %c0_1 = arith.constant 0 : index
    %c0_2 = arith.constant 0 : index
    %1 = vector.load %arg3[%c0_1, %c0_2] : memref<8x64xf32, #tpu.memory_space<vmem>>, vector<8x64xf32>
    %cst = arith.constant dense<0.000000e+00> : vector<512x64xf32>
    %2 = tpu.matmul %0, %1, %cst {dimension_numbers = #tpu.dot_dimension_numbers<[1], [0], [0], [1], [0, 0, 1, 1], [], []>} : vector<512x8xf32>, vector<8x64xf32>, vector<512x64xf32> -> vector<512x64xf32>
    %c0_3 = arith.constant 0 : index
    %c0_4 = arith.constant 0 : index
    %3 = vector.load %arg2[%c0_3, %c0_4] : memref<512x32xf32, #tpu.memory_space<vmem>>, vector<512x32xf32>
    %c0_5 = arith.constant 0 : index
    %c0_6 = arith.constant 0 : index
    %4 = vector.load %arg4[%c0_5, %c0_6] : memref<32x64xf32, #tpu.memory_space<vmem>>, vector<32x64xf32>
    %cst_7 = arith.constant dense<0.000000e+00> : vector<512x64xf32>
    %5 = tpu.matmul %3, %4, %cst_7 {dimension_numbers = #tpu.dot_dimension_numbers<[1], [0], [0], [1], [0, 0, 1, 1], [], []>} : vector<512x32xf32>, vector<32x64xf32>, vector<512x64xf32> -> vector<512x64xf32>
    %6 = arith.addf %2, %5 : vector<512x64xf32>
    %c0_8 = arith.constant 0 : index
    %c0_9 = arith.constant 0 : index
    %7 = vector.load %arg5[%c0_8, %c0_9] : memref<1x64xf32, #tpu.memory_space<vmem>>, vector<1x64xf32>
    %8 = vector.broadcast %7 : vector<1x64xf32> to vector<512x64xf32>
    %9 = arith.addf %6, %8 : vector<512x64xf32>
    %cst_10 = arith.constant 1.000000e+02 : f32
    %10 = vector.broadcast %cst_10 : f32 to vector<512x64xf32>
    %11 = arith.mulf %10, %9 : vector<512x64xf32>
    %cst_11 = arith.constant 2.000000e+01 : f32
    %12 = vector.broadcast %cst_11 : f32 to vector<512x64xf32>
    %13 = arith.cmpf ogt, %11, %12 : vector<512x64xf32>
    %cst_12 = arith.constant 2.000000e+01 : f32
    %14 = vector.broadcast %cst_12 : f32 to vector<512x64xf32>
    %15 = arith.minimumf %11, %14 : vector<512x64xf32>
    %16 = math.exp %15 : vector<512x64xf32>
    %17 = math.log1p %16 : vector<512x64xf32>
    %cst_13 = arith.constant 1.000000e+02 : f32
    %18 = vector.broadcast %cst_13 : f32 to vector<512x64xf32>
    %19 = arith.divf %17, %18 : vector<512x64xf32>
    %20 = arith.select %13, %9, %19 : vector<512x64xi1>, vector<512x64xf32>
    %c0_14 = arith.constant 0 : index
    %c0_15 = arith.constant 0 : index
    %21 = vector.load %arg6[%c0_14, %c0_15] : memref<64x64xf32, #tpu.memory_space<vmem>>, vector<64x64xf32>
    %cst_16 = arith.constant dense<0.000000e+00> : vector<512x64xf32>
    %22 = tpu.matmul %20, %21, %cst_16 {dimension_numbers = #tpu.dot_dimension_numbers<[1], [0], [0], [1], [0, 0, 1, 1], [], []>} : vector<512x64xf32>, vector<64x64xf32>, vector<512x64xf32> -> vector<512x64xf32>
    %c0_17 = arith.constant 0 : index
    %c0_18 = arith.constant 0 : index
    %23 = vector.load %arg7[%c0_17, %c0_18] : memref<1x64xf32, #tpu.memory_space<vmem>>, vector<1x64xf32>
    %24 = vector.broadcast %23 : vector<1x64xf32> to vector<512x64xf32>
    %25 = arith.addf %22, %24 : vector<512x64xf32>
    %cst_19 = arith.constant 1.000000e+02 : f32
    %26 = vector.broadcast %cst_19 : f32 to vector<512x64xf32>
    %27 = arith.mulf %26, %25 : vector<512x64xf32>
    %cst_20 = arith.constant 2.000000e+01 : f32
    %28 = vector.broadcast %cst_20 : f32 to vector<512x64xf32>
    %29 = arith.cmpf ogt, %27, %28 : vector<512x64xf32>
    %cst_21 = arith.constant 2.000000e+01 : f32
    %30 = vector.broadcast %cst_21 : f32 to vector<512x64xf32>
    %31 = arith.minimumf %27, %30 : vector<512x64xf32>
    %32 = math.exp %31 : vector<512x64xf32>
    %33 = math.log1p %32 : vector<512x64xf32>
    %cst_22 = arith.constant 1.000000e+02 : f32
    %34 = vector.broadcast %cst_22 : f32 to vector<512x64xf32>
    %35 = arith.divf %33, %34 : vector<512x64xf32>
    %36 = arith.select %29, %25, %35 : vector<512x64xi1>, vector<512x64xf32>
    %c0_23 = arith.constant 0 : index
    %c0_24 = arith.constant 0 : index
    %37 = vector.load %arg8[%c0_23, %c0_24] : memref<64x128xf32, #tpu.memory_space<vmem>>, vector<64x128xf32>
    %cst_25 = arith.constant dense<0.000000e+00> : vector<512x128xf32>
    %38 = tpu.matmul %36, %37, %cst_25 {dimension_numbers = #tpu.dot_dimension_numbers<[1], [0], [0], [1], [0, 0, 1, 1], [], []>} : vector<512x64xf32>, vector<64x128xf32>, vector<512x128xf32> -> vector<512x128xf32>
    %c0_26 = arith.constant 0 : index
    %c0_27 = arith.constant 0 : index
    %39 = vector.load %arg9[%c0_26, %c0_27] : memref<1x128xf32, #tpu.memory_space<vmem>>, vector<1x128xf32>
    %40 = vector.broadcast %39 : vector<1x128xf32> to vector<512x128xf32>
    %41 = arith.addf %38, %40 : vector<512x128xf32>
    %c0_28 = arith.constant 0 : index
    %c0_29 = arith.constant 0 : index
    %42 = vector.load %arg10[%c0_28, %c0_29] : memref<512x128xf32, #tpu.memory_space<vmem>>, vector<512x128xf32>
    tpu.vector_store %arg10[%c0_28, %c0_29], %41 {strides = array<i32>} : memref<512x128xf32, #tpu.memory_space<vmem>>, vector<512x128xf32>,
    return
  }
  func.func @transform_0(%arg0: i32) -> (i32, i32) {
    %c0_i32 = arith.constant 0 : i32
    %c0_i32_0 = arith.constant 0 : i32
    return %arg0, %c0_i32 : i32, i32
  }
  func.func @transform_1(%arg0: i32) -> (i32, i32) {
    %c0_i32 = arith.constant 0 : i32
    %c0_i32_0 = arith.constant 0 : i32
    return %arg0, %c0_i32 : i32, i32
  }
  func.func @transform_2(%arg0: i32) -> (i32, i32) {
    %c0_i32 = arith.constant 0 : i32
    %c0_i32_0 = arith.constant 0 : i32
    %c0_i32_1 = arith.constant 0 : i32
    return %c0_i32, %c0_i32_0 : i32, i32
  }
  func.func @transform_3(%arg0: i32) -> (i32, i32) {
    %c0_i32 = arith.constant 0 : i32
    %c0_i32_0 = arith.constant 0 : i32
    %c0_i32_1 = arith.constant 0 : i32
    return %c0_i32, %c0_i32_0 : i32, i32
  }
  func.func @transform_4(%arg0: i32) -> (i32, i32) {
    %c0_i32 = arith.constant 0 : i32
    %c0_i32_0 = arith.constant 0 : i32
    %c0_i32_1 = arith.constant 0 : i32
    return %c0_i32, %c0_i32_0 : i32, i32
  }
  func.func @transform_5(%arg0: i32) -> (i32, i32) {
    %c0_i32 = arith.constant 0 : i32
    %c0_i32_0 = arith.constant 0 : i32
    %c0_i32_1 = arith.constant 0 : i32
    return %c0_i32, %c0_i32_0 : i32, i32
  }
  func.func @transform_6(%arg0: i32) -> (i32, i32) {
    %c0_i32 = arith.constant 0 : i32
    %c0_i32_0 = arith.constant 0 : i32
    %c0_i32_1 = arith.constant 0 : i32
    return %c0_i32, %c0_i32_0 : i32, i32
  }
  func.func @transform_7(%arg0: i32) -> (i32, i32) {
    %c0_i32 = arith.constant 0 : i32
    %c0_i32_0 = arith.constant 0 : i32
    %c0_i32_1 = arith.constant 0 : i32
    return %c0_i32, %c0_i32_0 : i32, i32
  }
  func.func @transform_8(%arg0: i32) -> (i32, i32) {
    %c0_i32 = arith.constant 0 : i32
    %c0_i32_0 = arith.constant 0 : i32
    %c0_i32_1 = arith.constant 0 : i32
    return %c0_i32, %c0_i32_0 : i32, i32
  }
  func.func @transform_9(%arg0: i32) -> (i32, i32) {
    %c0_i32 = arith.constant 0 : i32
    %c0_i32_0 = arith.constant 0 : i32
    return %arg0, %c0_i32 : i32, i32
  }
}

</mosaic_0001>

<bundles_post_ra>
// kernel: object_implicit_forward.1
= control target key start
LH: loop header
LB: loop body
LE: loop exit
PB: predicated region body
PF: predicated region fallthrough
CT: control target
= control target key end

     0   :  { %vm165_vm0 = vcmask 261120   ;;  %vm743_vm1 = vcmask 64512   ;;  %vm2432_vm3 = vcmask 523264   ;;  %s9895_s3 = inlined_call_operand.vmem [shape: f32[32,64], index: 3, kind: input, shape index: {}]   ;;  %s9896_s1 = inlined_call_operand.vmem [shape: f32[512,32], index: 1, kind: input, shape index: {}]   ;;  %s9897_s2 = inlined_call_operand.vmem [shape: f32[8,64], index: 2, kind: input, shape index: {}]   ;;  %s9898_s0 = inlined_call_operand.vmem [shape: f32[512,8], index: 0, kind: input, shape index: {}]   ;;  %s9899_s5 = inlined_call_operand.vmem [shape: f32[64,64], index: 5, kind: input, shape index: {}]   ;;  %s9900_s4 = inlined_call_operand.vmem [shape: f32[1,64], index: 4, kind: input, shape index: {}]   ;;  %s9901_s7 = inlined_call_operand.vmem [shape: f32[64,128], index: 7, kind: input, shape index: {}]   ;;  %s9902_s6 = inlined_call_operand.vmem [shape: f32[1,64], index: 6, kind: input, shape index: {}]   ;;  %s9903_s8 = inlined_call_operand.vmem [shape: f32[1,128], index: 8, kind: input, shape index: {}]   ;;  %s9904_s9 = inlined_call_operand.vmem [shape: f32[512,128], index: 9, kind: output, shape index: {}]  }
   0x1   :  { %v161_v0 = vld [vmem:[%s9895_s3] sm:$0xff]  ;;  %v162_v1 = vld [vmem:[%s9895_s3 + $0x8] sm:$0xff]  ;;  %v163_v2 = vld [vmem:[%s9895_s3 + $0x10] sm:$0xff] }
   0x2   :  { %v5656_v3 = vpack.c.bf16 %v162_v1, %v161_v0  ;;  %v164_v4 = vld [vmem:[%s9895_s3 + $0x18] sm:$0xff]  ;;  %v97_v5 = vld [vmem:[%s9896_s1] sm:$0xff]  ;;  %v98_v8 = vld [vmem:[%s9896_s1 + $0x8] sm:$0xff] }
   0x3   :  { %v5660_v6 = vpack.c.bf16 %v164_v4, %v163_v2  ;;  %5238 = vmatprep.mubr.msk.f32.mxu0 %vm165_vm0, %v97_v5  ;;  %v96_v7 = vld [vmem:[%s9897_s2] sm:$0xff]  ;;  %v99_v9 = vld [vmem:[%s9896_s1 + $0x10] sm:$0xff]  ;;  %v100_v10 = vld [vmem:[%s9896_s1 + $0x18] sm:$0xff] }
   0x4   :  { %5657 = vmatprep.subr.bf16.mxu0 %v5656_v3  ;;  %v101_v11 = vld [vmem:[%s9896_s1 + $0x20] sm:$0xff]  ;;  %v102_v12 = vld [vmem:[%s9896_s1 + $0x28] sm:$0xff]  ;;  %v103_v13 = vld [vmem:[%s9896_s1 + $0x30] sm:$0xff] }
   0x5   :  { %5659 = vmatpush3.bf16.msra.mxu0 %v5656_v3  ;;  %v104_v14 = vld [vmem:[%s9896_s1 + $0x38] sm:$0xff]  ;;  %v105_v15 = vld [vmem:[%s9896_s1 + $0x40] sm:$0xff]  ;;  %v106_v16 = vld [vmem:[%s9896_s1 + $0x48] sm:$0xff] }
   0x6   :  { %5661 = vmatprep.subr.bf16.mxu0 %v5660_v6  ;;  %v107_v17 = vld [vmem:[%s9896_s1 + $0x50] sm:$0xff]  ;;  %v108_v18 = vld [vmem:[%s9896_s1 + $0x58] sm:$0xff]  ;;  %v109_v19 = vld [vmem:[%s9896_s1 + $0x60] sm:$0xff] }
   0x7   :  { %v110_v20 = vld [vmem:[%s9896_s1 + $0x68] sm:$0xff]  ;;  %v111_v21 = vld [vmem:[%s9896_s1 + $0x70] sm:$0xff]  ;;  %v112_v22 = vld [vmem:[%s9896_s1 + $0x78] sm:$0xff] }
   0x8   :  { %v113_v23 = vld [vmem:[%s9896_s1 + $0x80] sm:$0xff]  ;;  %v114_v24 = vld [vmem:[%s9896_s1 + $0x88] sm:$0xff]  ;;  %v115_v25 = vld [vmem:[%s9896_s1 + $0x90] sm:$0xff] }
   0x9   :  { %5663 = vmatpush3.bf16.msra.mxu0 %v5660_v6  ;;  %v116_v26 = vld [vmem:[%s9896_s1 + $0x98] sm:$0xff]  ;;  %v117_v27 = vld [vmem:[%s9896_s1 + $0xa0] sm:$0xff]  ;;  %v118_v28 = vld [vmem:[%s9896_s1 + $0xa8] sm:$0xff] }
   0xa   :  { %5334 = vmatprep.subr.mxu0 %v96_v7  ;;  %v119_v29 = vld [vmem:[%s9896_s1 + $0xb0] sm:$0xff]  ;;  %v120_v30 = vld [vmem:[%s9896_s1 + $0xb8] sm:$0xff]  ;;  %v121_v31 = vld [vmem:[%s9896_s1 + $0xc0] sm:$0xff] }
   0xb   :  { %v122_v32 = vld [vmem:[%s9896_s1 + $0xc8] sm:$0xff]  ;;  %v123_v33 = vld [vmem:[%s9896_s1 + $0xd0] sm:$0xff]  ;;  %v124_v34 = vld [vmem:[%s9896_s1 + $0xd8] sm:$0xff] }
   0xc   :  { %5239 = vmatmul.mubr.msk.f32.vlgmr.msra.gmra.mrb[0].mxu0 %vm165_vm0, %v98_v8  ;;  %v125_v35 = vld [vmem:[%s9896_s1 + $0xe0] sm:$0xff]  ;;  %v126_v36 = vld [vmem:[%s9896_s1 + $0xe8] sm:$0xff]  ;;  %v127_v37 = vld [vmem:[%s9896_s1 + $0xf0] sm:$0xff] }
   0xd   :  { %5335 = vmatpush3.msra.mxu0 %v96_v7  ;;  %5241 = vmatprep.mubr.msk.f32.mxu0 %vm165_vm0, %v99_v9  ;;  %v128_v38 = vld [vmem:[%s9896_s1 + $0xf8] sm:$0xff]  ;;  %v129_v39 = vld [vmem:[%s9896_s1 + $0x100] sm:$0xff]  ;;  %v130_v40 = vld [vmem:[%s9896_s1 + $0x108] sm:$0xff] }
   0xe   :  { %v131_v41 = vld [vmem:[%s9896_s1 + $0x110] sm:$0xff]  ;;  %v132_v42 = vld [vmem:[%s9896_s1 + $0x118] sm:$0xff]  ;;  %v133_v43 = vld [vmem:[%s9896_s1 + $0x120] sm:$0xff] }
   0xf   :  { %v134_v44 = vld [vmem:[%s9896_s1 + $0x128] sm:$0xff]  ;;  %v135_v45 = vld [vmem:[%s9896_s1 + $0x130] sm:$0xff]  ;;  %v136_v46 = vld [vmem:[%s9896_s1 + $0x138] sm:$0xff] }
  0x10   :  { %5242 = vmatmul.mubr.msk.f32.gmra.mrb[2].mxu0 %vm165_vm0, %v100_v10  ;;  %v137_v47 = vld [vmem:[%s9896_s1 + $0x140] sm:$0xff]  ;;  %v138_v48 = vld [vmem:[%s9896_s1 + $0x148] sm:$0xff]  ;;  %v139_v49 = vld [vmem:[%s9896_s1 + $0x150] sm:$0xff] }
  0x11   :  { %5244 = vmatprep.mubr.msk.f32.mxu0 %vm165_vm0, %v101_v11  ;;  %v140_v50 = vld [vmem:[%s9896_s1 + $0x158] sm:$0xff]  ;;  %v141_v51 = vld [vmem:[%s9896_s1 + $0x160] sm:$0xff]  ;;  %v142_v52 = vld [vmem:[%s9896_s1 + $0x168] sm:$0xff] }
  0x12   :  { %v143_v53 = vld [vmem:[%s9896_s1 + $0x170] sm:$0xff]  ;;  %v144_v54 = vld [vmem:[%s9896_s1 + $0x178] sm:$0xff]  ;;  %v145_v55 = vld [vmem:[%s9896_s1 + $0x180] sm:$0xff] }
  0x13   :  { %v146_v56 = vld [vmem:[%s9896_s1 + $0x188] sm:$0xff]  ;;  %v147_v57 = vld [vmem:[%s9896_s1 + $0x190] sm:$0xff]  ;;  %v148_v58 = vld [vmem:[%s9896_s1 + $0x198] sm:$0xff] }
  0x14   :  { %5245 = vmatmul.mubr.msk.f32.gmra.mrb[4].mxu0 %vm165_vm0, %v102_v12  ;;  %v149_v59 = vld [vmem:[%s9896_s1 + $0x1a0] sm:$0xff]  ;;  %v150_v60 = vld [vmem:[%s9896_s1 + $0x1a8] sm:$0xff]  ;;  %v151_v61 = vld [vmem:[%s9896_s1 + $0x1b0] sm:$0xff] }
  0x15   :  { %5247 = vmatprep.mubr.msk.f32.mxu0 %vm165_vm0, %v103_v13  ;;  %v152_v62 = vld [vmem:[%s9896_s1 + $0x1b8] sm:$0xff]  ;;  %v153_v63 = vld [vmem:[%s9896_s1 + $0x1c0] sm:$0xff]  ;;  %v154_v0 = vld [vmem:[%s9896_s1 + $0x1c8] sm:$0xff] }
  0x16   :  { %v155_v1 = vld [vmem:[%s9896_s1 + $0x1d0] sm:$0xff]  ;;  %v156_v2 = vld [vmem:[%s9896_s1 + $0x1d8] sm:$0xff]  ;;  %v157_v3 = vld [vmem:[%s9896_s1 + $0x1e0] sm:$0xff] }
  0x17   :  { %v158_v4 = vld [vmem:[%s9896_s1 + $0x1e8] sm:$0xff]  ;;  %v159_v5 = vld [vmem:[%s9896_s1 + $0x1f0] sm:$0xff]  ;;  %v160_v6 = vld [vmem:[%s9896_s1 + $0x1f8] sm:$0xff] }
  0x18   :  { %5248 = vmatmul.mubr.msk.f32.gmra.mrb[6].mxu0 %vm165_vm0, %v104_v14  ;;  %v32_v7 = vld [vmem:[%s9898_s0] sm:$0xff]  ;;  %v33_v8 = vld [vmem:[%s9898_s0 + $0x8] sm:$0xff]  ;;  %v2419_v11 = vld [vmem:[%s9899_s5 + $0x10] sm:$0xff] }
  0x19   :  { %5250 = vmatprep.mubr.msk.f32.mxu0 %vm165_vm0, %v105_v15  ;;  %v2417_v9 = vld [vmem:[%s9899_s5] sm:$0xff]  ;;  %v2418_v10 = vld [vmem:[%s9899_s5 + $0x8] sm:$0xff]  ;;  %v34_v12 = vld [vmem:[%s9898_s0 + $0x10] sm:$0xff] }
  0x1a   :  { %v5664_v13 = vpack.c.bf16 %v2418_v10, %v2417_v9  ;;  %v2420_v14 = vld [vmem:[%s9899_s5 + $0x18] sm:$0xff]  ;;  %v89_v9 = vld [vmem:[%s9898_s0 + $0x1c8] sm:$0xff]  ;;  %v90_v10 = vld [vmem:[%s9898_s0 + $0x1d0] sm:$0xff] }
  0x1b   :  { %v5668_v15 = vpack.c.bf16 %v2420_v14, %v2419_v11  ;;  %v91_v11 = vld [vmem:[%s9898_s0 + $0x1d8] sm:$0xff]  ;;  %v2423_v14 = vld [vmem:[%s9899_s5 + $0x30] sm:$0xff] }
  0x1c   :  { %5251 = vmatmul.mubr.msk.f32.gmra.mrb[8].mxu0 %vm165_vm0, %v106_v16  ;;  %v2421_v16 = vld [vmem:[%s9899_s5 + $0x20] sm:$0xff]  ;;  %5665 = vmatprep.subr.bf16.mxu0 %v5664_v13 }
  0x1d   :  { %5253 = vmatprep.mubr.msk.f32.mxu0 %vm165_vm0, %v107_v17  ;;  %v2422_v17 = vld [vmem:[%s9899_s5 + $0x28] sm:$0xff]  ;;  %5696 = vmatprep.subr.bf16.mxu1 %v5664_v13 }
  0x1e   :  { %5700 = vmatpush3.bf16.msra.mxu1 %v5664_v13 }
  0x1f   :  { %5697 = vmatprep.subr.bf16.mxu1 %v5668_v15 }
  0x20   :  { %5254 = vmatmul.mubr.msk.f32.gmra.mrb[10].mxu0 %vm165_vm0, %v108_v18  ;;  %v35_v18 = vld [vmem:[%s9898_s0 + $0x18] sm:$0xff] }
  0x21   :  { %5256 = vmatprep.mubr.msk.f32.mxu0 %vm165_vm0, %v109_v19  ;;  %v36_v19 = vld [vmem:[%s9898_s0 + $0x20] sm:$0xff] }
  0x22   :  { %5701 = vmatpush3.bf16.msra.mxu1 %v5668_v15 }
  0x24   :  { %5257 = vmatmul.mubr.msk.f32.gmra.mrb[12].mxu0 %vm165_vm0, %v110_v20  ;;  %v5672_v20 = vpack.c.bf16 %v2422_v17, %v2421_v16  ;;  %v94_v16 = vld [vmem:[%s9898_s0 + $0x1f0] sm:$0xff] }
  0x25   :  { %5259 = vmatprep.mubr.msk.f32.mxu0 %vm165_vm0, %v111_v21  ;;  %v37_v21 = vld [vmem:[%s9898_s0 + $0x28] sm:$0xff] }
  0x26   :  { %5698 = vmatprep.subr.bf16.mxu1 %v5672_v20 }
  0x27   :  { %5702 = vmatpush3.bf16.msra.mxu1 %v5672_v20 }
  0x28   :  { %5260 = vmatmul.mubr.msk.f32.gmra.mrb[14].mxu0 %vm165_vm0, %v112_v22  ;;  %v38_v22 = vld [vmem:[%s9898_s0 + $0x30] sm:$0xff] }
  0x29   :  { %5262 = vmatprep.mubr.msk.f32.mxu0 %vm165_vm0, %v113_v23  ;;  %v39_v23 = vld [vmem:[%s9898_s0 + $0x38] sm:$0xff] }
  0x2c   :  { %5263 = vmatmul.mubr.msk.f32.gmra.mrb[16].mxu0 %vm165_vm0, %v114_v24  ;;  %v40_v24 = vld [vmem:[%s9898_s0 + $0x40] sm:$0xff] }
  0x2d   :  { %5265 = vmatprep.mubr.msk.f32.mxu0 %vm165_vm0, %v115_v25  ;;  %v41_v25 = vld [vmem:[%s9898_s0 + $0x48] sm:$0xff] }
  0x30   :  { %5266 = vmatmul.mubr.msk.f32.gmra.mrb[18].mxu0 %vm165_vm0, %v116_v26  ;;  %v42_v26 = vld [vmem:[%s9898_s0 + $0x50] sm:$0xff] }
  0x31   :  { %5268 = vmatprep.mubr.msk.f32.mxu0 %vm165_vm0, %v117_v27  ;;  %v43_v27 = vld [vmem:[%s9898_s0 + $0x58] sm:$0xff] }
  0x34   :  { %5269 = vmatmul.mubr.msk.f32.gmra.mrb[20].mxu0 %vm165_vm0, %v118_v28  ;;  %v44_v28 = vld [vmem:[%s9898_s0 + $0x60] sm:$0xff] }
  0x35   :  { %5271 = vmatprep.mubr.msk.f32.mxu0 %vm165_vm0, %v119_v29  ;;  %v45_v29 = vld [vmem:[%s9898_s0 + $0x68] sm:$0xff] }
  0x38   :  { %5272 = vmatmul.mubr.msk.f32.gmra.mrb[22].mxu0 %vm165_vm0, %v120_v30  ;;  %v46_v30 = vld [vmem:[%s9898_s0 + $0x70] sm:$0xff] }
  0x39   :  { %5274 = vmatprep.mubr.msk.f32.mxu0 %vm165_vm0, %v121_v31  ;;  %v47_v31 = vld [vmem:[%s9898_s0 + $0x78] sm:$0xff] }
  0x3c   :  { %5275 = vmatmul.mubr.msk.f32.gmra.mrb[24].mxu0 %vm165_vm0, %v122_v32  ;;  %v48_v32 = vld [vmem:[%s9898_s0 + $0x80] sm:$0xff] }
  0x3d   :  { %5277 = vmatprep.mubr.msk.f32.mxu0 %vm165_vm0, %v123_v33  ;;  %v49_v33 = vld [vmem:[%s9898_s0 + $0x88] sm:$0xff] }
  0x40   :  { %5278 = vmatmul.mubr.msk.f32.gmra.mrb[26].mxu0 %vm165_vm0, %v124_v34  ;;  %v50_v34 = vld [vmem:[%s9898_s0 + $0x90] sm:$0xff] }
  0x41   :  { %5280 = vmatprep.mubr.msk.f32.mxu0 %vm165_vm0, %v125_v35  ;;  %v51_v35 = vld [vmem:[%s9898_s0 + $0x98] sm:$0xff] }
  0x44   :  { %5281 = vmatmul.mubr.msk.f32.gmra.mrb[28].mxu0 %vm165_vm0, %v126_v36  ;;  %v52_v36 = vld [vmem:[%s9898_s0 + $0xa0] sm:$0xff] }
  0x45   :  { %5283 = vmatprep.mubr.msk.f32.mxu0 %vm165_vm0, %v127_v37  ;;  %v53_v37 = vld [vmem:[%s9898_s0 + $0xa8] sm:$0xff] }
  0x48   :  { %5284 = vmatmul.mubr.msk.f32.gmra.mrb[30].mxu0 %vm165_vm0, %v128_v38  ;;  %v54_v38 = vld [vmem:[%s9898_s0 + $0xb0] sm:$0xff] }
  0x49   :  { %5286 = vmatprep.mubr.msk.f32.mxu0 %vm165_vm0, %v129_v39  ;;  %v55_v39 = vld [vmem:[%s9898_s0 + $0xb8] sm:$0xff] }
  0x4c   :  { %5287 = vmatmul.mubr.msk.f32.gmra.mrb[32].mxu0 %vm165_vm0, %v130_v40  ;;  %v56_v40 = vld [vmem:[%s9898_s0 + $0xc0] sm:$0xff] }
  0x4d   :  { %5289 = vmatprep.mubr.msk.f32.mxu0 %vm165_vm0, %v131_v41  ;;  %v57_v41 = vld [vmem:[%s9898_s0 + $0xc8] sm:$0xff] }
  0x50   :  { %5290 = vmatmul.mubr.msk.f32.gmra.mrb[34].mxu0 %vm165_vm0, %v132_v42  ;;  %v58_v42 = vld [vmem:[%s9898_s0 + $0xd0] sm:$0xff] }
  0x51   :  { %5292 = vmatprep.mubr.msk.f32.mxu0 %vm165_vm0, %v133_v43  ;;  %v59_v43 = vld [vmem:[%s9898_s0 + $0xd8] sm:$0xff] }
  0x54   :  { %5293 = vmatmul.mubr.msk.f32.gmra.mrb[36].mxu0 %vm165_vm0, %v134_v44  ;;  %v60_v44 = vld [vmem:[%s9898_s0 + $0xe0] sm:$0xff] }
  0x55   :  { %5295 = vmatprep.mubr.msk.f32.mxu0 %vm165_vm0, %v135_v45  ;;  %v61_v45 = vld [vmem:[%s9898_s0 + $0xe8] sm:$0xff] }
  0x58   :  { %5296 = vmatmul.mubr.msk.f32.gmra.mrb[38].mxu0 %vm165_vm0, %v136_v46  ;;  %v62_v46 = vld [vmem:[%s9898_s0 + $0xf0] sm:$0xff] }
  0x59   :  { %5298 = vmatprep.mubr.msk.f32.mxu0 %vm165_vm0, %v137_v47  ;;  %v63_v47 = vld [vmem:[%s9898_s0 + $0xf8] sm:$0xff] }
  0x5c   :  { %5299 = vmatmul.mubr.msk.f32.gmra.mrb[40].mxu0 %vm165_vm0, %v138_v48  ;;  %v64_v48 = vld [vmem:[%s9898_s0 + $0x100] sm:$0xff] }
  0x5d   :  { %5301 = vmatprep.mubr.msk.f32.mxu0 %vm165_vm0, %v139_v49  ;;  %v65_v49 = vld [vmem:[%s9898_s0 + $0x108] sm:$0xff] }
  0x60   :  { %5302 = vmatmul.mubr.msk.f32.gmra.mrb[42].mxu0 %vm165_vm0, %v140_v50  ;;  %v66_v50 = vld [vmem:[%s9898_s0 + $0x110] sm:$0xff] }
  0x61   :  { %5304 = vmatprep.mubr.msk.f32.mxu0 %vm165_vm0, %v141_v51  ;;  %v67_v51 = vld [vmem:[%s9898_s0 + $0x118] sm:$0xff] }
  0x64   :  { %5305 = vmatmul.mubr.msk.f32.gmra.mrb[44].mxu0 %vm165_vm0, %v142_v52  ;;  %v68_v52 = vld [vmem:[%s9898_s0 + $0x120] sm:$0xff] }
  0x65   :  { %5307 = vmatprep.mubr.msk.f32.mxu0 %vm165_vm0, %v143_v53  ;;  %v69_v53 = vld [vmem:[%s9898_s0 + $0x128] sm:$0xff] }
  0x68   :  { %5308 = vmatmul.mubr.msk.f32.gmra.mrb[46].mxu0 %vm165_vm0, %v144_v54  ;;  %v70_v54 = vld [vmem:[%s9898_s0 + $0x130] sm:$0xff] }
  0x69   :  { %5310 = vmatprep.mubr.msk.f32.mxu0 %vm165_vm0, %v145_v55  ;;  %v71_v55 = vld [vmem:[%s9898_s0 + $0x138] sm:$0xff] }
  0x6c   :  { %5311 = vmatmul.mubr.msk.f32.gmra.mrb[48].mxu0 %vm165_vm0, %v146_v56  ;;  %v72_v56 = vld [vmem:[%s9898_s0 + $0x140] sm:$0xff] }
  0x6d   :  { %5313 = vmatprep.mubr.msk.f32.mxu0 %vm165_vm0, %v147_v57  ;;  %v73_v57 = vld [vmem:[%s9898_s0 + $0x148] sm:$0xff] }
  0x70   :  { %5314 = vmatmul.mubr.msk.f32.gmra.mrb[50].mxu0 %vm165_vm0, %v148_v58  ;;  %v74_v58 = vld [vmem:[%s9898_s0 + $0x150] sm:$0xff] }
  0x71   :  { %5316 = vmatprep.mubr.msk.f32.mxu0 %vm165_vm0, %v149_v59  ;;  %v75_v59 = vld [vmem:[%s9898_s0 + $0x158] sm:$0xff] }
  0x74   :  { %5317 = vmatmul.mubr.msk.f32.gmra.mrb[52].mxu0 %vm165_vm0, %v150_v60  ;;  %v76_v60 = vld [vmem:[%s9898_s0 + $0x160] sm:$0xff] }
  0x75   :  { %5319 = vmatprep.mubr.msk.f32.mxu0 %vm165_vm0, %v151_v61  ;;  %v77_v61 = vld [vmem:[%s9898_s0 + $0x168] sm:$0xff] }
  0x78   :  { %5320 = vmatmul.mubr.msk.f32.gmra.mrb[54].mxu0 %vm165_vm0, %v152_v62  ;;  %v78_v62 = vld [vmem:[%s9898_s0 + $0x170] sm:$0xff] }
  0x79   :  { %5322 = vmatprep.mubr.msk.f32.mxu0 %vm165_vm0, %v153_v63  ;;  %v79_v63 = vld [vmem:[%s9898_s0 + $0x178] sm:$0xff] }
  0x7c   :  { %5323 = vmatmul.mubr.msk.f32.gmra.mrb[56].mxu0 %vm165_vm0, %v154_v0  ;;  %v80_v0 = vld [vmem:[%s9898_s0 + $0x180] sm:$0xff] }
  0x7d   :  { %5325 = vmatprep.mubr.msk.f32.mxu0 %vm165_vm0, %v155_v1  ;;  %v81_v1 = vld [vmem:[%s9898_s0 + $0x188] sm:$0xff] }
  0x80   :  { %5326 = vmatmul.mubr.msk.f32.gmra.mrb[58].mxu0 %vm165_vm0, %v156_v2  ;;  %v82_v2 = vld [vmem:[%s9898_s0 + $0x190] sm:$0xff] }
  0x81   :  { %5328 = vmatprep.mubr.msk.f32.mxu0 %vm165_vm0, %v157_v3  ;;  %v83_v3 = vld [vmem:[%s9898_s0 + $0x198] sm:$0xff] }
  0x84   :  { %5329 = vmatmul.mubr.msk.f32.gmra.mrb[60].mxu0 %vm165_vm0, %v158_v4  ;;  %v84_v4 = vld [vmem:[%s9898_s0 + $0x1a0] sm:$0xff] }
  0x85   :  { %5331 = vmatprep.mubr.msk.f32.mxu0 %vm165_vm0, %v159_v5  ;;  %v85_v5 = vld [vmem:[%s9898_s0 + $0x1a8] sm:$0xff] }
  0x88   :  { %5332 = vmatmul.mubr.msk.f32.gmra.mrb[62].mxu0 %vm165_vm0, %v160_v6  ;;  %v86_v6 = vld [vmem:[%s9898_s0 + $0x1b0] sm:$0xff] }
  0x89   :  { %5336 = vmatprep.mubr.msk.f32.mxu0 %vm743_vm1, %v32_v7  ;;  %v87_v7 = vld [vmem:[%s9898_s0 + $0x1b8] sm:$0xff] }
  0x8c   :  { %5337 = vmatmul.mubr.msk.f32.vlgmr.msra.gmra.mrb[0].mxu0 %vm743_vm1, %v33_v8  ;;  %v88_v8 = vld [vmem:[%s9898_s0 + $0x1c0] sm:$0xff] }
  0x8d   :  { %5339 = vmatprep.mubr.msk.f32.mxu0 %vm743_vm1, %v34_v12  ;;  %5667 = vmatpush3.bf16.msra.mxu0 %v5664_v13  ;;  %v92_v12 = vld [vmem:[%s9898_s0 + $0x1e0] sm:$0xff]  ;;  %v93_v13 = vld [vmem:[%s9898_s0 + $0x1e8] sm:$0xff] }
  0x8e   :  { %5669 = vmatprep.subr.bf16.mxu0 %v5668_v15 }
  0x90   :  { %5340 = vmatmul.mubr.msk.f32.gmra.mrb[2].mxu0 %vm743_vm1, %v35_v18  ;;  %v95_v18 = vld [vmem:[%s9898_s0 + $0x1f8] sm:$0xff] }
  0x91   :  { %5342 = vmatprep.mubr.msk.f32.mxu0 %vm743_vm1, %v36_v19  ;;  %5671 = vmatpush3.bf16.msra.mxu0 %v5668_v15  ;;  %v2424_v15 = vld [vmem:[%s9899_s5 + $0x38] sm:$0xff]  ;;  %v6887_v19 = vld [vmem:[%s9900_s4] ss:$0 sm:$0xff] }
  0x92   :  { %5673 = vmatprep.subr.bf16.mxu0 %v5672_v20  ;;  %v5676_v17 = vpack.c.bf16 %v2424_v15, %v2423_v14 }
  0x94   :  { %5343 = vmatmul.mubr.msk.f32.gmra.mrb[4].mxu0 %vm743_vm1, %v37_v21  ;;  %5699 = vmatprep.subr.bf16.mxu1 %v5676_v17 }
  0x95   :  { %5345 = vmatprep.mubr.msk.f32.mxu0 %vm743_vm1, %v38_v22  ;;  %5675 = vmatpush3.bf16.msra.mxu0 %v5672_v20 }
  0x96   :  { %5677 = vmatprep.subr.bf16.mxu0 %v5676_v17  ;;  %5703 = vmatpush3.bf16.msra.mxu1 %v5676_v17 }
  0x98   :  { %5346 = vmatmul.mubr.msk.f32.gmra.mrb[6].mxu0 %vm743_vm1, %v39_v23 }
  0x99   :  { %5348 = vmatprep.mubr.msk.f32.mxu0 %vm743_vm1, %v40_v24  ;;  %5679 = vmatpush3.bf16.msra.mxu0 %v5676_v17 }
  0x9c   :  { %5349 = vmatmul.mubr.msk.f32.gmra.mrb[8].mxu0 %vm743_vm1, %v41_v25 }
  0x9d   :  { %5351 = vmatprep.mubr.msk.f32.mxu0 %vm743_vm1, %v42_v26 }
  0xa0   :  { %5352 = vmatmul.mubr.msk.f32.gmra.mrb[10].mxu0 %vm743_vm1, %v43_v27 }
  0xa1   :  { %5354 = vmatprep.mubr.msk.f32.mxu0 %vm743_vm1, %v44_v28 }
  0xa4   :  { %5355 = vmatmul.mubr.msk.f32.gmra.mrb[12].mxu0 %vm743_vm1, %v45_v29 }
  0xa5   :  { %5357 = vmatprep.mubr.msk.f32.mxu0 %vm743_vm1, %v46_v30 }
  0xa8   :  { %5358 = vmatmul.mubr.msk.f32.gmra.mrb[14].mxu0 %vm743_vm1, %v47_v31 }
  0xa9   :  { %5360 = vmatprep.mubr.msk.f32.mxu0 %vm743_vm1, %v48_v32 }
  0xac   :  { %5361 = vmatmul.mubr.msk.f32.gmra.mrb[16].mxu0 %vm743_vm1, %v49_v33 }
  0xad   :  { %5363 = vmatprep.mubr.msk.f32.mxu0 %vm743_vm1, %v50_v34 }
  0xb0   :  { %5364 = vmatmul.mubr.msk.f32.gmra.mrb[18].mxu0 %vm743_vm1, %v51_v35 }
  0xb1   :  { %5366 = vmatprep.mubr.msk.f32.mxu0 %vm743_vm1, %v52_v36 }
  0xb4   :  { %5367 = vmatmul.mubr.msk.f32.gmra.mrb[20].mxu0 %vm743_vm1, %v53_v37 }
  0xb5   :  { %5369 = vmatprep.mubr.msk.f32.mxu0 %vm743_vm1, %v54_v38 }
  0xb8   :  { %5370 = vmatmul.mubr.msk.f32.gmra.mrb[22].mxu0 %vm743_vm1, %v55_v39 }
  0xb9   :  { %5372 = vmatprep.mubr.msk.f32.mxu0 %vm743_vm1, %v56_v40 }
  0xbc   :  { %5373 = vmatmul.mubr.msk.f32.gmra.mrb[24].mxu0 %vm743_vm1, %v57_v41 }
  0xbd   :  { %5375 = vmatprep.mubr.msk.f32.mxu0 %vm743_vm1, %v58_v42 }
  0xc0   :  { %5376 = vmatmul.mubr.msk.f32.gmra.mrb[26].mxu0 %vm743_vm1, %v59_v43 }
  0xc1   :  { %5378 = vmatprep.mubr.msk.f32.mxu0 %vm743_vm1, %v60_v44 }
  0xc4   :  { %5379 = vmatmul.mubr.msk.f32.gmra.mrb[28].mxu0 %vm743_vm1, %v61_v45 }
  0xc5   :  { %5381 = vmatprep.mubr.msk.f32.mxu0 %vm743_vm1, %v62_v46 }
  0xc8   :  { %5382 = vmatmul.mubr.msk.f32.gmra.mrb[30].mxu0 %vm743_vm1, %v63_v47 }
  0xc9   :  { %5384 = vmatprep.mubr.msk.f32.mxu0 %vm743_vm1, %v64_v48 }
  0xcc   :  { %5385 = vmatmul.mubr.msk.f32.gmra.mrb[32].mxu0 %vm743_vm1, %v65_v49 }
  0xcd   :  { %5387 = vmatprep.mubr.msk.f32.mxu0 %vm743_vm1, %v66_v50 }
  0xd0   :  { %5388 = vmatmul.mubr.msk.f32.gmra.mrb[34].mxu0 %vm743_vm1, %v67_v51 }
  0xd1   :  { %5390 = vmatprep.mubr.msk.f32.mxu0 %vm743_vm1, %v68_v52 }
  0xd4   :  { %5391 = vmatmul.mubr.msk.f32.gmra.mrb[36].mxu0 %vm743_vm1, %v69_v53 }
  0xd5   :  { %5393 = vmatprep.mubr.msk.f32.mxu0 %vm743_vm1, %v70_v54 }
  0xd8   :  { %5394 = vmatmul.mubr.msk.f32.gmra.mrb[38].mxu0 %vm743_vm1, %v71_v55 }
  0xd9   :  { %5396 = vmatprep.mubr.msk.f32.mxu0 %vm743_vm1, %v72_v56 }
  0xdc   :  { %5397 = vmatmul.mubr.msk.f32.gmra.mrb[40].mxu0 %vm743_vm1, %v73_v57 }
  0xdd   :  { %5399 = vmatprep.mubr.msk.f32.mxu0 %vm743_vm1, %v74_v58 }
  0xe0   :  { %5400 = vmatmul.mubr.msk.f32.gmra.mrb[42].mxu0 %vm743_vm1, %v75_v59 }
  0xe1   :  { %5402 = vmatprep.mubr.msk.f32.mxu0 %vm743_vm1, %v76_v60 }
  0xe4   :  { %5403 = vmatmul.mubr.msk.f32.gmra.mrb[44].mxu0 %vm743_vm1, %v77_v61 }
  0xe5   :  { %5405 = vmatprep.mubr.msk.f32.mxu0 %vm743_vm1, %v78_v62 }
  0xe8   :  { %5406 = vmatmul.mubr.msk.f32.gmra.mrb[46].mxu0 %vm743_vm1, %v79_v63 }
  0xe9   :  { %5408 = vmatprep.mubr.msk.f32.mxu0 %vm743_vm1, %v80_v0 }
  0xec   :  { %5409 = vmatmul.mubr.msk.f32.gmra.mrb[48].mxu0 %vm743_vm1, %v81_v1 }
  0xed   :  { %5411 = vmatprep.mubr.msk.f32.mxu0 %vm743_vm1, %v82_v2 }
  0xf0   :  { %5412 = vmatmul.mubr.msk.f32.gmra.mrb[50].mxu0 %vm743_vm1, %v83_v3 }
  0xf1   :  { %5414 = vmatprep.mubr.msk.f32.mxu0 %vm743_vm1, %v84_v4 }
  0xf4   :  { %5415 = vmatmul.mubr.msk.f32.gmra.mrb[52].mxu0 %vm743_vm1, %v85_v5 }
  0xf5   :  { %5417 = vmatprep.mubr.msk.f32.mxu0 %vm743_vm1, %v86_v6 }
  0xf8   :  { %5418 = vmatmul.mubr.msk.f32.gmra.mrb[54].mxu0 %vm743_vm1, %v87_v7 }
  0xf9   :  { %5420 = vmatprep.mubr.msk.f32.mxu0 %vm743_vm1, %v88_v8 }
  0xfc   :  { %5421 = vmatmul.mubr.msk.f32.gmra.mrb[56].mxu0 %vm743_vm1, %v89_v9 }
  0xfd   :  { %5423 = vmatprep.mubr.msk.f32.mxu0 %vm743_vm1, %v90_v10 }
 0x100   :  { %5424 = vmatmul.mubr.msk.f32.gmra.mrb[58].mxu0 %vm743_vm1, %v91_v11 }
 0x101   :  { %5426 = vmatprep.mubr.msk.f32.mxu0 %vm743_vm1, %v92_v12 }
 0x104   :  { %5427 = vmatmul.mubr.msk.f32.gmra.mrb[60].mxu0 %vm743_vm1, %v93_v13 }
 0x105   :  { %5429 = vmatprep.mubr.msk.f32.mxu0 %vm743_vm1, %v94_v16 }
 0x108   :  { %5430 = vmatmul.mubr.msk.f32.gmra.mrb[62].mxu0 %vm743_vm1, %v95_v18 }
 0x15f   :  { %v5338_v20 = vpop.f32.mrb[0].mxu0 }
 0x160   :  { %v6890_v21 = vadd.f32 %v5338_v20, %v6887_v19  ;;  %v1002_v22 = vpop.f32.mrb[1].mxu0 }
 0x161   :  { %v6893_v23 = vadd.f32 %v6887_v19, %v1002_v22 }
 0x162   :  { %v6896_v24 = vmul.f32 100.0, %v6890_v21 }
 0x163   :  { %v6899_v25 = vmul.f32 100.0, %v6893_v23  ;;  %v5341_v26 = vpop.f32.mrb[2].mxu0 }
 0x164   :  { %v1521_v27 = vmin.f32 %v6896_v24, 20.0  ;;  %v1012_v28 = vpop.f32.mrb[3].mxu0  ;;  %v6911_v39 = vadd.f32 %v5341_v26, %v6887_v19  ;;  %vm1457_vm4 = vcmp.gt.f32.partialorder %v6896_v24, 20.0 }
 0x165   :  { %v1520_v29 = vmin.f32 %v6899_v25, 20.0  ;;  %v6904_v30 = vadd.f32 %v6887_v19, %v1012_v28  ;;  %vm1456_vm5 = vcmp.gt.f32.partialorder %v6899_v25, 20.0 }
 0x166   :  { %v1586_v31 = vmul.f32 1.442695, %v1521_v27  ;;  %v6917_v44 = vmul.f32 100.0, %v6911_v39 }
 0x167   :  { %v1584_v32 = vmul.f32 1.442695, %v1520_v29  ;;  %v6907_v33 = vmul.f32 100.0, %v6904_v30  ;;  %v5344_v34 = vpop.f32.mrb[4].mxu0 }
 0x168   :  { %5768 = vpow2.f32 %v1586_v31  ;;  %v1022_v35 = vpop.f32.mrb[5].mxu0  ;;  %v6914_v42 = vadd.f32 %v5344_v34, %v6887_v19  ;;  %v1523_v53 = vmin.f32 %v6917_v44, 20.0  ;;  %vm1459_vm9 = vcmp.gt.f32.partialorder %v6917_v44, 20.0 }
 0x169   :  { %v1522_v36 = vmin.f32 %v6907_v33, 20.0  ;;  %5770 = vpow2.f32 %v1584_v32  ;;  %v6920_v45 = vadd.f32 %v6887_v19, %v1022_v35  ;;  %vm1458_vm8 = vcmp.gt.f32.partialorder %v6907_v33, 20.0 }
 0x16a   :  { %v6929_v49 = vmul.f32 100.0, %v6914_v42  ;;  %v1590_v63 = vmul.f32 1.442695, %v1523_v53 }
 0x16b   :  { %v5347_v37 = vpop.f32.mrb[6].mxu0  ;;  %v1588_v40 = vmul.f32 1.442695, %v1522_v36  ;;  %v6938_v54 = vmul.f32 100.0, %v6920_v45 }
 0x16c   :  { %v1032_v38 = vpop.f32.mrb[7].mxu0  ;;  %v6925_v47 = vadd.f32 %v5347_v37, %v6887_v19  ;;  %v1525_v58 = vmin.f32 %v6929_v49, 20.0  ;;  %vm1461_vm12 = vcmp.gt.f32.partialorder %v6929_v49, 20.0 }
 0x16d   :  { %5772 = vpow2.f32 %v1588_v40  ;;  %v6932_v50 = vadd.f32 %v6887_v19, %v1032_v38  ;;  %v1524_v0 = vmin.f32 %v6938_v54, 20.0  ;;  %vm1460_vm11 = vcmp.gt.f32.partialorder %v6938_v54, 20.0 }
 0x16e   :  { %v6941_v56 = vmul.f32 100.0, %v6925_v47  ;;  %v1594_v6 = vmul.f32 1.442695, %v1525_v58 }
 0x16f   :  { %v5350_v41 = vpop.f32.mrb[8].mxu0  ;;  %v6945_v59 = vmul.f32 100.0, %v6932_v50  ;;  %v1592_v11 = vmul.f32 1.442695, %v1524_v0 }
 0x170   :  { %v1042_v43 = vpop.f32.mrb[9].mxu0  ;;  %v6948_v60 = vadd.f32 %v5350_v41, %v6887_v19  ;;  %v1527_v1 = vmin.f32 %v6941_v56, 20.0  ;;  %vm1463_vm0 = vcmp.gt.f32.partialorder %v6941_v56, 20.0 }
 0x171   :  { %v6954_v2 = vadd.f32 %v6887_v19, %v1042_v43  ;;  %v1526_v7 = vmin.f32 %v6945_v59, 20.0  ;;  %vm1462_vm1 = vcmp.gt.f32.partialorder %v6945_v59, 20.0 }
 0x172   :  { %v6922_v46 = vpop.eup %5768  ;;  %v6963_v8 = vmul.f32 100.0, %v6948_v60  ;;  %v1598_v12 = vmul.f32 1.442695, %v1527_v1 }
 0x173   :  { %v1721_v48 = vadd.f32 1.0, %v6922_v46  ;;  %v5353_v51 = vpop.f32.mrb[10].mxu0  ;;  %v6934_v52 = vpop.eup %5770  ;;  %v1724_v10 = vmul.f32 -0.5, %v6922_v46  ;;  %v6967_v13 = vmul.f32 100.0, %v6954_v2  ;;  %v1727_v16 = vand.u32 2147483647, %v6922_v46 }
 0x174   :  { %v1052_v55 = vpop.f32.mrb[11].mxu0  ;;  %v1712_v62 = vadd.f32 1.0, %v6934_v52  ;;  %v6957_v3 = vadd.f32 %v5353_v51, %v6887_v19  ;;  %v1715_v18 = vmul.f32 -0.5, %v6934_v52  ;;  %v1596_v26 = vmul.f32 1.442695, %v1526_v7 }
 0x175   :  { %5774 = vlog2.f32 %v1721_v48  ;;  %v6973_v15 = vadd.f32 %v6887_v19, %v1052_v55  ;;  %v1529_v27 = vmin.f32 %v6963_v8, 20.0  ;;  %v1725_v29 = vadd.f32 1.0, %v1724_v10 }
 0x176   :  { %5776 = vlog2.f32 %v1712_v62  ;;  %v6970_v14 = vmul.f32 100.0, %v6957_v3  ;;  %v1528_v34 = vmin.f32 %v6967_v13, 20.0  ;;  %vm6990_vm2 = vcmp.lt.f32.partialorder %v1727_v16, 0.0004427343 }
 0x177   :  { %v5356_v57 = vpop.f32.mrb[12].mxu0  ;;  %v6959_v5 = vpop.eup %5772  ;;  %5778 = vpow2.f32 %v1590_v63  ;;  %v6988_v36 = vmul.f32 100.0, %v6973_v15  ;;  %v1716_v41 = vadd.f32 1.0, %v1715_v18  ;;  %v1602_v43 = vmul.f32 1.442695, %v1529_v27 }
 0x178   :  { %v1062_v61 = vpop.f32.mrb[13].mxu0  ;;  %v1730_v20 = vadd.f32 1.0, %v6959_v5  ;;  %5780 = vpow2.f32 %v1594_v6  ;;  %v6980_v31 = vadd.f32 %v5356_v57, %v6887_v19  ;;  %v1531_v35 = vmin.f32 %v6970_v14, 20.0 }
 0x179   :  { %5782 = vpow2.f32 %v1592_v11  ;;  %v6983_v32 = vadd.f32 %v6887_v19, %v1062_v61  ;;  %v1718_v51 = vand.u32 2147483647, %v6934_v52  ;;  %v1726_v53 = vmul.f32 %v6922_v46, %v1725_v29 }
 0x17a   :  { %10002 = vst [vmem:[#allocation2_spill] sm:$0xff] %v6980_v31  ;;  %5784 = vlog2.f32 %v1730_v20  ;;  %v6998_v55 = vmul.f32 100.0, %v6980_v31  ;;  %v1600_v62 = vmul.f32 1.442695, %v1528_v34  ;;  %v1606_v63 = vmul.f32 1.442695, %v1531_v35 }
 0x17b   :  { %v5359_v4 = vpop.f32.mrb[14].mxu0  ;;  %5786 = vpow2.f32 %v1598_v12  ;;  %v7001_v57 = vmul.f32 100.0, %v6983_v32  ;;  %v1530_v0 = vmin.f32 %v6988_v36, 20.0  ;;  %v1733_v1 = vmul.f32 -0.5, %v6959_v5 }
 0x17c   :  { %v1072_v9 = vpop.f32.mrb[15].mxu0  ;;  %5788 = vpow2.f32 %v1596_v26  ;;  %v7004_v58 = vadd.f32 %v5359_v4, %v6887_v19  ;;  %v1717_v4 = vmul.f32 %v6934_v52, %v1716_v41  ;;  %vm1719_vm6 = vcmp.lt.f32.partialorder %v1718_v51, 0.0004427343 }
 0x17d   :  { %v7013_v7 = vadd.f32 %v6887_v19, %v1072_v9  ;;  %5790 = vpow2.f32 %v1602_v43  ;;  %v1533_v18 = vmin.f32 %v6998_v55, 20.0  ;;  %v1532_v20 = vmin.f32 %v7001_v57, 20.0 }
 0x17e   :  { %10005 = vst [vmem:[#allocation3_spill] sm:$0xff] %v7004_v58  ;;  %v7025_v9 = vmul.f32 100.0, %v7004_v58  ;;  %5792 = vpow2.f32 %v1600_v62  ;;  %v1604_v27 = vmul.f32 1.442695, %v1530_v0  ;;  %v1734_v29 = vadd.f32 1.0, %v1733_v1 }
 0x17f   :  { %v5362_v17 = vpop.f32.mrb[16].mxu0  ;;  %v5775_v22 = vpop.eup %5774  ;;  %10006 = vst [vmem:[#allocation4_spill] sm:$0xff] %v7013_v7  ;;  %5794 = vpow2.f32 %v1606_v63  ;;  %v1610_v0 = vmul.f32 1.442695, %v1533_v18  ;;  %v1608_v1 = vmul.f32 1.442695, %v1532_v20 }
 0x180   :  { %v1082_v28 = vpop.f32.mrb[17].mxu0  ;;  %v1723_v37 = vmul.f32 0.6931472, %v5775_v22  ;;  %v5777_v61 = vpop.eup %5776  ;;  %v7018_v12 = vadd.f32 %v5362_v17, %v6887_v19  ;;  %10008 = vst [vmem:[#allocation6_spill] sm:$0xff] %v7025_v9  ;;  %v7032_v17 = vmul.f32 100.0, %v7013_v7  ;;  %v1735_v18 = vmul.f32 %v6959_v5, %v1734_v29 }
 0x181   :  { %v7008_v6 = vpop.eup %5778  ;;  %v1714_v11 = vmul.f32 0.6931472, %v5777_v61  ;;  %v7039_v51 = vadd.f32 %v6887_v19, %v1082_v28  ;;  %v1736_v61 = vand.u32 2147483647, %v6959_v5 }
 0x182   :  { %v1729_v46 = vsel %vm6990_vm2, %v1726_v53, %v1723_v37  ;;  %10007 = vst [vmem:[#allocation5_spill] sm:$0xff] %v7018_v12  ;;  %v7027_v26 = vpop.eup %5780  ;;  %v1739_v38 = vadd.f32 1.0, %v7008_v6  ;;  %v7036_v43 = vmul.f32 100.0, %v7018_v12  ;;  %v1534_v20 = vmin.f32 %v7032_v17, 20.0 }
 0x183   :  { %v5365_v40 = vpop.f32.mrb[18].mxu0  ;;  %v1720_v22 = vsel %vm1719_vm6, %v1717_v4, %v1714_v11  ;;  %v2290_v52 = vmul.f32 0.01, %v1729_v46  ;;  %v7029_v34 = vpop.eup %5782  ;;  %10010 = vst [vmem:[#allocation8_spill] sm:$0xff] %v7039_v51  ;;  %v1535_v46 = vmin.f32 %v7025_v9, 20.0  ;;  %v7070_v24 = vmul.f32 100.0, %v7039_v51 }
 0x184   :  { %v1092_v48 = vpop.f32.mrb[19].mxu0  ;;  %v2289_v35 = vmul.f32 0.01, %v1720_v22  ;;  %v5785_v41 = vpop.eup %5784  ;;  %10009 = vst [vmem:[#allocation7_spill] sm:$0xff] %v7036_v43  ;;  %v7042_v53 = vadd.f32 %v5365_v40, %v6887_v19  ;;  %vm1737_vm7 = vcmp.lt.f32.partialorder %v1736_v61, 0.0004427343  ;;  %5796 = vlog2.f32 %v1739_v38 }
 0x185   :  { %v7045_v63 = vpop.eup %5786  ;;  %v2354_v28 = vsel %vm1457_vm4, %v6890_v21, %v2290_v52  ;;  %v7057_v40 = vadd.f32 %v6887_v19, %v1092_v48  ;;  %v1732_v22 = vmul.f32 0.6931472, %v5785_v41  ;;  %v1537_v21 = vmin.f32 %v7036_v43, 20.0  ;;  %10014 = vst [vmem:[#allocation12_spill] sm:$0xff] %v7070_v24 }
 0x186   :  { %10011 = vst [vmem:[#allocation9_spill] sm:$0xff] %v7042_v53  ;;  %v2353_v11 = vsel %vm1456_vm5, %v6893_v23, %v2289_v35  ;;  %v7051_v4 = vpop.eup %5788  ;;  %v7073_v25 = vmul.f32 100.0, %v7042_v53  ;;  %5798 = vpow2.f32 %v1604_v27  ;;  %v1742_v38 = vmul.f32 -0.5, %v7008_v6 }
 0x187   :  { %v5368_v10 = vpop.f32.mrb[20].mxu0  ;;  %10012 = vst [vmem:[#allocation10_spill] sm:$0xff] %v7057_v40  ;;  %5448 = vmatprep.mubr.msk.f32.mxu0 %vm2432_vm3, %v2353_v11  ;;  %v1738_v5 = vsel %vm1737_vm7, %v1735_v18, %v1732_v22  ;;  %v7077_v29 = vpop.eup %5790  ;;  %5800 = vpow2.f32 %v1610_v0  ;;  %v7080_v35 = vmul.f32 100.0, %v7057_v40  ;;  %v1612_v41 = vmul.f32 1.442695, %v1534_v20 }
 0x188   :  { %v7020_v16 = vpop.f32.mrb[21].mxu0  ;;  %v7063_v12 = vadd.f32 %v5368_v10, %v6887_v19  ;;  %5449 = vmatmul.mubr.msk.f32.vlgmr.msra.gmra.mrb[64].mxu0 %vm2432_vm3, %v2354_v28  ;;  %10015 = vst [vmem:[#allocation13_spill] sm:$0xff] %v7073_v25  ;;  %v1614_v10 = vmul.f32 1.442695, %v1535_v46  ;;  %v2291_v52 = vmul.f32 0.01, %v1738_v5  ;;  %5802 = vpow2.f32 %v1608_v1  ;;  %v7090_v46 = vpop.eup %5792 }
 0x189   :  { %10016 = vst [vmem:[#allocation14_spill] sm:$0xff] %v7080_v35  ;;  %v1618_v28 = vmul.f32 1.442695, %v1537_v21  ;;  %v1536_v0 = vmin.f32 %v7070_v24, 20.0  ;;  %v1539_v22 = vmin.f32 %v7073_v25, 20.0  ;;  %v1748_v33 = vadd.f32 1.0, %v7029_v34  ;;  %v7098_v18 = vpop.eup %5794 }
 0x18a   :  { %10013 = vst [vmem:[#allocation11_spill] sm:$0xff] %v7063_v12  ;;  %v7085_v61 = vmul.f32 100.0, %v7063_v12  ;;  %v2355_v11 = vsel %vm1458_vm8, %v6904_v30, %v2291_v52  ;;  %5804 = vpow2.f32 %v1614_v10  ;;  %v7102_v30 = vadd.f32 %v6887_v19, %v7020_v16 }
 0x18b   :  { %v5371_v37 = vpop.f32.mrb[22].mxu0  ;;  %5451 = vmatprep.mubr.msk.f32.mxu1 %vm2432_vm3, %v2355_v11  ;;  %v1538_v20 = vmin.f32 %v7080_v35, 20.0  ;;  %v1743_v5 = vadd.f32 1.0, %v1742_v38  ;;  %5806 = vlog2.f32 %v1748_v33  ;;  %v1745_v11 = vand.u32 2147483647, %v7008_v6 }
 0x18c   :  { %v1112_v62 = vpop.f32.mrb[23].mxu0  ;;  %10017 = vst [vmem:[#allocation15_spill] sm:$0xff] %v7085_v61  ;;  %10018 = vst [vmem:[#allocation16_spill] sm:$0xff] %v7102_v30  ;;  %v7106_v21 = vadd.f32 %v5371_v37, %v6887_v19  ;;  %5808 = vpow2.f32 %v1612_v41  ;;  %v1541_v52 = vmin.f32 %v7085_v61, 20.0  ;;  %v1757_v12 = vadd.f32 1.0, %v7027_v26 }
 0x18d   :  { %5810 = vpow2.f32 %v1618_v28  ;;  %v1616_v10 = vmul.f32 1.442695, %v1536_v0  ;;  %v1622_v16 = vmul.f32 1.442695, %v1539_v22  ;;  %v7114_v40 = vadd.f32 %v6887_v19, %v1112_v62 }
 0x18e   :  { %10019 = vst [vmem:[#allocation17_spill] sm:$0xff] %v7106_v21  ;;  %v5797_v25 = vpop.eup %5796  ;;  %v7117_v37 = vmul.f32 100.0, %v7102_v30  ;;  %v1751_v38 = vmul.f32 -0.5, %v7029_v34  ;;  %5812 = vlog2.f32 %v1757_v12  ;;  %v1766_v41 = vadd.f32 1.0, %v7051_v4 }
 0x18f   :  { %v7066_v23 = vpop.f32.mrb[24].mxu0  ;;  %10020 = vst [vmem:[#allocation18_spill] sm:$0xff] %v7114_v40  ;;  %v1620_v61 = vmul.f32 1.442695, %v1538_v20  ;;  %v7124_v51 = vmul.f32 100.0, %v7106_v21  ;;  %v1744_v0 = vmul.f32 %v7008_v6, %v1743_v5  ;;  %v7135_v20 = vmul.f32 100.0, %v7114_v40 }
 0x190   :  { %v7075_v48 = vpop.f32.mrb[25].mxu0  ;;  %10021 = vst [vmem:[#allocation19_spill] sm:$0xff] %v7117_v37  ;;  %v1741_v28 = vmul.f32 0.6931472, %v5797_v25  ;;  %v7127_v62 = vpop.eup %5798  ;;  %v1626_v22 = vmul.f32 1.442695, %v1541_v52  ;;  %5814 = vlog2.f32 %v1766_v41 }
 0x191   :  { %10022 = vst [vmem:[#allocation20_spill] sm:$0xff] %v7124_v51  ;;  %vm1746_vm10 = vcmp.lt.f32.partialorder %v1745_v11, 0.0004427343  ;;  %v7132_v12 = vpop.eup %5800  ;;  %5816 = vpow2.f32 %v1616_v10  ;;  %10023 = vst [vmem:[#allocation21_spill] sm:$0xff] %v7135_v20  ;;  %v1760_v25 = vmul.f32 -0.5, %v7027_v26  ;;  %v1752_v52 = vadd.f32 1.0, %v1751_v38 }
 0x192   :  { %v1747_v21 = vsel %vm1746_vm10, %v1744_v0, %v1741_v28  ;;  %v7140_v6 = vpop.eup %5802  ;;  %5818 = vpow2.f32 %v1622_v16  ;;  %v1769_v11 = vmul.f32 -0.5, %v7051_v4  ;;  %v1540_v41 = vmin.f32 %v7117_v37, 20.0 }
 0x193   :  { %v7088_v27 = vpop.f32.mrb[26].mxu0  ;;  %v2292_v5 = vmul.f32 0.01, %v1747_v21  ;;  %5820 = vpow2.f32 %v1620_v61  ;;  %v1543_v10 = vmin.f32 %v7124_v51, 20.0  ;;  %v1754_v40 = vand.u32 2147483647, %v7029_v34 }
 0x194   :  { %v7096_v1 = vpop.f32.mrb[27].mxu0  ;;  %v7146_v58 = vpop.eup %5804  ;;  %5822 = vpow2.f32 %v1626_v22  ;;  %v1775_v21 = vadd.f32 1.0, %v7045_v63  ;;  %v1542_v28 = vmin.f32 %v7135_v20, 20.0  ;;  %v7160_v0 = vadd.f32 %v7066_v23, %v6887_v19 }
 0x195   :  { %v2356_v16 = vsel %vm1459_vm9, %v6911_v39, %v2292_v5  ;;  %v5807_v61 = vpop.eup %5806  ;;  %v1761_v22 = vadd.f32 1.0, %v1760_v25  ;;  %v1763_v51 = vand.u32 2147483647, %v7027_v26  ;;  %v1753_v37 = vmul.f32 %v7029_v34, %v1752_v52 }
 0x196   :  { %5452 = vmatmul.mubr.msk.f32.vlgmr.msra.gmra.mrb[0].mxu1 %vm2432_vm3, %v2356_v16  ;;  %10024 = vst [vmem:[#allocation22_spill] sm:$0xff] %v7160_v0  ;;  %v7165_v39 = vpop.eup %5808  ;;  %v1750_v5 = vmul.f32 0.6931472, %v5807_v61  ;;  %v1770_v43 = vadd.f32 1.0, %v1769_v11  ;;  %v1784_v7 = vadd.f32 1.0, %v7090_v46  ;;  %5824 = vlog2.f32 %v1775_v21 }
 0x197   :  { %v7111_v53 = vpop.f32.mrb[28].mxu0  ;;  %v7169_v20 = vpop.eup %5810  ;;  %v1624_v16 = vmul.f32 1.442695, %v1540_v41  ;;  %v1630_v24 = vmul.f32 1.442695, %v1543_v10  ;;  %v7173_v31 = vadd.f32 %v6887_v19, %v7075_v48  ;;  %v7179_v34 = vmul.f32 100.0, %v7160_v0 }
 0x198   :  { %v7121_v33 = vpop.f32.mrb[29].mxu0  ;;  %vm1755_vm13 = vcmp.lt.f32.partialorder %v1754_v40, 0.0004427343  ;;  %v5813_v23 = vpop.eup %5812  ;;  %v1772_v9 = vand.u32 2147483647, %v7051_v4  ;;  %5826 = vlog2.f32 %v1784_v7  ;;  %v1762_v41 = vmul.f32 %v7027_v26, %v1761_v22 }
 0x199   :  { %v1756_v25 = vsel %vm1755_vm13, %v1753_v37, %v1750_v5  ;;  %10025 = vst [vmem:[#allocation23_spill] sm:$0xff] %v7173_v31  ;;  %v1759_v11 = vmul.f32 0.6931472, %v5813_v23  ;;  %v1628_v10 = vmul.f32 1.442695, %v1542_v28  ;;  %v1771_v37 = vmul.f32 %v7051_v4, %v1770_v43 }
 0x19a   :  { %v2293_v52 = vmul.f32 0.01, %v1756_v25  ;;  %v5815_v40 = vpop.eup %5814  ;;  %vm1764_vm14 = vcmp.lt.f32.partialorder %v1763_v51, 0.0004427343  ;;  %v1778_v48 = vmul.f32 -0.5, %v7045_v63  ;;  %v1787_v23 = vmul.f32 -0.5, %v7090_v46 }
 0x19b   :  { %v7130_v30 = vpop.f32.mrb[30].mxu0  ;;  %v7186_v5 = vpop.eup %5816  ;;  %v1765_v0 = vsel %vm1764_vm14, %v1762_v41, %v1759_v11  ;;  %v1768_v25 = vmul.f32 0.6931472, %v5815_v40  ;;  %5828 = vpow2.f32 %v1624_v16  ;;  %v7196_v43 = vmul.f32 100.0, %v7173_v31 }
 0x19c   :  { %v7138_v35 = vpop.f32.mrb[31].mxu0  ;;  %v2357_v7 = vsel %vm1460_vm11, %v6920_v45, %v2293_v52  ;;  %v7192_v26 = vpop.eup %5818  ;;  %v2294_v51 = vmul.f32 0.01, %v1765_v0  ;;  %vm1773_vm15 = vcmp.lt.f32.partialorder %v1772_v9, 0.0004427343  ;;  %v1545_v28 = vmin.f32 %v7179_v34, 20.0 }
 0x19d   :  { %5454 = vmatprep.mubr.msk.f32.mxu1 %vm2432_vm3, %v2357_v7  ;;  %v7198_v4 = vpop.eup %5820  ;;  %v7203_v45 = vadd.f32 %v7088_v27, %v6887_v19  ;;  %v1774_v54 = vsel %vm1773_vm15, %v1771_v37, %v1768_v25  ;;  %v1793_v22 = vadd.f32 1.0, %v7077_v29  ;;  %5830 = vpow2.f32 %v1630_v24 }
 0x19e   :  { %v7208_v16 = vpop.eup %5822  ;;  %v2358_v9 = vsel %vm1461_vm12, %v6914_v42, %v2294_v51  ;;  %v2295_v0 = vmul.f32 0.01, %v1774_v54  ;;  %v1779_v11 = vadd.f32 1.0, %v1778_v48  ;;  %v1781_v27 = vand.u32 2147483647, %v7045_v63 }
 0x19f   :  { %v7153_v38 = vpop.f32.mrb[32].mxu0  ;;  %10026 = vst [vmem:[#allocation24_spill] sm:$0xff] %v7203_v45  ;;  %5455 = vmatmul.mubr.msk.f32.gmra.mrb[2].mxu1 %vm2432_vm3, %v2358_v9  ;;  %v1788_v40 = vadd.f32 1.0, %v1787_v23  ;;  %5832 = vlog2.f32 %v1793_v22  ;;  %v1544_v37 = vmin.f32 %v7196_v43, 20.0  ;;  %v1790_v7 = vand.u32 2147483647, %v7090_v46 }
 0x1a0   :  { %v7163_v44 = vpop.f32.mrb[33].mxu0  ;;  %v2359_v24 = vsel %vm1462_vm1, %v6932_v50, %v2295_v0  ;;  %v1802_v42 = vadd.f32 1.0, %v7127_v62  ;;  %v5825_v48 = vpop.eup %5824  ;;  %vm1464_vm2 = vcmp.gt.f32.partialorder %v6967_v13, 20.0  ;;  %5834 = vpow2.f32 %v1628_v10 }
 0x1a1   :  { %v1634_v59 = vmul.f32 1.442695, %v1545_v28  ;;  %v7227_v25 = vmul.f32 100.0, %v7203_v45  ;;  %5457 = vmatprep.mubr.msk.f32.mxu1 %vm2432_vm3, %v2359_v24  ;;  %v1777_v50 = vmul.f32 0.6931472, %v5825_v48  ;;  %v1780_v54 = vmul.f32 %v7045_v63, %v1779_v11 }
 0x1a2   :  { %v5827_v51 = vpop.eup %5826  ;;  %v1796_v22 = vmul.f32 -0.5, %v7077_v29  ;;  %5836 = vlog2.f32 %v1802_v42  ;;  %v7236_v9 = vadd.f32 %v6887_v19, %v7096_v1  ;;  %vm1782_vm4 = vcmp.lt.f32.partialorder %v1781_v27, 0.0004427343 }
 0x1a3   :  { %v7176_v61 = vpop.f32.mrb[34].mxu0  ;;  %10027 = vst [vmem:[#allocation25_spill] sm:$0xff] %v7227_v25  ;;  %v1786_v10 = vmul.f32 0.6931472, %v5827_v51  ;;  %v1789_v28 = vmul.f32 %v7090_v46, %v1788_v40  ;;  %v1632_v0 = vmul.f32 1.442695, %v1544_v37  ;;  %v1783_v45 = vsel %vm1782_vm4, %v1780_v54, %v1777_v50 }
 0x1a4   :  { %v7184_v21 = vpop.f32.mrb[35].mxu0  ;;  %10028 = vst [vmem:[#allocation26_spill] sm:$0xff] %v7236_v9  ;;  %v7241_v24 = vadd.f32 %v7111_v53, %v6887_v19  ;;  %vm1791_vm5 = vcmp.lt.f32.partialorder %v1790_v7, 0.0004427343  ;;  %v2296_v63 = vmul.f32 0.01, %v1783_v45  ;;  %5838 = vpow2.f32 %v1634_v59 }
 0x1a5   :  { %v1792_v11 = vsel %vm1791_vm5, %v1789_v28, %v1786_v10  ;;  %v1805_v42 = vmul.f32 -0.5, %v7127_v62  ;;  %v1811_v1 = vadd.f32 1.0, %v7098_v18  ;;  %v7249_v27 = vpop.eup %5828  ;;  %vm1465_vm6 = vcmp.gt.f32.partialorder %v6963_v8, 20.0 }
 0x1a6   :  { %10029 = vst [vmem:[#allocation27_spill] sm:$0xff] %v7241_v24  ;;  %v1547_v46 = vmin.f32 %v7227_v25, 20.0  ;;  %v2297_v53 = vmul.f32 0.01, %v1792_v11  ;;  %v1797_v40 = vadd.f32 1.0, %v1796_v22  ;;  %v7254_v37 = vmul.f32 100.0, %v7236_v9 }
 0x1a7   :  { %v7206_v52 = vpop.f32.mrb[36].mxu0  ;;  %v2360_v45 = vsel %vm1463_vm0, %v6925_v47, %v2296_v63  ;;  %v1799_v7 = vand.u32 2147483647, %v7077_v29  ;;  %5840 = vlog2.f32 %v1811_v1  ;;  %v7260_v51 = vpop.eup %5830  ;;  %v7264_v59 = vmul.f32 100.0, %v7241_v24 }
 0x1a8   :  { %v7214_v41 = vpop.f32.mrb[37].mxu0  ;;  %5458 = vmatmul.mubr.msk.f32.gmra.mrb[4].mxu1 %vm2432_vm3, %v2360_v45  ;;  %v2361_v50 = vsel %vm1464_vm2, %v6954_v2, %v2297_v53  ;;  %v7271_v54 = vadd.f32 %v6887_v19, %v7121_v33  ;;  %v7275_v47 = vadd.f32 %v7130_v30, %v6887_v19  ;;  %vm1466_vm7 = vcmp.gt.f32.partialorder %v6988_v36, 20.0 }
 0x1a9   :  { %10030 = vst [vmem:[#allocation28_spill] sm:$0xff] %v7264_v59  ;;  %v5833_v22 = vpop.eup %5832  ;;  %5842 = vpow2.f32 %v1632_v0  ;;  %5460 = vmatprep.mubr.msk.f32.mxu1 %vm2432_vm3, %v2361_v50  ;;  %v1806_v10 = vadd.f32 1.0, %v1805_v42  ;;  %v1820_v13 = vadd.f32 1.0, %v7140_v6  ;;  %v1798_v33 = vmul.f32 %v7077_v29, %v1797_v40 }
 0x1aa   :  { %10031 = vst [vmem:[#allocation29_spill] sm:$0xff] %v7271_v54  ;;  %10032 = vst [vmem:[#allocation30_spill] sm:$0xff] %v7275_v47  ;;  %v1795_v28 = vmul.f32 0.6931472, %v5833_v22  ;;  %v1808_v63 = vand.u32 2147483647, %v7127_v62  ;;  %v7287_v11 = vpop.eup %5834 }
 0x1ab   :  { %v7223_v49 = vpop.f32.mrb[38].mxu0  ;;  %v1814_v30 = vmul.f32 -0.5, %v7098_v18  ;;  %v1638_v1 = vmul.f32 1.442695, %v1547_v46  ;;  %v1546_v53 = vmin.f32 %v7254_v37, 20.0  ;;  %5844 = vlog2.f32 %v1820_v13 }
 0x1ac   :  { %v7230_v23 = vpop.f32.mrb[39].mxu0  ;;  %vm1800_vm8 = vcmp.lt.f32.partialorder %v1799_v7, 0.0004427343  ;;  %v5837_v0 = vpop.eup %5836  ;;  %v1549_v42 = vmin.f32 %v7264_v59, 20.0  ;;  %v7292_v45 = vmul.f32 100.0, %v7271_v54  ;;  %v7295_v29 = vmul.f32 100.0, %v7275_v47 }
 0x1ad   :  { %v1801_v50 = vsel %vm1800_vm8, %v1798_v33, %v1795_v28  ;;  %v1804_v24 = vmul.f32 0.6931472, %v5837_v0  ;;  %v1807_v46 = vmul.f32 %v7127_v62, %v1806_v10  ;;  %v7302_v7 = vadd.f32 %v6887_v19, %v7138_v35 }
 0x1ae   :  { %10033 = vst [vmem:[#allocation31_spill] sm:$0xff] %v7292_v45  ;;  %10034 = vst [vmem:[#allocation32_spill] sm:$0xff] %v7295_v29  ;;  %v2298_v22 = vmul.f32 0.01, %v1801_v50  ;;  %vm1467_vm9 = vcmp.gt.f32.partialorder %v6970_v14, 20.0  ;;  %v1815_v13 = vadd.f32 1.0, %v1814_v30  ;;  %v7313_v35 = vpop.eup %5838 }
 0x1af   :  { %v7243_v48 = vpop.f32.mrb[40].mxu0  ;;  %10035 = vst [vmem:[#allocation33_spill] sm:$0xff] %v7302_v7  ;;  %vm1809_vm10 = vcmp.lt.f32.partialorder %v1808_v63, 0.0004427343  ;;  %v1823_v54 = vmul.f32 -0.5, %v7140_v6  ;;  %v1829_v28 = vadd.f32 1.0, %v7132_v12 }
 0x1b0   :  { %v7247_v31 = vpop.f32.mrb[41].mxu0  ;;  %v1636_v47 = vmul.f32 1.442695, %v1546_v53  ;;  %v2362_v0 = vsel %vm1465_vm6, %v6948_v60, %v2298_v22  ;;  %v1810_v62 = vsel %vm1809_vm10, %v1807_v46, %v1804_v24  ;;  %v1817_v10 = vand.u32 2147483647, %v7098_v18 }
 0x1b1   :  { %v1548_v50 = vmin.f32 %v7292_v45, 20.0  ;;  %5461 = vmatmul.mubr.msk.f32.gmra.mrb[6].mxu1 %vm2432_vm3, %v2362_v0  ;;  %v1551_v63 = vmin.f32 %v7295_v29, 20.0  ;;  %v2299_v30 = vmul.f32 0.01, %v1810_v62  ;;  %5846 = vlog2.f32 %v1829_v28  ;;  %v5841_v53 = vpop.eup %5840 }
 0x1b2   :  { %v1642_v9 = vmul.f32 1.442695, %v1549_v42  ;;  %v7321_v8 = vmul.f32 100.0, %v7302_v7  ;;  %v7325_v60 = vadd.f32 %v7153_v38, %v6887_v19  ;;  %v1838_v24 = vadd.f32 1.0, %v7165_v39 }
 0x1b3   :  { %v7277_v56 = vpop.f32.mrb[42].mxu0  ;;  %vm1468_vm11 = vcmp.gt.f32.partialorder %v7001_v57, 20.0  ;;  %v2363_v46 = vsel %vm1466_vm7, %v6973_v15, %v2299_v30  ;;  %v1813_v28 = vmul.f32 0.6931472, %v5841_v53  ;;  %v1816_v42 = vmul.f32 %v7098_v18, %v1815_v13  ;;  %v7335_v62 = vpop.eup %5842 }
 0x1b4   :  { %v7282_v2 = vpop.f32.mrb[43].mxu0  ;;  %10036 = vst [vmem:[#allocation34_spill] sm:$0xff] %v7325_v60  ;;  %v1824_v0 = vadd.f32 1.0, %v1823_v54  ;;  %5848 = vpow2.f32 %v1638_v1  ;;  %5463 = vmatprep.mubr.msk.f32.mxu1 %vm2432_vm3, %v2363_v46  ;;  %vm1818_vm12 = vcmp.lt.f32.partialorder %v1817_v10, 0.0004427343  ;;  %v1832_v29 = vmul.f32 -0.5, %v7132_v12 }
 0x1b5   :  { %v1826_v38 = vand.u32 2147483647, %v7140_v6  ;;  %5850 = vpow2.f32 %v1636_v47  ;;  %v1640_v7 = vmul.f32 1.442695, %v1548_v50  ;;  %v1646_v45 = vmul.f32 1.442695, %v1551_v63  ;;  %v5845_v15 = vpop.eup %5844 }
 0x1b6   :  { %v1819_v25 = vsel %vm1818_vm12, %v1816_v42, %v1813_v28  ;;  %v1550_v18 = vmin.f32 %v7321_v8, 20.0  ;;  %v7345_v1 = vadd.f32 %v6887_v19, %v7163_v44  ;;  %5852 = vlog2.f32 %v1838_v24 }
 0x1b7   :  { %v7297_v40 = vpop.f32.mrb[44].mxu0  ;;  %v2300_v54 = vmul.f32 0.01, %v1819_v25  ;;  %v7350_v10 = vmul.f32 100.0, %v7325_v60  ;;  %v1822_v47 = vmul.f32 0.6931472, %v5845_v15  ;;  %v1825_v50 = vmul.f32 %v7140_v6, %v1824_v0 }
 0x1b8   :  { %v7307_v33 = vpop.f32.mrb[45].mxu0  ;;  %10037 = vst [vmem:[#allocation35_spill] sm:$0xff] %v7345_v1  ;;  %v1847_v63 = vadd.f32 1.0, %v7146_v58  ;;  %vm1469_vm13 = vcmp.gt.f32.partialorder %v6998_v55, 20.0  ;;  %5854 = vpow2.f32 %v1642_v9  ;;  %vm1827_vm14 = vcmp.lt.f32.partialorder %v1826_v38, 0.0004427343 }
 0x1b9   :  { %10038 = vst [vmem:[#allocation36_spill] sm:$0xff] %v7350_v10  ;;  %v2364_v25 = vsel %vm1467_vm9, %v6957_v3, %v2300_v54  ;;  %v1833_v44 = vadd.f32 1.0, %v1832_v29  ;;  %v1828_v30 = vsel %vm1827_vm14, %v1825_v50, %v1822_v47  ;;  %v1835_v53 = vand.u32 2147483647, %v7132_v12 }
 0x1ba   :  { %5464 = vmatmul.mubr.msk.f32.gmra.mrb[8].mxu1 %vm2432_vm3, %v2364_v25  ;;  %v1841_v24 = vmul.f32 -0.5, %v7165_v39  ;;  %5856 = vlog2.f32 %v1847_v63  ;;  %v2301_v46 = vmul.f32 0.01, %v1828_v30  ;;  %v7364_v9 = vmul.f32 100.0, %v7345_v1 }
 0x1bb   :  { %v7318_v59 = vpop.f32.mrb[46].mxu0  ;;  %5858 = vpow2.f32 %v1640_v7  ;;  %v7368_v3 = vadd.f32 %v7176_v61, %v6887_v19  ;;  %v5847_v29 = vpop.eup %5846  ;;  %v1644_v28 = vmul.f32 1.442695, %v1550_v18  ;;  %v1553_v42 = vmin.f32 %v7350_v10, 20.0  ;;  %v10050_v10 = vld [vmem:[#allocation4_spill] sm:$0xff] }
 0x1bc   :  { %v7328_v22 = vpop.f32.mrb[47].mxu0  ;;  %5860 = vpow2.f32 %v1646_v45  ;;  %v1856_v0 = vadd.f32 1.0, %v7186_v5  ;;  %v2365_v7 = vsel %vm1468_vm11, %v6983_v32, %v2301_v46  ;;  %v1831_v38 = vmul.f32 0.6931472, %v5847_v29  ;;  %v10042_v46 = vld [vmem:[#allocation6_spill] sm:$0xff] }
 0x1bd   :  { %10039 = vst [vmem:[#allocation37_spill] sm:$0xff] %v7368_v3  ;;  %v1834_v15 = vmul.f32 %v7132_v12, %v1833_v44  ;;  %v1850_v54 = vmul.f32 -0.5, %v7146_v58  ;;  %vm1470_vm15 = vcmp.gt.f32.partialorder %v7032_v17, 20.0  ;;  %5466 = vmatprep.mubr.msk.f32.mxu1 %vm2432_vm3, %v2365_v7  ;;  %vm1836_vm0 = vcmp.lt.f32.partialorder %v1835_v53, 0.0004427343 }
 0x1be   :  { %v1842_v61 = vadd.f32 1.0, %v1841_v24  ;;  %5862 = vlog2.f32 %v1856_v0  ;;  %v7383_v18 = vpop.eup %5848  ;;  %v1552_v47 = vmin.f32 %v7364_v9, 20.0  ;;  %v7387_v32 = vmul.f32 100.0, %v7368_v3 }
 0x1bf   :  { %v7340_v36 = vpop.f32.mrb[48].mxu0  ;;  %v1837_v57 = vsel %vm1836_vm0, %v1834_v15, %v1831_v38  ;;  %v1844_v12 = vand.u32 2147483647, %v7165_v39  ;;  %v7392_v63 = vpop.eup %5850  ;;  %v7396_v44 = vadd.f32 %v6887_v19, %v7184_v21  ;;  %v1853_v30 = vand.u32 2147483647, %v7146_v58  ;;  %v10043_v38 = vld [vmem:[#allocation2_spill] sm:$0xff] }
 0x1c0   :  { %v7347_v13 = vpop.f32.mrb[49].mxu0  ;;  %10040 = vst [vmem:[#allocation38_spill] sm:$0xff] %v7387_v32  ;;  %v2302_v25 = vmul.f32 0.01, %v1837_v57  ;;  %v1865_v53 = vadd.f32 1.0, %v7169_v20  ;;  %v5853_v24 = vpop.eup %5852  ;;  %vm1471_vm1 = vcmp.gt.f32.partialorder %v10042_v46, 20.0  ;;  %5864 = vpow2.f32 %v1644_v28 }
 0x1c1   :  { %10041 = vst [vmem:[#allocation39_spill] sm:$0xff] %v7396_v44  ;;  %v1650_v29 = vmul.f32 1.442695, %v1553_v42  ;;  %v1851_v0 = vadd.f32 1.0, %v1850_v54  ;;  %v1859_v7 = vmul.f32 -0.5, %v7186_v5  ;;  %v1843_v21 = vmul.f32 %v7165_v39, %v1842_v61 }
 0x1c2   :  { %v2366_v15 = vsel %vm1469_vm13, %v10043_v38, %v2302_v25  ;;  %v1840_v57 = vmul.f32 0.6931472, %v5853_v24  ;;  %v7408_v3 = vadd.f32 %v7206_v52, %v6887_v19  ;;  %v7412_v1 = vpop.eup %5854  ;;  %v1648_v28 = vmul.f32 1.442695, %v1552_v47  ;;  %v10048_v24 = vld [vmem:[#allocation12_spill] sm:$0xff] }
 0x1c3   :  { %v7361_v6 = vpop.f32.mrb[50].mxu0  ;;  %5467 = vmatmul.mubr.msk.f32.gmra.mrb[10].mxu1 %vm2432_vm3, %v2366_v15  ;;  %v1555_v42 = vmin.f32 %v7387_v32, 20.0  ;;  %vm1845_vm2 = vcmp.lt.f32.partialorder %v1844_v12, 0.0004427343  ;;  %5866 = vlog2.f32 %v1865_v53  ;;  %v7419_v39 = vmul.f32 100.0, %v7396_v44 }
 0x1c4   :  { %v7370_v14 = vpop.f32.mrb[51].mxu0  ;;  %10044 = vst [vmem:[#allocation6_spill] sm:$0xff] %v7408_v3  ;;  %v5857_v54 = vpop.eup %5856  ;;  %v1846_v25 = vsel %vm1845_vm2, %v1843_v21, %v1840_v57  ;;  %vm7421_vm4 = vcmp.lt.f32.partialorder %v1853_v30, 0.0004427343  ;;  %v1874_v61 = vadd.f32 1.0, %v7198_v4  ;;  %vm1472_vm5 = vcmp.gt.f32.partialorder %v10048_v24, 20.0 }
 0x1c5   :  { %10045 = vst [vmem:[#allocation2_spill] sm:$0xff] %v7419_v39  ;;  %v7426_v47 = vpop.eup %5858  ;;  %v2303_v38 = vmul.f32 0.01, %v1846_v25  ;;  %v1849_v12 = vmul.f32 0.6931472, %v5857_v54  ;;  %v1852_v53 = vmul.f32 %v7146_v58, %v1851_v0  ;;  %v1860_v15 = vadd.f32 1.0, %v1859_v7 }
 0x1c6   :  { %v7430_v32 = vpop.eup %5860  ;;  %v7433_v57 = vmul.f32 100.0, %v7408_v3  ;;  %v1862_v30 = vand.u32 2147483647, %v7186_v5  ;;  %v1868_v21 = vmul.f32 -0.5, %v7169_v20  ;;  %5868 = vlog2.f32 %v1874_v61 }
 0x1c7   :  { %v7381_v45 = vpop.f32.mrb[52].mxu0  ;;  %5870 = vpow2.f32 %v1650_v29  ;;  %v2367_v54 = vsel %vm1470_vm15, %v10050_v10, %v2303_v38  ;;  %v1855_v58 = vsel %vm7421_vm4, %v1852_v53, %v1849_v12  ;;  %v7446_v0 = vadd.f32 %v6887_v19, %v7214_v41  ;;  %v10053_v12 = vld [vmem:[#allocation7_spill] sm:$0xff] }
 0x1c8   :  { %v7390_v50 = vpop.f32.mrb[53].mxu0  ;;  %10049 = vst [vmem:[#allocation12_spill] sm:$0xff] %v7433_v57  ;;  %v5863_v25 = vpop.eup %5862  ;;  %5872 = vpow2.f32 %v1648_v28  ;;  %v1654_v3 = vmul.f32 1.442695, %v1555_v42  ;;  %5469 = vmatprep.mubr.msk.f32.mxu1 %vm2432_vm3, %v2367_v54  ;;  %v2304_v61 = vmul.f32 0.01, %v1855_v58  ;;  %v1861_v52 = vmul.f32 %v7186_v5, %v1860_v15 }
 0x1c9   :  { %10051 = vst [vmem:[#allocation4_spill] sm:$0xff] %v7446_v0  ;;  %v1877_v29 = vmul.f32 -0.5, %v7198_v4  ;;  %v1554_v17 = vmin.f32 %v7419_v39, 20.0  ;;  %v1858_v10 = vmul.f32 0.6931472, %v5863_v25  ;;  %v1883_v38 = vadd.f32 1.0, %v7192_v26 }
 0x1ca   :  { %vm1473_vm6 = vcmp.gt.f32.partialorder %v10053_v12, 20.0  ;;  %v10054_v19 = vld [vmem:[#allocation3_spill] sm:$0xff]  ;;  %v1557_v28 = vmin.f32 %v7433_v57, 20.0  ;;  %vm1863_vm7 = vcmp.lt.f32.partialorder %v1862_v30, 0.0004427343  ;;  %v1869_v42 = vadd.f32 1.0, %v1868_v21  ;;  %v7462_v54 = vpop.eup %5864 }
 0x1cb   :  { %v7410_v60 = vpop.f32.mrb[54].mxu0  ;;  %v2368_v41 = vsel %vm1471_vm1, %v10054_v19, %v2304_v61  ;;  %v1864_v58 = vsel %vm1863_vm7, %v1861_v52, %v1858_v10  ;;  %v7466_v5 = vmul.f32 100.0, %v7446_v0  ;;  %v1871_v15 = vand.u32 2147483647, %v7169_v20  ;;  %v7474_v30 = vld [vmem:[%s9900_s4] ss:$0 sm:$0xff] }
 0x1cc   :  { %v7416_v55 = vpop.f32.mrb[55].mxu0  ;;  %5470 = vmatmul.mubr.msk.f32.gmra.mrb[12].mxu1 %vm2432_vm3, %v2368_v41  ;;  %5874 = vlog2.f32 %v1883_v38  ;;  %v2305_v46 = vmul.f32 0.01, %v1864_v58  ;;  %v7478_v21 = vadd.f32 %v7474_v30, %v7223_v49  ;;  %v1878_v61 = vadd.f32 1.0, %v1877_v29  ;;  %v10059_v19 = vld [vmem:[#allocation14_spill] sm:$0xff]  ;;  %v10060_v0 = vld [vmem:[#allocation8_spill] sm:$0xff] }
 0x1cd   :  { %v7482_v10 = vadd.f32 %v7474_v30, %v7230_v23  ;;  %v5867_v52 = vpop.eup %5866  ;;  %vm1474_vm8 = vcmp.gt.f32.partialorder %v10059_v19, 20.0  ;;  %5876 = vpow2.f32 %v1654_v3  ;;  %v1652_v38 = vmul.f32 1.442695, %v1554_v17 }
 0x1ce   :  { %10057 = vst [vmem:[#allocation41_spill] sm:$0xff] %v7478_v21  ;;  %v1886_v41 = vmul.f32 -0.5, %v7192_v26  ;;  %v1892_v58 = vadd.f32 1.0, %v7249_v27  ;;  %v2369_v57 = vsel %vm1472_vm5, %v10060_v0, %v2305_v46  ;;  %v1867_v49 = vmul.f32 0.6931472, %v5867_v52 }
 0x1cf   :  { %v7437_v44 = vpop.f32.mrb[56].mxu0  ;;  %10058 = vst [vmem:[#allocation42_spill] sm:$0xff] %v7482_v10  ;;  %v1870_v29 = vmul.f32 %v7169_v20, %v1869_v42  ;;  %v1658_v39 = vmul.f32 1.442695, %v1557_v28  ;;  %5472 = vmatprep.mubr.msk.f32.mxu1 %vm2432_vm3, %v2369_v57  ;;  %v1556_v3 = vmin.f32 %v7466_v5, 20.0  ;;  %v7499_v24 = vmul.f32 100.0, %v7478_v21 }
 0x1d0   :  { %v7448_v7 = vpop.f32.mrb[57].mxu0  ;;  %vm1872_vm9 = vcmp.lt.f32.partialorder %v1871_v15, 0.0004427343  ;;  %5878 = vlog2.f32 %v1892_v58  ;;  %v1879_v20 = vmul.f32 %v7198_v4, %v1878_v61  ;;  %v7503_v0 = vmul.f32 100.0, %v7482_v10  ;;  %v10063_v58 = vld [vmem:[#allocation13_spill] sm:$0xff] }
 0x1d1   :  { %10052 = vst [vmem:[#allocation40_spill] sm:$0xff] %v7448_v7  ;;  %v1873_v7 = vsel %vm1872_vm9, %v1870_v29, %v1867_v49  ;;  %v1887_v46 = vadd.f32 1.0, %v1886_v41  ;;  %v7509_v15 = vadd.f32 %v7474_v30, %v7243_v48  ;;  %vm1475_vm10 = vcmp.gt.f32.partialorder %v10063_v58, 20.0  ;;  %v10065_v29 = vld [vmem:[#allocation5_spill] sm:$0xff] }
 0x1d2   :  { %v2306_v28 = vmul.f32 0.01, %v1873_v7  ;;  %5880 = vpow2.f32 %v1652_v38  ;;  %v1901_v61 = vadd.f32 1.0, %v7208_v16  ;;  %v1889_v48 = vand.u32 2147483647, %v7192_v26 }
 0x1d3   :  { %v7460_v53 = vpop.f32.mrb[58].mxu0  ;;  %10062 = vst [vmem:[#allocation8_spill] sm:$0xff] %v7509_v15  ;;  %v7524_v41 = vadd.f32 %v7474_v30, %v7247_v31  ;;  %v1559_v38 = vmin.f32 %v7499_v24, 20.0  ;;  %v1888_v12 = vmul.f32 %v7192_v26, %v1887_v46  ;;  %v7537_v31 = vadd.f32 %v7474_v30, %v7277_v56 }
 0x1d4   :  { %10055 = vst [vmem:[#allocation7_spill] sm:$0xff] %v7460_v53  ;;  %v7469_v25 = vpop.f32.mrb[59].mxu0  ;;  %v5869_v53 = vpop.eup %5868  ;;  %v2370_v7 = vsel %vm1473_vm6, %v10065_v29, %v2306_v28  ;;  %5882 = vlog2.f32 %v1901_v61  ;;  %v10068_v28 = vld [vmem:[#allocation10_spill] sm:$0xff]  ;;  %vm1890_vm12 = vcmp.lt.f32.partialorder %v1889_v48, 0.0004427343  ;;  %vm1480_vm6 = vcmp.gt.f32.partialorder %v7196_v43, 20.0 }
 0x1d5   :  { %10056 = vst [vmem:[#allocation3_spill] sm:$0xff] %v7469_v25  ;;  %v1880_v25 = vand.u32 2147483647, %v7198_v4  ;;  %v7505_v42 = vpop.eup %5870  ;;  %v1876_v57 = vmul.f32 0.6931472, %v5869_v53  ;;  %v1895_v4 = vmul.f32 -0.5, %v7249_v27  ;;  %5473 = vmatmul.mubr.msk.f32.gmra.mrb[14].mxu1 %vm2432_vm3, %v2370_v7  ;;  %5884 = vpow2.f32 %v1658_v39 }
 0x1d6   :  { %v7511_v52 = vpop.eup %5872  ;;  %10066 = vst [vmem:[#allocation5_spill] sm:$0xff] %v7524_v41  ;;  %10067 = vst [vmem:[#allocation43_spill] sm:$0xff] %v7537_v31  ;;  %v1910_v7 = vadd.f32 1.0, %v7287_v11  ;;  %v1898_v26 = vand.u32 2147483647, %v7249_v27  ;;  %v7548_v46 = vmul.f32 100.0, %v7524_v41 }
 0x1d7   :  { %v7492_v23 = vpop.f32.mrb[60].mxu0  ;;  %vm1881_vm11 = vcmp.lt.f32.partialorder %v1880_v25, 0.0004427343  ;;  %v1656_v25 = vmul.f32 1.442695, %v1556_v3  ;;  %v1896_v29 = vadd.f32 1.0, %v1895_v4 }
 0x1d8   :  { %v7496_v17 = vpop.f32.mrb[61].mxu0  ;;  %v1882_v53 = vsel %vm1881_vm11, %v1879_v20, %v1876_v57  ;;  %v7533_v20 = vmul.f32 100.0, %v7509_v15  ;;  %v1662_v56 = vmul.f32 1.442695, %v1559_v38  ;;  %v1919_v15 = vadd.f32 1.0, %v7260_v51  ;;  %v10070_v41 = vld [vmem:[#allocation9_spill] sm:$0xff] }
 0x1d9   :  { %10061 = vst [vmem:[#allocation14_spill] sm:$0xff] %v7496_v17  ;;  %v2307_v10 = vmul.f32 0.01, %v1882_v53  ;;  %v5875_v17 = vpop.eup %5874  ;;  %5886 = vpow2.f32 %v1656_v25  ;;  %vm1899_vm13 = vcmp.lt.f32.partialorder %v1898_v26, 0.0004427343  ;;  %v1560_v38 = vmin.f32 %v7548_v46, 20.0 }
 0x1da   :  { %v1885_v57 = vmul.f32 0.6931472, %v5875_v17  ;;  %v7543_v53 = vpop.eup %5876  ;;  %5888 = vlog2.f32 %v1910_v7  ;;  %v1561_v39 = vmin.f32 %v7533_v20, 20.0  ;;  %v1922_v26 = vmul.f32 -0.5, %v7260_v51  ;;  %v10087_v43 = vld [vmem:[#allocation22_spill] sm:$0xff] }
 0x1db   :  { %v7516_v49 = vpop.f32.mrb[62].mxu0  ;;  %v2371_v3 = vsel %vm1474_vm8, %v10068_v28, %v2307_v10  ;;  %v1904_v10 = vmul.f32 -0.5, %v7208_v16  ;;  %v5879_v19 = vpop.eup %5878  ;;  %v7552_v28 = vmul.f32 100.0, %v7537_v31  ;;  %5890 = vlog2.f32 %v1919_v15 }
 0x1dc   :  { %10064 = vst [vmem:[#allocation13_spill] sm:$0xff] %v7516_v49  ;;  %v7526_v21 = vpop.f32.mrb[63].mxu0  ;;  %v1558_v49 = vmin.f32 %v7503_v0, 20.0  ;;  %5475 = vmatprep.mubr.msk.f32.mxu1 %vm2432_vm3, %v2371_v3  ;;  %v1891_v61 = vsel %vm1890_vm12, %v1888_v12, %v1885_v57  ;;  %v1894_v48 = vmul.f32 0.6931472, %v5879_v19  ;;  %v1897_v3 = vmul.f32 %v7249_v27, %v1896_v29  ;;  %v7562_v12 = vpop.eup %5880  ;;  %v10071_v27 = vld [vmem:[#allocation15_spill] sm:$0xff] }
 0x1dd   :  { %v2308_v4 = vmul.f32 0.01, %v1891_v61  ;;  %10069 = vst [vmem:[#allocation10_spill] sm:$0xff] %v7552_v28  ;;  %v1905_v7 = vadd.f32 1.0, %v1904_v10  ;;  %v1913_v61 = vmul.f32 -0.5, %v7287_v11  ;;  %vm1477_vm14 = vcmp.gt.f32.partialorder %v10071_v27, 20.0 }
 0x1de   :  { %v1660_v17 = vmul.f32 1.442695, %v1558_v49  ;;  %v1907_v49 = vand.u32 2147483647, %v7208_v16  ;;  %v1900_v57 = vsel %vm1899_vm13, %v1897_v3, %v1894_v48  ;;  %5892 = vpow2.f32 %v1662_v56  ;;  %v10073_v48 = vld [vmem:[#allocation16_spill] sm:$0xff]  ;;  %v10076_v56 = vld [vmem:[#allocation21_spill] sm:$0xff] }
 0x1df   :  { %v2372_v25 = vsel %vm1475_vm10, %v10070_v41, %v2308_v4  ;;  %v2309_v29 = vmul.f32 0.01, %v1900_v57  ;;  %v1563_v58 = vmin.f32 %v7552_v28, 20.0  ;;  %v10072_v41 = vld [vmem:[#allocation19_spill] sm:$0xff]  ;;  %v1928_v19 = vadd.f32 1.0, %v7335_v62  ;;  %v5883_v4 = vpop.eup %5882 }
 0x1e0   :  { %5476 = vmatmul.mubr.msk.f32.gmra.mrb[16].mxu1 %vm2432_vm3, %v2372_v25  ;;  %vm1476_vm15 = vcmp.gt.f32.partialorder %v10072_v41, 20.0  ;;  %5894 = vpow2.f32 %v1660_v17  ;;  %v1666_v25 = vmul.f32 1.442695, %v1561_v39  ;;  %vm7572_vm0 = vcmp.lt.f32.partialorder %v1907_v49, 0.0004427343  ;;  %v7583_v39 = vpop.eup %5884 }
 0x1e1   :  { %v2373_v10 = vsel %vm1476_vm15, %v10073_v48, %v2309_v29  ;;  %v7578_v15 = vadd.f32 %v7474_v30, %v7282_v2  ;;  %vm1478_vm1 = vcmp.gt.f32.partialorder %v10076_v56, 20.0  ;;  %v1664_v17 = vmul.f32 1.442695, %v1560_v38 }
 0x1e2   :  { %5478 = vmatprep.mubr.msk.f32.mxu1 %vm2432_vm3, %v2373_v10  ;;  %v1903_v57 = vmul.f32 0.6931472, %v5883_v4  ;;  %v1906_v41 = vmul.f32 %v7208_v16, %v1905_v7  ;;  %v1914_v31 = vadd.f32 1.0, %v1913_v61  ;;  %v1670_v29 = vmul.f32 1.442695, %v1563_v58  ;;  %v10079_v58 = vld [vmem:[#allocation20_spill] sm:$0xff] }
 0x1e3   :  { %v1916_v49 = vand.u32 2147483647, %v7287_v11  ;;  %v7588_v48 = vadd.f32 %v7474_v30, %v7297_v40  ;;  %5896 = vlog2.f32 %v1928_v19  ;;  %v7590_v2 = vpop.eup %5886  ;;  %v1923_v38 = vadd.f32 1.0, %v1922_v26 }
 0x1e4   :  { %v1909_v10 = vsel %vm7572_vm0, %v1906_v41, %v1903_v57  ;;  %v7596_v16 = vadd.f32 %v7474_v30, %v7307_v33  ;;  %v1937_v7 = vadd.f32 1.0, %v7313_v35  ;;  %v5889_v61 = vpop.eup %5888  ;;  %vm1479_vm2 = vcmp.gt.f32.partialorder %v10079_v58, 20.0  ;;  %v10080_v33 = vld [vmem:[#allocation11_spill] sm:$0xff] }
 0x1e5   :  { %10077 = vst [vmem:[#allocation9_spill] sm:$0xff] %v7588_v48  ;;  %5898 = vpow2.f32 %v1666_v25  ;;  %v2310_v4 = vmul.f32 0.01, %v1909_v10  ;;  %v7601_v40 = vmul.f32 100.0, %v7578_v15  ;;  %v1931_v19 = vmul.f32 -0.5, %v7335_v62  ;;  %v5891_v41 = vpop.eup %5890 }
 0x1e6   :  { %10078 = vst [vmem:[#allocation15_spill] sm:$0xff] %v7596_v16  ;;  %v1912_v28 = vmul.f32 0.6931472, %v5889_v61  ;;  %v1915_v3 = vmul.f32 %v7287_v11, %v1914_v31  ;;  %v1925_v26 = vand.u32 2147483647, %v7260_v51  ;;  %5900 = vlog2.f32 %v1937_v7 }
 0x1e7   :  { %5902 = vpow2.f32 %v1664_v17  ;;  %v2374_v57 = vsel %vm1477_vm14, %v10080_v33, %v2310_v4  ;;  %vm1917_vm4 = vcmp.lt.f32.partialorder %v1916_v49, 0.0004427343  ;;  %v7610_v25 = vmul.f32 100.0, %v7588_v48 }
 0x1e8   :  { %5479 = vmatmul.mubr.msk.f32.gmra.mrb[18].mxu1 %vm2432_vm3, %v2374_v57  ;;  %5904 = vpow2.f32 %v1670_v29  ;;  %v1918_v10 = vsel %vm1917_vm4, %v1915_v3, %v1912_v28  ;;  %v1924_v61 = vmul.f32 %v7260_v51, %v1923_v38  ;;  %v7615_v11 = vmul.f32 100.0, %v7596_v16  ;;  %v7617_v31 = vpop.eup %5892  ;;  %v10083_v29 = vld [vmem:[#allocation18_spill] sm:$0xff] }
 0x1e9   :  { %10081 = vst [vmem:[#allocation19_spill] sm:$0xff] %v7610_v25  ;;  %v2311_v17 = vmul.f32 0.01, %v1918_v10  ;;  %v1921_v7 = vmul.f32 0.6931472, %v5891_v41  ;;  %v1932_v27 = vadd.f32 1.0, %v1931_v19  ;;  %v7625_v28 = vadd.f32 %v7474_v30, %v7318_v59 }
 0x1ea   :  { %v1940_v49 = vmul.f32 -0.5, %v7313_v35  ;;  %v7620_v4 = vpop.eup %5894  ;;  %v1562_v33 = vmin.f32 %v7601_v40, 20.0  ;;  %vm1926_vm5 = vcmp.lt.f32.partialorder %v1925_v26, 0.0004427343  ;;  %v1946_v51 = vadd.f32 1.0, %v7392_v63 }
 0x1eb   :  { %10082 = vst [vmem:[#allocation16_spill] sm:$0xff] %v7625_v28  ;;  %v2375_v38 = vsel %vm1478_vm1, %v10083_v29, %v2311_v17  ;;  %v1927_v3 = vsel %vm1926_vm5, %v1924_v61, %v1921_v7  ;;  %v1565_v19 = vmin.f32 %v7610_v25, 20.0  ;;  %v1934_v57 = vand.u32 2147483647, %v7335_v62  ;;  %v10084_v7 = vld [vmem:[#allocation17_spill] sm:$0xff] }
 0x1ec   :  { %5481 = vmatprep.mubr.msk.f32.mxu1 %vm2432_vm3, %v2375_v38  ;;  %v2312_v26 = vmul.f32 0.01, %v1927_v3  ;;  %v1564_v41 = vmin.f32 %v7615_v11, 20.0  ;;  %5906 = vlog2.f32 %v1946_v51  ;;  %vm1481_vm7 = vcmp.gt.f32.partialorder %v7179_v34, 20.0 }
 0x1ed   :  { %v5897_v59 = vpop.eup %5896  ;;  %v1933_v10 = vmul.f32 %v7335_v62, %v1932_v27  ;;  %v1941_v56 = vadd.f32 1.0, %v1940_v49  ;;  %v1943_v61 = vand.u32 2147483647, %v7313_v35  ;;  %v1955_v17 = vadd.f32 1.0, %v7383_v18 }
 0x1ee   :  { %v2376_v29 = vsel %vm1479_vm2, %v10084_v7, %v2312_v26  ;;  %v1930_v48 = vmul.f32 0.6931472, %v5897_v59  ;;  %v7644_v38 = vmul.f32 100.0, %v7625_v28  ;;  %v1949_v51 = vmul.f32 -0.5, %v7392_v63 }
 0x1ef   :  { %v7647_v3 = vpop.eup %5898  ;;  %v1668_v16 = vmul.f32 1.442695, %v1562_v33  ;;  %5482 = vmatmul.mubr.msk.f32.gmra.mrb[20].mxu1 %vm2432_vm3, %v2376_v29  ;;  %v1674_v62 = vmul.f32 1.442695, %v1565_v19  ;;  %vm1935_vm8 = vcmp.lt.f32.partialorder %v1934_v57, 0.0004427343  ;;  %5908 = vlog2.f32 %v1955_v17 }
 0x1f0   :  { %v5901_v27 = vpop.eup %5900  ;;  %v1936_v49 = vsel %vm1935_vm8, %v1933_v10, %v1930_v48  ;;  %v1672_v25 = vmul.f32 1.442695, %v1564_v41  ;;  %v7652_v58 = vadd.f32 %v7474_v30, %v7328_v22  ;;  %v1964_v26 = vadd.f32 1.0, %v7426_v47  ;;  %v10085_v22 = vld [vmem:[#allocation23_spill] sm:$0xff] }
 0x1f1   :  { %v7655_v59 = vpop.eup %5902  ;;  %v2313_v7 = vmul.f32 0.01, %v1936_v49  ;;  %v1939_v28 = vmul.f32 0.6931472, %v5901_v27  ;;  %v1942_v33 = vmul.f32 %v7313_v35, %v1941_v56  ;;  %v1958_v29 = vmul.f32 -0.5, %v7383_v18  ;;  %v10086_v49 = vld [vmem:[#allocation25_spill] sm:$0xff] }
 0x1f2   :  { %v7659_v19 = vpop.eup %5904  ;;  %vm1944_vm9 = vcmp.lt.f32.partialorder %v1943_v61, 0.0004427343  ;;  %v1567_v48 = vmin.f32 %v7644_v38, 20.0  ;;  %v1950_v57 = vadd.f32 1.0, %v1949_v51  ;;  %5910 = vlog2.f32 %v1964_v26 }
 0x1f3   :  { %vm1482_vm10 = vcmp.gt.f32.partialorder %v7254_v37, 20.0  ;;  %5912 = vpow2.f32 %v1668_v16  ;;  %v2377_v41 = vsel %vm1480_vm6, %v10085_v22, %v2313_v7  ;;  %v1945_v10 = vsel %vm1944_vm9, %v1942_v33, %v1939_v28  ;;  %v10090_v22 = vld [vmem:[#allocation31_spill] sm:$0xff]  ;;  %v10093_v37 = vld [vmem:[#allocation28_spill] sm:$0xff] }
 0x1f4   :  { %5914 = vpow2.f32 %v1674_v62  ;;  %5484 = vmatprep.mubr.msk.f32.mxu1 %vm2432_vm3, %v2377_v41  ;;  %v2314_v35 = vmul.f32 0.01, %v1945_v10  ;;  %v1952_v56 = vand.u32 2147483647, %v7392_v63  ;;  %v7669_v61 = vmul.f32 100.0, %v7652_v58 }
 0x1f5   :  { %5916 = vpow2.f32 %v1672_v25  ;;  %v1959_v17 = vadd.f32 1.0, %v1958_v29  ;;  %v1967_v51 = vmul.f32 -0.5, %v7426_v47  ;;  %v1973_v16 = vadd.f32 1.0, %v7412_v1 }
 0x1f6   :  { %v5907_v27 = vpop.eup %5906  ;;  %vm1483_vm11 = vcmp.gt.f32.partialorder %v10086_v49, 20.0  ;;  %v2378_v28 = vsel %vm1481_vm7, %v10087_v43, %v2314_v35  ;;  %v1678_v62 = vmul.f32 1.442695, %v1567_v48  ;;  %v1951_v26 = vmul.f32 %v7392_v63, %v1950_v57 }
 0x1f7   :  { %v1961_v7 = vand.u32 2147483647, %v7383_v18  ;;  %5485 = vmatmul.mubr.msk.f32.gmra.mrb[22].mxu1 %vm2432_vm3, %v2378_v28  ;;  %v1948_v25 = vmul.f32 0.6931472, %v5907_v27  ;;  %v7682_v33 = vadd.f32 %v7474_v30, %v7340_v36  ;;  %v7686_v29 = vadd.f32 %v7474_v30, %v7347_v13 }
 0x1f8   :  { %5918 = vlog2.f32 %v1973_v16  ;;  %vm1953_vm12 = vcmp.lt.f32.partialorder %v1952_v56, 0.0004427343  ;;  %v1566_v34 = vmin.f32 %v7669_v61, 20.0  ;;  %v1976_v48 = vmul.f32 -0.5, %v7412_v1 }
 0x1f9   :  { %10088 = vst [vmem:[#allocation21_spill] sm:$0xff] %v7682_v33  ;;  %10089 = vst [vmem:[#allocation20_spill] sm:$0xff] %v7686_v29  ;;  %v1982_v63 = vadd.f32 1.0, %v7462_v54  ;;  %v5909_v57 = vpop.eup %5908  ;;  %vm1484_vm13 = vcmp.gt.f32.partialorder %v10090_v22, 20.0  ;;  %v1954_v41 = vsel %vm1953_vm12, %v1951_v26, %v1948_v25  ;;  %v1960_v10 = vmul.f32 %v7383_v18, %v1959_v17  ;;  %v10092_v18 = vld [vmem:[#allocation26_spill] sm:$0xff] }
 0x1fa   :  { %v1968_v36 = vadd.f32 1.0, %v1967_v51  ;;  %v1970_v35 = vand.u32 2147483647, %v7426_v47  ;;  %v2315_v27 = vmul.f32 0.01, %v1954_v41  ;;  %v7696_v56 = vadd.f32 %v7474_v30, %v7361_v6 }
 0x1fb   :  { %v1957_v13 = vmul.f32 0.6931472, %v5909_v57  ;;  %5920 = vlog2.f32 %v1982_v63  ;;  %vm1962_vm14 = vcmp.lt.f32.partialorder %v1961_v7, 0.0004427343  ;;  %v7699_v16 = vmul.f32 100.0, %v7682_v33 }
 0x1fc   :  { %10091 = vst [vmem:[#allocation11_spill] sm:$0xff] %v7696_v56  ;;  %5922 = vpow2.f32 %v1678_v62  ;;  %v7702_v43 = vmul.f32 100.0, %v7686_v29  ;;  %v5911_v28 = vpop.eup %5910  ;;  %v2379_v17 = vsel %vm1482_vm10, %v10092_v18, %v2315_v27  ;;  %v1977_v26 = vadd.f32 1.0, %v1976_v48 }
 0x1fd   :  { %v1963_v51 = vsel %vm1962_vm14, %v1960_v10, %v1957_v13  ;;  %v1985_v25 = vmul.f32 -0.5, %v7462_v54  ;;  %v7708_v6 = vpop.eup %5912  ;;  %5487 = vmatprep.mubr.msk.f32.mxu1 %vm2432_vm3, %v2379_v17  ;;  %v1966_v7 = vmul.f32 0.6931472, %v5911_v28  ;;  %v1969_v63 = vmul.f32 %v7426_v47, %v1968_v36  ;;  %v10094_v28 = vld [vmem:[#allocation24_spill] sm:$0xff] }
 0x1fe   :  { %v2316_v62 = vmul.f32 0.01, %v1963_v51  ;;  %v7714_v57 = vadd.f32 %v7474_v30, %v7370_v14  ;;  %v7716_v41 = vpop.eup %5914  ;;  %vm1485_vm15 = vcmp.gt.f32.partialorder %v10093_v37, 20.0  ;;  %v1676_v10 = vmul.f32 1.442695, %v1566_v34 }
 0x1ff   :  { %vm1971_vm0 = vcmp.lt.f32.partialorder %v1970_v35, 0.0004427343  ;;  %v7720_v48 = vmul.f32 100.0, %v7696_v56  ;;  %v1991_v27 = vadd.f32 1.0, %v7430_v32  ;;  %v7723_v13 = vpop.eup %5916  ;;  %v1569_v14 = vmin.f32 %v7699_v16, 20.0 }
 0x200   :  { %v2380_v47 = vsel %vm1483_vm11, %v10094_v28, %v2316_v62  ;;  %v1972_v36 = vsel %vm1971_vm0, %v1969_v63, %v1966_v7  ;;  %v1979_v18 = vand.u32 2147483647, %v7412_v1  ;;  %v1568_v35 = vmin.f32 %v7702_v43, 20.0  ;;  %v10096_v62 = vld [vmem:[#allocation29_spill] sm:$0xff] }
 0x201   :  { %5488 = vmatmul.mubr.msk.f32.gmra.mrb[24].mxu1 %vm2432_vm3, %v2380_v47  ;;  %v2317_v34 = vmul.f32 0.01, %v1972_v36  ;;  %v1978_v17 = vmul.f32 %v7412_v1, %v1977_v26  ;;  %v1986_v51 = vadd.f32 1.0, %v1985_v25  ;;  %v1988_v33 = vand.u32 2147483647, %v7462_v54 }
 0x202   :  { %v5919_v56 = vpop.eup %5918  ;;  %v7735_v29 = vmul.f32 100.0, %v7714_v57  ;;  %5924 = vlog2.f32 %v1991_v27  ;;  %v7739_v49 = vadd.f32 %v7474_v30, %v7381_v45  ;;  %v1571_v28 = vmin.f32 %v7720_v48, 20.0 }
 0x203   :  { %v2381_v7 = vsel %vm1484_vm13, %v10096_v62, %v2317_v34  ;;  %v1975_v63 = vmul.f32 0.6931472, %v5919_v56  ;;  %v2000_v1 = vadd.f32 1.0, %v7511_v52  ;;  %5926 = vpow2.f32 %v1676_v10 }
 0x204   :  { %10095 = vst [vmem:[#allocation18_spill] sm:$0xff] %v7739_v49  ;;  %v1682_v26 = vmul.f32 1.442695, %v1569_v14  ;;  %5490 = vmatprep.mubr.msk.f32.mxu1 %vm2432_vm3, %v2381_v7  ;;  %vm1980_vm1 = vcmp.lt.f32.partialorder %v1979_v18, 0.0004427343  ;;  %v1994_v25 = vmul.f32 -0.5, %v7430_v32  ;;  %v1987_v36 = vmul.f32 %v7462_v54, %v1986_v51 }
 0x205   :  { %v5921_v27 = vpop.eup %5920  ;;  %v1680_v47 = vmul.f32 1.442695, %v1568_v35  ;;  %v1981_v45 = vsel %vm1980_vm1, %v1978_v17, %v1975_v63  ;;  %v7751_v22 = vadd.f32 %v7474_v30, %v7390_v50  ;;  %v1570_v10 = vmin.f32 %v7735_v29, 20.0  ;;  %v10098_v35 = vld [vmem:[#allocation27_spill] sm:$0xff] }
 0x206   :  { %v7753_v56 = vpop.eup %5922  ;;  %v2318_v34 = vmul.f32 0.01, %v1981_v45  ;;  %v1984_v62 = vmul.f32 0.6931472, %v5921_v27  ;;  %v7757_v14 = vmul.f32 100.0, %v7739_v49  ;;  %vm1486_vm2 = vcmp.gt.f32.partialorder %v7321_v8, 20.0 }
 0x207   :  { %10097 = vst [vmem:[#allocation17_spill] sm:$0xff] %v7751_v22  ;;  %v1686_v18 = vmul.f32 1.442695, %v1571_v28  ;;  %vm1989_vm4 = vcmp.lt.f32.partialorder %v1988_v33, 0.0004427343  ;;  %5928 = vlog2.f32 %v2000_v1  ;;  %v1995_v17 = vadd.f32 1.0, %v1994_v25 }
 0x208   :  { %v2382_v54 = vsel %vm1485_vm15, %v10098_v35, %v2318_v34  ;;  %v1990_v50 = vsel %vm1989_vm4, %v1987_v36, %v1984_v62  ;;  %v2009_v51 = vadd.f32 1.0, %v7505_v42  ;;  %5930 = vpow2.f32 %v1682_v26  ;;  %v10099_v1 = vld [vmem:[#allocation33_spill] sm:$0xff]  ;;  %v10101_v34 = vld [vmem:[#allocation32_spill] sm:$0xff]  ;;  %v10113_v49 = vld [vmem:[#allocation35_spill] sm:$0xff] }
 0x209   :  { %5491 = vmatmul.mubr.msk.f32.gmra.mrb[26].mxu1 %vm2432_vm3, %v2382_v54  ;;  %v2319_v7 = vmul.f32 0.01, %v1990_v50  ;;  %v2003_v63 = vmul.f32 -0.5, %v7511_v52  ;;  %v7767_v27 = vmul.f32 100.0, %v7751_v22  ;;  %5932 = vpow2.f32 %v1680_v47 }
 0x20a   :  { %v1684_v33 = vmul.f32 1.442695, %v1570_v10  ;;  %v1997_v28 = vand.u32 2147483647, %v7430_v32  ;;  %v1573_v37 = vmin.f32 %v7757_v14, 20.0  ;;  %5934 = vlog2.f32 %v2009_v51 }
 0x20b   :  { %v2383_v25 = vsel %vm1486_vm2, %v10099_v1, %v2319_v7  ;;  %v7776_v26 = vadd.f32 %v7474_v30, %v7410_v60  ;;  %v2018_v45 = vadd.f32 1.0, %v7562_v12  ;;  %vm1487_vm5 = vcmp.gt.f32.partialorder %v10101_v34, 20.0 }
 0x20c   :  { %v5925_v36 = vpop.eup %5924  ;;  %5936 = vpow2.f32 %v1686_v18  ;;  %5493 = vmatprep.mubr.msk.f32.mxu1 %vm2432_vm3, %v2383_v25  ;;  %v1996_v47 = vmul.f32 %v7430_v32, %v1995_v17  ;;  %v2006_v62 = vand.u32 2147483647, %v7511_v52  ;;  %v2004_v8 = vadd.f32 1.0, %v2003_v63 }
 0x20d   :  { %10100 = vst [vmem:[#allocation23_spill] sm:$0xff] %v7776_v26  ;;  %v1993_v10 = vmul.f32 0.6931472, %v5925_v36  ;;  %v1572_v35 = vmin.f32 %v7767_v27, 20.0  ;;  %v7786_v60 = vadd.f32 %v7474_v30, %v7416_v55  ;;  %v7788_v54 = vpop.eup %5926  ;;  %vm1998_vm6 = vcmp.lt.f32.partialorder %v1997_v28, 0.0004427343 }
 0x20e   :  { %v1690_v50 = vmul.f32 1.442695, %v1573_v37  ;;  %v2012_v18 = vmul.f32 -0.5, %v7505_v42  ;;  %5938 = vlog2.f32 %v2018_v45  ;;  %vm1488_vm7 = vcmp.gt.f32.partialorder %v7364_v9, 20.0  ;;  %v10106_v45 = vld [vmem:[#allocation36_spill] sm:$0xff]  ;;  %v10107_v36 = vld [vmem:[#allocation30_spill] sm:$0xff] }
 0x20f   :  { %10102 = vst [vmem:[#allocation25_spill] sm:$0xff] %v7786_v60  ;;  %5940 = vpow2.f32 %v1684_v33  ;;  %v1999_v32 = vsel %vm1998_vm6, %v1996_v47, %v1993_v10  ;;  %v7793_v17 = vmul.f32 100.0, %v7776_v26  ;;  %vm7795_vm8 = vcmp.lt.f32.partialorder %v2006_v62, 0.0004427343 }
 0x210   :  { %v2320_v51 = vmul.f32 0.01, %v1999_v32  ;;  %v7800_v55 = vmul.f32 100.0, %v7786_v60  ;;  %v2027_v63 = vadd.f32 1.0, %v7543_v53  ;;  %v2005_v37 = vmul.f32 %v7511_v52, %v2004_v8 }
 0x211   :  { %10103 = vst [vmem:[#allocation22_spill] sm:$0xff] %v7793_v17  ;;  %v5929_v28 = vpop.eup %5928  ;;  %v1688_v1 = vmul.f32 1.442695, %v1572_v35  ;;  %v2015_v33 = vand.u32 2147483647, %v7505_v42  ;;  %v2021_v25 = vmul.f32 -0.5, %v7562_v12  ;;  %5942 = vpow2.f32 %v1690_v50 }
 0x212   :  { %vm1489_vm9 = vcmp.gt.f32.partialorder %v10106_v45, 20.0  ;;  %v2384_v47 = vsel %vm1487_vm5, %v10107_v36, %v2320_v51  ;;  %v2002_v62 = vmul.f32 0.6931472, %v5929_v28  ;;  %v2013_v10 = vadd.f32 1.0, %v2012_v18  ;;  %v7810_v32 = vpop.eup %5930 }
 0x213   :  { %5494 = vmatmul.mubr.msk.f32.gmra.mrb[28].mxu1 %vm2432_vm3, %v2384_v47  ;;  %v1575_v52 = vmin.f32 %v7793_v17, 20.0  ;;  %v2024_v8 = vand.u32 2147483647, %v7562_v12  ;;  %5944 = vlog2.f32 %v2027_v63  ;;  %v7817_v35 = vadd.f32 %v7474_v30, %v7437_v44  ;;  %v7819_v26 = vpop.eup %5932 }
 0x214   :  { %v2008_v34 = vsel %vm7795_vm8, %v2005_v37, %v2002_v62  ;;  %v1574_v50 = vmin.f32 %v7800_v55, 20.0  ;;  %v2030_v18 = vmul.f32 -0.5, %v7543_v53  ;;  %v2036_v51 = vadd.f32 1.0, %v7590_v2  ;;  %v5935_v28 = vpop.eup %5934  ;;  %v10111_v37 = vld [vmem:[#allocation40_spill] sm:$0xff] }
 0x215   :  { %10108 = vst [vmem:[#allocation31_spill] sm:$0xff] %v7817_v35  ;;  %v2321_v36 = vmul.f32 0.01, %v2008_v34  ;;  %5946 = vpow2.f32 %v1688_v1  ;;  %vm7826_vm10 = vcmp.lt.f32.partialorder %v2015_v33, 0.0004427343  ;;  %v2022_v44 = vadd.f32 1.0, %v2021_v25 }
 0x216   :  { %v7830_v47 = vpop.eup %5936  ;;  %v2011_v60 = vmul.f32 0.6931472, %v5935_v28  ;;  %v2014_v7 = vmul.f32 %v7505_v42, %v2013_v10  ;;  %5948 = vlog2.f32 %v2036_v51  ;;  %v7835_v62 = vadd.f32 %v7474_v30, %v10111_v37 }
 0x217   :  { %v2385_v34 = vsel %vm1488_vm7, %v10113_v49, %v2321_v36  ;;  %v1694_v1 = vmul.f32 1.442695, %v1575_v52  ;;  %vm7840_vm11 = vcmp.lt.f32.partialorder %v2024_v8, 0.0004427343  ;;  %v7845_v25 = vmul.f32 100.0, %v7817_v35  ;;  %v10117_v35 = vld [vmem:[#allocation38_spill] sm:$0xff] }
 0x218   :  { %10112 = vst [vmem:[#allocation26_spill] sm:$0xff] %v7835_v62  ;;  %v5939_v28 = vpop.eup %5938  ;;  %5496 = vmatprep.mubr.msk.f32.mxu1 %vm2432_vm3, %v2385_v34  ;;  %v2017_v42 = vsel %vm7826_vm10, %v2014_v7, %v2011_v60  ;;  %v1692_v10 = vmul.f32 1.442695, %v1574_v50  ;;  %v2031_v51 = vadd.f32 1.0, %v2030_v18  ;;  %v2045_v37 = vadd.f32 1.0, %v7583_v39  ;;  %v10119_v60 = vld [vmem:[#allocation7_spill] sm:$0xff] }
 0x219   :  { %10116 = vst [vmem:[#allocation28_spill] sm:$0xff] %v7845_v25  ;;  %v7851_v9 = vpop.eup %5940  ;;  %v2322_v49 = vmul.f32 0.01, %v2017_v42  ;;  %v2020_v52 = vmul.f32 0.6931472, %v5939_v28  ;;  %v2023_v8 = vmul.f32 %v7562_v12, %v2022_v44  ;;  %v2039_v36 = vmul.f32 -0.5, %v7590_v2 }
 0x21a   :  { %vm1491_vm12 = vcmp.gt.f32.partialorder %v10117_v35, 20.0  ;;  %v2033_v17 = vand.u32 2147483647, %v7543_v53  ;;  %v7858_v34 = vmul.f32 100.0, %v7835_v62  ;;  %5950 = vlog2.f32 %v2045_v37  ;;  %v10121_v18 = vld [vmem:[#allocation34_spill] sm:$0xff] }
 0x21b   :  { %v7862_v50 = vadd.f32 %v7474_v30, %v10119_v60  ;;  %v2386_v63 = vsel %vm1489_vm9, %v10121_v18, %v2322_v49  ;;  %v2026_v12 = vsel %vm7840_vm11, %v2023_v8, %v2020_v52  ;;  %v1577_v44 = vmin.f32 %v7845_v25, 20.0  ;;  %v7871_v28 = vpop.eup %5942  ;;  %v10122_v42 = vld [vmem:[#allocation2_spill] sm:$0xff]  ;;  %v10123_v52 = vld [vmem:[#allocation39_spill] sm:$0xff] }
 0x21c   :  { %10118 = vst [vmem:[#allocation24_spill] sm:$0xff] %v7858_v34  ;;  %v2042_v7 = vand.u32 2147483647, %v7590_v2  ;;  %vm1490_vm13 = vcmp.gt.f32.partialorder %v10122_v42, 20.0  ;;  %5497 = vmatmul.mubr.msk.f32.gmra.mrb[30].mxu1 %vm2432_vm3, %v2386_v63  ;;  %5952 = vpow2.f32 %v1694_v1  ;;  %v2323_v37 = vmul.f32 0.01, %v2026_v12 }
 0x21d   :  { %10120 = vst [vmem:[#allocation29_spill] sm:$0xff] %v7862_v50  ;;  %v2032_v60 = vmul.f32 %v7543_v53, %v2031_v51  ;;  %v5945_v62 = vpop.eup %5944  ;;  %vm1492_vm14 = vcmp.gt.f32.partialorder %v7466_v5, 20.0  ;;  %5954 = vpow2.f32 %v1692_v10  ;;  %v2040_v45 = vadd.f32 1.0, %v2039_v36  ;;  %v10126_v12 = vld [vmem:[#allocation3_spill] sm:$0xff] }
 0x21e   :  { %v2048_v33 = vmul.f32 -0.5, %v7583_v39  ;;  %v2054_v49 = vadd.f32 1.0, %v7620_v4  ;;  %v2387_v8 = vsel %vm1490_vm13, %v10123_v52, %v2323_v37  ;;  %v2029_v18 = vmul.f32 0.6931472, %v5945_v62 }
 0x21f   :  { %v1576_v42 = vmin.f32 %v7858_v34, 20.0  ;;  %v7882_v63 = vmul.f32 100.0, %v7862_v50  ;;  %v7884_v1 = vpop.eup %5946  ;;  %5499 = vmatprep.mubr.msk.f32.mxu1 %vm2432_vm3, %v2387_v8  ;;  %vm2034_vm15 = vcmp.lt.f32.partialorder %v2033_v17, 0.0004427343  ;;  %v1698_v53 = vmul.f32 1.442695, %v1577_v44 }
 0x220   :  { %vm7887_vm0 = vcmp.lt.f32.partialorder %v2042_v7, 0.0004427343  ;;  %5956 = vlog2.f32 %v2054_v49  ;;  %v5949_v51 = vpop.eup %5948  ;;  %v2035_v36 = vsel %vm2034_vm15, %v2032_v60, %v2029_v18  ;;  %v2057_v62 = vmul.f32 -0.5, %v7620_v4  ;;  %v10127_v50 = vld [vmem:[#allocation12_spill] sm:$0xff]  ;;  %v10128_v18 = vld [vmem:[#allocation37_spill] sm:$0xff] }
 0x221   :  { %v7894_v37 = vadd.f32 %v7474_v30, %v10126_v12  ;;  %v2063_v52 = vadd.f32 1.0, %v7617_v31  ;;  %vm1493_vm1 = vcmp.gt.f32.partialorder %v10127_v50, 20.0  ;;  %v2324_v8 = vmul.f32 0.01, %v2035_v36  ;;  %v10134_v50 = vld [vmem:[#allocation13_spill] sm:$0xff] }
 0x222   :  { %v2038_v17 = vmul.f32 0.6931472, %v5949_v51  ;;  %v2041_v44 = vmul.f32 %v7590_v2, %v2040_v45  ;;  %v2049_v7 = vadd.f32 1.0, %v2048_v33  ;;  %v1696_v25 = vmul.f32 1.442695, %v1576_v42 }
 0x223   :  { %v2051_v49 = vand.u32 2147483647, %v7583_v39  ;;  %v1579_v60 = vmin.f32 %v7882_v63, 20.0  ;;  %5958 = vlog2.f32 %v2063_v52  ;;  %v2388_v12 = vsel %vm1491_vm12, %v10128_v18, %v2324_v8 }
 0x224   :  { %v2044_v34 = vsel %vm7887_vm0, %v2041_v44, %v2038_v17  ;;  %v7907_v22 = vmul.f32 100.0, %v7894_v37  ;;  %v7911_v2 = vadd.f32 %v7474_v30, %v7492_v23  ;;  %v5951_v45 = vpop.eup %5950  ;;  %5500 = vmatmul.mubr.msk.f32.gmra.mrb[32].mxu1 %vm2432_vm3, %v2388_v12  ;;  %5960 = vpow2.f32 %v1698_v53  ;;  %v10129_v23 = vld [vmem:[#allocation4_spill] sm:$0xff] }
 0x225   :  { %v2325_v33 = vmul.f32 0.01, %v2044_v34  ;;  %v2058_v42 = vadd.f32 1.0, %v2057_v62  ;;  %v2060_v51 = vand.u32 2147483647, %v7620_v4  ;;  %v2050_v36 = vmul.f32 %v7583_v39, %v2049_v7 }
 0x226   :  { %v2047_v35 = vmul.f32 0.6931472, %v5951_v45  ;;  %v2066_v10 = vmul.f32 -0.5, %v7617_v31  ;;  %v2072_v52 = vadd.f32 1.0, %v7655_v59  ;;  %v7918_v8 = vpop.eup %5952  ;;  %vm1494_vm2 = vcmp.gt.f32.partialorder %v7503_v0, 20.0 }
 0x227   :  { %v2389_v17 = vsel %vm1492_vm14, %v10129_v23, %v2325_v33  ;;  %vm2052_vm4 = vcmp.lt.f32.partialorder %v2051_v49, 0.0004427343  ;;  %v1702_v34 = vmul.f32 1.442695, %v1579_v60  ;;  %v7925_v53 = vmul.f32 100.0, %v7911_v2  ;;  %v7927_v62 = vpop.eup %5954  ;;  %v10132_v33 = vld [vmem:[#allocation14_spill] sm:$0xff] }
 0x228   :  { %5502 = vmatprep.mubr.msk.f32.mxu1 %vm2432_vm3, %v2389_v17  ;;  %v2053_v39 = vsel %vm2052_vm4, %v2050_v36, %v2047_v35  ;;  %v1578_v44 = vmin.f32 %v7907_v22, 20.0  ;;  %5962 = vlog2.f32 %v2072_v52  ;;  %v2075_v7 = vmul.f32 -0.5, %v7655_v59 }
 0x229   :  { %5964 = vpow2.f32 %v1696_v25  ;;  %v2326_v18 = vmul.f32 0.01, %v2053_v39  ;;  %v2059_v5 = vmul.f32 %v7620_v4, %v2058_v42  ;;  %vm7933_vm5 = vcmp.lt.f32.partialorder %v2060_v51, 0.0004427343  ;;  %v10133_v25 = vld [vmem:[#allocation6_spill] sm:$0xff] }
 0x22a   :  { %v5957_v60 = vpop.eup %5956  ;;  %vm1495_vm6 = vcmp.gt.f32.partialorder %v7499_v24, 20.0  ;;  %v2067_v12 = vadd.f32 1.0, %v2066_v10  ;;  %v2069_v45 = vand.u32 2147483647, %v7617_v31  ;;  %v7941_v35 = vadd.f32 %v7474_v30, %v10132_v33 }
 0x22b   :  { %v2081_v36 = vadd.f32 1.0, %v7647_v3  ;;  %v2390_v4 = vsel %vm1493_vm1, %v10133_v25, %v2326_v18  ;;  %5966 = vpow2.f32 %v1702_v34  ;;  %v2056_v42 = vmul.f32 0.6931472, %v5957_v60 }
 0x22c   :  { %v1581_v51 = vmin.f32 %v7925_v53, 20.0  ;;  %5503 = vmatmul.mubr.msk.f32.gmra.mrb[34].mxu1 %vm2432_vm3, %v2390_v4  ;;  %v1700_v52 = vmul.f32 1.442695, %v1578_v44  ;;  %v2076_v10 = vadd.f32 1.0, %v2075_v7  ;;  %v7950_v23 = vmul.f32 100.0, %v7941_v35 }
 0x22d   :  { %v2084_v17 = vmul.f32 -0.5, %v7647_v3  ;;  %v5959_v39 = vpop.eup %5958  ;;  %v2062_v33 = vsel %vm7933_vm5, %v2059_v5, %v2056_v42  ;;  %5968 = vlog2.f32 %v2081_v36  ;;  %v7957_v34 = vadd.f32 %v7474_v30, %v10134_v50  ;;  %v10137_v36 = vld [vmem:[#allocation42_spill] sm:$0xff] }
 0x22e   :  { %v2090_v18 = vadd.f32 1.0, %v7708_v6  ;;  %v2327_v60 = vmul.f32 0.01, %v2062_v33  ;;  %v2065_v25 = vmul.f32 0.6931472, %v5959_v39  ;;  %v2068_v44 = vmul.f32 %v7617_v31, %v2067_v12  ;;  %v7962_v4 = vpop.eup %5960 }
 0x22f   :  { %10135 = vst [vmem:[#allocation27_spill] sm:$0xff] %v7957_v34  ;;  %v1580_v7 = vmin.f32 %v7950_v23, 20.0  ;;  %vm1496_vm7 = vcmp.gt.f32.partialorder %v7548_v46, 20.0  ;;  %vm2070_vm8 = vcmp.lt.f32.partialorder %v2069_v45, 0.0004427343  ;;  %v7966_v5 = vmul.f32 100.0, %v7957_v34 }
 0x230   :  { %v1706_v49 = vmul.f32 1.442695, %v1581_v51  ;;  %5970 = vlog2.f32 %v2090_v18  ;;  %v2391_v42 = vsel %vm1494_vm2, %v10137_v36, %v2327_v60  ;;  %v2071_v39 = vsel %vm2070_vm8, %v2068_v44, %v2065_v25  ;;  %v10138_v25 = vld [vmem:[#allocation41_spill] sm:$0xff] }
 0x231   :  { %10136 = vst [vmem:[#allocation33_spill] sm:$0xff] %v7966_v5  ;;  %5972 = vpow2.f32 %v1700_v52  ;;  %v2078_v31 = vand.u32 2147483647, %v7655_v59  ;;  %5505 = vmatprep.mubr.msk.f32.mxu1 %vm2432_vm3, %v2391_v42  ;;  %v2328_v12 = vmul.f32 0.01, %v2071_v39  ;;  %v2077_v33 = vmul.f32 %v7655_v59, %v2076_v10 }
 0x232   :  { %v2085_v50 = vadd.f32 1.0, %v2084_v17  ;;  %v2093_v45 = vmul.f32 -0.5, %v7708_v6  ;;  %v5963_v51 = vpop.eup %5962  ;;  %v1704_v34 = vmul.f32 1.442695, %v1580_v7  ;;  %v1583_v18 = vmin.f32 %v7966_v5, 20.0 }
 0x233   :  { %v7978_v0 = vadd.f32 %v7474_v30, %v7526_v21  ;;  %v2099_v52 = vadd.f32 1.0, %v7659_v19  ;;  %v7981_v60 = vpop.eup %5964  ;;  %v2392_v44 = vsel %vm1495_vm6, %v10138_v25, %v2328_v12  ;;  %5974 = vpow2.f32 %v1706_v49 }
 0x234   :  { %v2074_v59 = vmul.f32 0.6931472, %v5963_v51  ;;  %v2087_v10 = vand.u32 2147483647, %v7647_v3  ;;  %vm1497_vm9 = vcmp.gt.f32.partialorder %v7533_v20, 20.0  ;;  %5506 = vmatmul.mubr.msk.f32.gmra.mrb[36].mxu1 %vm2432_vm3, %v2392_v44  ;;  %v2094_v24 = vadd.f32 1.0, %v2093_v45 }
 0x235   :  { %vm2079_vm10 = vcmp.lt.f32.partialorder %v2078_v31, 0.0004427343  ;;  %v2096_v30 = vand.u32 2147483647, %v7708_v6  ;;  %v7991_v21 = vmul.f32 100.0, %v7978_v0  ;;  %5976 = vlog2.f32 %v2099_v52  ;;  %v7993_v17 = vpop.eup %5966  ;;  %v10141_v45 = vld [vmem:[#allocation5_spill] sm:$0xff] }
 0x236   :  { %v2080_v7 = vsel %vm2079_vm10, %v2077_v33, %v2074_v59  ;;  %v2102_v49 = vmul.f32 -0.5, %v7659_v19  ;;  %v2108_v36 = vadd.f32 1.0, %v7723_v13  ;;  %vm1498_vm11 = vcmp.gt.f32.partialorder %v7601_v40, 20.0 }
 0x237   :  { %v2329_v42 = vmul.f32 0.01, %v2080_v7  ;;  %5978 = vpow2.f32 %v1704_v34  ;;  %v2086_v39 = vmul.f32 %v7647_v3, %v2085_v50  ;;  %v1710_v31 = vmul.f32 1.442695, %v1583_v18  ;;  %v5969_v12 = vpop.eup %5968 }
 0x238   :  { %vm7999_vm12 = vcmp.lt.f32.partialorder %v2087_v10, 0.0004427343  ;;  %v1582_v52 = vmin.f32 %v7991_v21, 20.0  ;;  %v2105_v33 = vand.u32 2147483647, %v7659_v19  ;;  %5980 = vlog2.f32 %v2108_v36 }
 0x239   :  { %v2393_v25 = vsel %vm1496_vm7, %v10141_v45, %v2329_v42  ;;  %v2083_v44 = vmul.f32 0.6931472, %v5969_v12  ;;  %vm8008_vm13 = vcmp.lt.f32.partialorder %v2096_v30, 0.0004427343  ;;  %v2111_v3 = vmul.f32 -0.5, %v7723_v13  ;;  %v10144_v12 = vld [vmem:[#allocation10_spill] sm:$0xff] }
 0x23a   :  { %v5971_v50 = vpop.eup %5970  ;;  %5508 = vmatprep.mubr.msk.f32.mxu1 %vm2432_vm3, %v2393_v25  ;;  %v2095_v18 = vmul.f32 %v7708_v6, %v2094_v24  ;;  %v2103_v59 = vadd.f32 1.0, %v2102_v49  ;;  %v2117_v10 = vadd.f32 1.0, %v7716_v41  ;;  %v2120_v7 = vmul.f32 -0.5, %v7716_v41 }
 0x23b   :  { %v8017_v36 = vpop.eup %5972  ;;  %v2089_v46 = vsel %vm7999_vm12, %v2086_v39, %v2083_v44  ;;  %5982 = vpow2.f32 %v1710_v31  ;;  %v2092_v30 = vmul.f32 0.6931472, %v5971_v50  ;;  %v2114_v42 = vand.u32 2147483647, %v7723_v13  ;;  %v10147_v44 = vld [vmem:[#allocation8_spill] sm:$0xff] }
 0x23c   :  { %vm1499_vm14 = vcmp.gt.f32.partialorder %v10144_v12, 20.0  ;;  %v2330_v45 = vmul.f32 0.01, %v2089_v46  ;;  %v1708_v25 = vmul.f32 1.442695, %v1582_v52  ;;  %5984 = vlog2.f32 %v2117_v10 }
 0x23d   :  { %vm8023_vm15 = vcmp.lt.f32.partialorder %v2105_v33, 0.0004427343  ;;  %v2098_v24 = vsel %vm8008_vm13, %v2095_v18, %v2092_v30  ;;  %v2112_v49 = vadd.f32 1.0, %v2111_v3  ;;  %v2123_v51 = vand.u32 2147483647, %v7716_v41  ;;  %v8031_v31 = vpop.eup %5974 }
 0x23e   :  { %v2126_v39 = vadd.f32 1.0, %v7788_v54  ;;  %v2394_v50 = vsel %vm1497_vm9, %v10147_v44, %v2330_v45  ;;  %v2331_v52 = vmul.f32 0.01, %v2098_v24  ;;  %v2104_v33 = vmul.f32 %v7659_v19, %v2103_v59  ;;  %v10152_v24 = vld [vmem:[#allocation19_spill] sm:$0xff] }
 0x23f   :  { %v2121_v46 = vadd.f32 1.0, %v2120_v7  ;;  %v5977_v5 = vpop.eup %5976  ;;  %vm1500_vm0 = vcmp.gt.f32.partialorder %v7615_v11, 20.0  ;;  %5509 = vmatmul.mubr.msk.f32.gmra.mrb[38].mxu1 %vm2432_vm3, %v2394_v50  ;;  %vm8039_vm1 = vcmp.lt.f32.partialorder %v2114_v42, 0.0004427343  ;;  %v2129_v3 = vmul.f32 -0.5, %v7788_v54 }
 0x240   :  { %5986 = vlog2.f32 %v2126_v39  ;;  %v2135_v18 = vadd.f32 1.0, %v7753_v56  ;;  %v2395_v20 = vsel %vm1498_vm11, %v7578_v15, %v2331_v52  ;;  %v2101_v19 = vmul.f32 0.6931472, %v5977_v5 }
 0x241   :  { %5988 = vpow2.f32 %v1708_v25  ;;  %v2138_v59 = vmul.f32 -0.5, %v7753_v56  ;;  %v8049_v10 = vpop.eup %5978  ;;  %5511 = vmatprep.mubr.msk.f32.mxu1 %vm2432_vm3, %v2395_v20  ;;  %v2113_v7 = vmul.f32 %v7723_v13, %v2112_v49  ;;  %vm8053_vm2 = vcmp.lt.f32.partialorder %v2123_v51, 0.0004427343 }
 0x242   :  { %5990 = vlog2.f32 %v2135_v18  ;;  %v2144_v42 = vadd.f32 1.0, %v7819_v26  ;;  %v5981_v45 = vpop.eup %5980  ;;  %v2107_v15 = vsel %vm8023_vm15, %v2104_v33, %v2101_v19  ;;  %v2122_v40 = vmul.f32 %v7716_v41, %v2121_v46  ;;  %v10153_v41 = vld [vmem:[#allocation43_spill] sm:$0xff] }
 0x243   :  { %v2132_v5 = vand.u32 2147483647, %v7788_v54  ;;  %v2147_v25 = vmul.f32 -0.5, %v7819_v26  ;;  %vm1501_vm4 = vcmp.gt.f32.partialorder %v10152_v24, 20.0  ;;  %v2332_v13 = vmul.f32 0.01, %v2107_v15 }
 0x244   :  { %v2110_v49 = vmul.f32 0.6931472, %v5981_v45  ;;  %v2130_v51 = vadd.f32 1.0, %v2129_v3  ;;  %5992 = vlog2.f32 %v2144_v42  ;;  %v2139_v39 = vadd.f32 1.0, %v2138_v59  ;;  %v10156_v45 = vld [vmem:[#allocation15_spill] sm:$0xff] }
 0x245   :  { %v2141_v44 = vand.u32 2147483647, %v7753_v56  ;;  %v2150_v50 = vand.u32 2147483647, %v7819_v26  ;;  %v2153_v6 = vadd.f32 1.0, %v7810_v32  ;;  %v8067_v52 = vpop.eup %5982  ;;  %v2396_v33 = vsel %vm1499_vm14, %v10153_v41, %v2332_v13 }
 0x246   :  { %v2116_v46 = vsel %vm8039_vm1, %v2113_v7, %v2110_v49  ;;  %v2156_v18 = vmul.f32 -0.5, %v7810_v32  ;;  %v2162_v3 = vadd.f32 1.0, %v7851_v9  ;;  %v5985_v20 = vpop.eup %5984  ;;  %vm1502_vm5 = vcmp.gt.f32.partialorder %v7669_v61, 20.0  ;;  %5512 = vmatmul.mubr.msk.f32.gmra.mrb[40].mxu1 %vm2432_vm3, %v2396_v33 }
 0x247   :  { %v2333_v19 = vmul.f32 0.01, %v2116_v46  ;;  %vm8078_vm6 = vcmp.lt.f32.partialorder %v2132_v5, 0.0004427343  ;;  %v2148_v42 = vadd.f32 1.0, %v2147_v25  ;;  %5994 = vlog2.f32 %v2153_v6 }
 0x248   :  { %v2119_v12 = vmul.f32 0.6931472, %v5985_v20  ;;  %v2131_v34 = vmul.f32 %v7788_v54, %v2130_v51  ;;  %v2159_v7 = vand.u32 2147483647, %v7810_v32  ;;  %5996 = vlog2.f32 %v2162_v3 }
 0x249   :  { %vm1503_vm7 = vcmp.gt.f32.partialorder %v7644_v38, 20.0  ;;  %v2397_v15 = vsel %vm1500_vm0, %v10156_v45, %v2333_v19  ;;  %vm8088_vm8 = vcmp.lt.f32.partialorder %v2141_v44, 0.0004427343  ;;  %v2165_v5 = vmul.f32 -0.5, %v7851_v9 }
 0x24a   :  { %v2171_v25 = vadd.f32 1.0, %v7830_v47  ;;  %v5987_v49 = vpop.eup %5986  ;;  %5514 = vmatprep.mubr.msk.f32.mxu1 %vm2432_vm3, %v2397_v15  ;;  %v2125_v54 = vsel %vm8053_vm2, %v2122_v40, %v2119_v12  ;;  %v2140_v51 = vmul.f32 %v7753_v56, %v2139_v39  ;;  %vm8098_vm9 = vcmp.lt.f32.partialorder %v2150_v50, 0.0004427343  ;;  %v10163_v50 = vld [vmem:[#allocation9_spill] sm:$0xff] }
 0x24b   :  { %v2157_v11 = vadd.f32 1.0, %v2156_v18  ;;  %v8102_v44 = vpop.eup %5988  ;;  %vm1504_vm10 = vcmp.gt.f32.partialorder %v7702_v43, 20.0  ;;  %v2334_v41 = vmul.f32 0.01, %v2125_v54  ;;  %v2128_v33 = vmul.f32 0.6931472, %v5987_v49 }
 0x24c   :  { %v2149_v46 = vmul.f32 %v7819_v26, %v2148_v42  ;;  %5998 = vlog2.f32 %v2171_v25  ;;  %v5991_v3 = vpop.eup %5990  ;;  %vm8106_vm11 = vcmp.lt.f32.partialorder %v2159_v7, 0.0004427343  ;;  %v2168_v56 = vand.u32 2147483647, %v7851_v9 }
 0x24d   :  { %v2174_v40 = vmul.f32 -0.5, %v7830_v47  ;;  %v2180_v39 = vadd.f32 1.0, %v7884_v1  ;;  %v2398_v18 = vsel %vm1501_vm4, %v10163_v50, %v2334_v41  ;;  %v2134_v20 = vsel %vm8078_vm6, %v2131_v34, %v2128_v33  ;;  %v10166_v41 = vld [vmem:[#allocation16_spill] sm:$0xff] }
 0x24e   :  { %v2137_v26 = vmul.f32 0.6931472, %v5991_v3  ;;  %v2166_v19 = vadd.f32 1.0, %v2165_v5  ;;  %v5993_v42 = vpop.eup %5992  ;;  %vm1505_vm12 = vcmp.gt.f32.partialorder %v7699_v16, 20.0  ;;  %5515 = vmatmul.mubr.msk.f32.gmra.mrb[42].mxu1 %vm2432_vm3, %v2398_v18  ;;  %v2335_v12 = vmul.f32 0.01, %v2134_v20 }
 0x24f   :  { %v2158_v7 = vmul.f32 %v7810_v32, %v2157_v11  ;;  %v2177_v45 = vand.u32 2147483647, %v7830_v47  ;;  %6000 = vlog2.f32 %v2180_v39  ;;  %vm1506_vm13 = vcmp.gt.f32.partialorder %v7735_v29, 20.0  ;;  %v10167_v18 = vld [vmem:[#allocation20_spill] sm:$0xff] }
 0x250   :  { %v2143_v24 = vsel %vm8088_vm8, %v2140_v51, %v2137_v26  ;;  %v2146_v59 = vmul.f32 0.6931472, %v5993_v42  ;;  %v2183_v34 = vmul.f32 -0.5, %v7884_v1  ;;  %v2189_v15 = vadd.f32 1.0, %v7871_v28 }
 0x251   :  { %v2399_v5 = vsel %vm1502_vm5, %v7652_v58, %v2335_v12  ;;  %v2336_v25 = vmul.f32 0.01, %v2143_v24  ;;  %vm8130_vm14 = vcmp.lt.f32.partialorder %v2168_v56, 0.0004427343  ;;  %v2175_v49 = vadd.f32 1.0, %v2174_v40  ;;  %v5995_v54 = vpop.eup %5994  ;;  %v4034_v58 = vld [vmem:[%s9901_s7] sm:$0xff] }
 0x252   :  { %5517 = vmatprep.mubr.msk.f32.mxu1 %vm2432_vm3, %v2399_v5  ;;  %v2152_v13 = vsel %vm8098_vm9, %v2149_v46, %v2146_v59  ;;  %v2167_v51 = vmul.f32 %v7851_v9, %v2166_v19  ;;  %v2186_v11 = vand.u32 2147483647, %v7884_v1  ;;  %6002 = vlog2.f32 %v2189_v15  ;;  %v5997_v61 = vpop.eup %5996  ;;  %v4035_v9 = vld [vmem:[%s9901_s7 + $0x8] sm:$0xff]  ;;  %v10172_v59 = vld [vmem:[#allocation21_spill] sm:$0xff] }
 0x253   :  { %vm1507_vm15 = vcmp.gt.f32.partialorder %v7720_v48, 20.0  ;;  %v2400_v33 = vsel %vm1503_vm7, %v10166_v41, %v2336_v25  ;;  %v2337_v3 = vmul.f32 0.01, %v2152_v13  ;;  %v2155_v56 = vmul.f32 0.6931472, %v5995_v54  ;;  %v10175_v41 = vld [vmem:[#allocation11_spill] sm:$0xff] }
 0x254   :  { %v2192_v6 = vmul.f32 -0.5, %v7871_v28  ;;  %5518 = vmatmul.mubr.msk.f32.gmra.mrb[44].mxu1 %vm2432_vm3, %v2400_v33  ;;  %v2164_v46 = vmul.f32 0.6931472, %v5997_v61  ;;  %v2184_v40 = vadd.f32 1.0, %v2183_v34  ;;  %v2195_v39 = vand.u32 2147483647, %v7871_v28 }
 0x255   :  { %v2198_v50 = vadd.f32 1.0, %v7927_v62  ;;  %v2401_v38 = vsel %vm1504_vm10, %v10167_v18, %v2337_v3  ;;  %v2161_v20 = vsel %vm8106_vm11, %v2158_v7, %v2155_v56  ;;  %v2176_v26 = vmul.f32 %v7830_v47, %v2175_v49  ;;  %v10176_v18 = vld [vmem:[#allocation17_spill] sm:$0xff] }
 0x256   :  { %vm8159_vm0 = vcmp.lt.f32.partialorder %v2177_v45, 0.0004427343  ;;  %v5999_v42 = vpop.eup %5998  ;;  %vm1508_vm1 = vcmp.gt.f32.partialorder %v7767_v27, 20.0  ;;  %5520 = vmatprep.mubr.msk.f32.mxu1 %vm2432_vm3, %v2401_v38  ;;  %v2338_v12 = vmul.f32 0.01, %v2161_v20  ;;  %v2170_v24 = vsel %vm8130_vm14, %v2167_v51, %v2164_v46 }
 0x257   :  { %vm8167_vm2 = vcmp.lt.f32.partialorder %v2186_v11, 0.0004427343  ;;  %6004 = vlog2.f32 %v2198_v50  ;;  %v2339_v30 = vmul.f32 0.01, %v2170_v24  ;;  %v2173_v47 = vmul.f32 0.6931472, %v5999_v42 }
 0x258   :  { %v2193_v7 = vadd.f32 1.0, %v2192_v6  ;;  %v5680_v45 = vpack.c.bf16 %v4035_v9, %v4034_v58  ;;  %v2402_v34 = vsel %vm1505_vm12, %v10172_v59, %v2338_v12  ;;  %v2185_v15 = vmul.f32 %v7884_v1, %v2184_v40 }
 0x259   :  { %vm8175_vm4 = vcmp.lt.f32.partialorder %v2195_v39, 0.0004427343  ;;  %v2207_v25 = vadd.f32 1.0, %v7918_v8  ;;  %v6001_v32 = vpop.eup %6000  ;;  %vm1509_vm5 = vcmp.gt.f32.partialorder %v7757_v14, 20.0  ;;  %5521 = vmatmul.mubr.msk.f32.gmra.mrb[46].mxu1 %vm2432_vm3, %v2402_v34  ;;  %v2403_v49 = vsel %vm1506_vm13, %v7714_v57, %v2339_v30  ;;  %v10178_v34 = vld [vmem:[#allocation24_spill] sm:$0xff] }
 0x25a   :  { %v2179_v16 = vsel %vm8159_vm0, %v2176_v26, %v2173_v47  ;;  %v2201_v1 = vmul.f32 -0.5, %v7927_v62  ;;  %v2216_v54 = vadd.f32 1.0, %v7981_v60  ;;  %5681 = vmatprep.subr.bf16.mxu1 %v5680_v45  ;;  %5523 = vmatprep.mubr.msk.f32.mxu1 %vm2432_vm3, %v2403_v49  ;;  %v2182_v51 = vmul.f32 0.6931472, %v6001_v32  ;;  %v10177_v47 = vld [vmem:[#allocation22_spill] sm:$0xff] }
 0x25b   :  { %v2340_v13 = vmul.f32 0.01, %v2179_v16  ;;  %6006 = vlog2.f32 %v2207_v25  ;;  %v2210_v11 = vmul.f32 -0.5, %v7918_v8  ;;  %5683 = vmatpush3.bf16.msra.mxu1 %v5680_v45  ;;  %v2194_v58 = vmul.f32 %v7871_v28, %v2193_v7  ;;  %v8214_v30 = vpop.f32.mrb[64].mxu0 }
 0x25c   :  { %v2204_v29 = vand.u32 2147483647, %v7927_v62  ;;  %6008 = vlog2.f32 %v2216_v54  ;;  %v2219_v57 = vmul.f32 -0.5, %v7981_v60  ;;  %v6003_v61 = vpop.eup %6002  ;;  %v2188_v3 = vsel %vm8167_vm2, %v2185_v15, %v2182_v51  ;;  %v8219_v59 = vpop.f32.mrb[65].mxu0  ;;  %v10179_v15 = vld [vmem:[#allocation18_spill] sm:$0xff] }
 0x25d   :  { %v2404_v33 = vsel %vm1507_vm15, %v10175_v41, %v2340_v13  ;;  %v2213_v56 = vand.u32 2147483647, %v7918_v8  ;;  %v2225_v6 = vadd.f32 1.0, %v7962_v4  ;;  %vm1510_vm6 = vcmp.gt.f32.partialorder %v7800_v55, 20.0  ;;  %v10187_v41 = vld [vmem:[#allocation25_spill] sm:$0xff] }
 0x25e   :  { %5524 = vmatmul.mubr.msk.f32.gmra.mrb[48].mxu1 %vm2432_vm3, %v2404_v33  ;;  %v2341_v28 = vmul.f32 0.01, %v2188_v3  ;;  %v2191_v9 = vmul.f32 0.6931472, %v6003_v61  ;;  %v2202_v46 = vadd.f32 1.0, %v2201_v1  ;;  %v2228_v40 = vmul.f32 -0.5, %v7962_v4 }
 0x25f   :  { %v2211_v39 = vadd.f32 1.0, %v2210_v11  ;;  %v2222_v48 = vand.u32 2147483647, %v7981_v60  ;;  %6010 = vlog2.f32 %v2225_v6  ;;  %v2234_v50 = vadd.f32 1.0, %v8017_v36 }
 0x260   :  { %v2405_v38 = vsel %vm1508_vm1, %v10176_v18, %v2341_v28  ;;  %v2197_v20 = vsel %vm8175_vm4, %v2194_v58, %v2191_v9  ;;  %v2220_v26 = vadd.f32 1.0, %v2219_v57  ;;  %v2231_v19 = vand.u32 2147483647, %v7962_v4  ;;  %v10186_v58 = vld [vmem:[#allocation28_spill] sm:$0xff] }
 0x261   :  { %v6005_v42 = vpop.eup %6004  ;;  %5526 = vmatprep.mubr.msk.f32.mxu1 %vm2432_vm3, %v2405_v38  ;;  %v2342_v12 = vmul.f32 0.01, %v2197_v20  ;;  %v2229_v24 = vadd.f32 1.0, %v2228_v40  ;;  %6012 = vlog2.f32 %v2234_v50  ;;  %v2237_v43 = vmul.f32 -0.5, %v8017_v36 }
 0x262   :  { %vm1511_vm7 = vcmp.gt.f32.partialorder %v10177_v47, 20.0  ;;  %v2200_v27 = vmul.f32 0.6931472, %v6005_v42  ;;  %v2203_v7 = vmul.f32 %v7927_v62, %v2202_v46  ;;  %vm2205_vm8 = vcmp.lt.f32.partialorder %v2204_v29, 0.0004427343  ;;  %v4036_v47 = vld [vmem:[%s9901_s7 + $0x10] sm:$0xff] }
 0x263   :  { %v2243_v45 = vadd.f32 1.0, %v7993_v17  ;;  %vm1512_vm9 = vcmp.gt.f32.partialorder %v10178_v34, 20.0  ;;  %v2406_v5 = vsel %vm1509_vm5, %v10179_v15, %v2342_v12  ;;  %v2212_v25 = vmul.f32 %v7918_v8, %v2211_v39 }
 0x264   :  { %vm8226_vm10 = vcmp.lt.f32.partialorder %v2213_v56, 0.0004427343  ;;  %vm8230_vm11 = vcmp.lt.f32.partialorder %v2222_v48, 0.0004427343  ;;  %5527 = vmatmul.mubr.msk.f32.gmra.mrb[50].mxu1 %vm2432_vm3, %v2406_v5  ;;  %v2206_v62 = vsel %vm2205_vm8, %v2203_v7, %v2200_v27  ;;  %v2238_v16 = vadd.f32 1.0, %v2237_v43 }
 0x265   :  { %6014 = vlog2.f32 %v2243_v45  ;;  %v2252_v1 = vadd.f32 1.0, %v8049_v10  ;;  %v6007_v54 = vpop.eup %6006  ;;  %v2343_v14 = vmul.f32 0.01, %v2206_v62  ;;  %v2221_v13 = vmul.f32 %v7981_v60, %v2220_v26 }
 0x266   :  { %v2230_v8 = vmul.f32 %v7962_v4, %v2229_v24  ;;  %vm8238_vm12 = vcmp.lt.f32.partialorder %v2231_v19, 0.0004427343  ;;  %v6009_v11 = vpop.eup %6008  ;;  %vm1513_vm13 = vcmp.gt.f32.partialorder %v10186_v58, 20.0  ;;  %v2209_v29 = vmul.f32 0.6931472, %v6007_v54  ;;  %v10189_v24 = vld [vmem:[#allocation26_spill] sm:$0xff] }
 0x267   :  { %v2246_v57 = vmul.f32 -0.5, %v7993_v17  ;;  %6016 = vlog2.f32 %v2252_v1  ;;  %v2255_v61 = vmul.f32 -0.5, %v8049_v10  ;;  %v2407_v33 = vsel %vm1510_vm6, %v10187_v41, %v2343_v14  ;;  %v4038_v1 = vld [vmem:[%s9901_s7 + $0x20] sm:$0xff]  ;;  %v4039_v54 = vld [vmem:[%s9901_s7 + $0x28] sm:$0xff] }
 0x268   :  { %v2218_v60 = vmul.f32 0.6931472, %v6009_v11  ;;  %v2240_v4 = vand.u32 2147483647, %v8017_v36  ;;  %v2261_v3 = vadd.f32 1.0, %v8031_v31  ;;  %vm1514_vm14 = vcmp.gt.f32.partialorder %v7907_v22, 20.0  ;;  %5529 = vmatprep.mubr.msk.f32.mxu1 %vm2432_vm3, %v2407_v33 }
 0x269   :  { %v2215_v56 = vsel %vm8226_vm10, %v2212_v25, %v2209_v29  ;;  %v2239_v6 = vmul.f32 %v8017_v36, %v2238_v16  ;;  %v2249_v28 = vand.u32 2147483647, %v7993_v17  ;;  %v2264_v9 = vmul.f32 -0.5, %v8031_v31  ;;  %v6011_v55 = vpop.eup %6010  ;;  %v10188_v36 = vld [vmem:[#allocation23_spill] sm:$0xff]  ;;  %v4037_v16 = vld [vmem:[%s9901_s7 + $0x18] sm:$0xff]  ;;  %v4040_v22 = vld [vmem:[%s9901_s7 + $0x30] sm:$0xff] }
 0x26a   :  { %v2344_v46 = vmul.f32 0.01, %v2215_v56  ;;  %v2224_v40 = vsel %vm8230_vm11, %v2221_v13, %v2218_v60  ;;  %v2258_v39 = vand.u32 2147483647, %v8049_v10  ;;  %6018 = vlog2.f32 %v2261_v3  ;;  %v10194_v14 = vld [vmem:[#allocation31_spill] sm:$0xff] }
 0x26b   :  { %v2345_v48 = vmul.f32 0.01, %v2224_v40  ;;  %v2227_v50 = vmul.f32 0.6931472, %v6011_v55  ;;  %v2247_v18 = vadd.f32 1.0, %v2246_v57  ;;  %v2256_v38 = vadd.f32 1.0, %v2255_v61  ;;  %v6013_v20 = vpop.eup %6012 }
 0x26c   :  { %vm1515_vm15 = vcmp.gt.f32.partialorder %v7882_v63, 20.0  ;;  %v2408_v26 = vsel %vm1511_vm7, %v10188_v36, %v2344_v46  ;;  %v2265_v19 = vadd.f32 1.0, %v2264_v9  ;;  %v2267_v42 = vand.u32 2147483647, %v8031_v31  ;;  %v8304_v11 = vld [vmem:[%s9902_s6] ss:$0 sm:$0xff] }
 0x26d   :  { %v2270_v12 = vadd.f32 1.0, %v8102_v44  ;;  %5530 = vmatmul.mubr.msk.f32.gmra.mrb[52].mxu1 %vm2432_vm3, %v2408_v26  ;;  %v2409_v43 = vsel %vm1512_vm9, %v10189_v24, %v2345_v48  ;;  %v2233_v27 = vsel %vm8238_vm12, %v2230_v8, %v2227_v50  ;;  %v2236_v7 = vmul.f32 0.6931472, %v6013_v20 }
 0x26e   :  { %v2273_v45 = vmul.f32 -0.5, %v8102_v44  ;;  %vm1516_vm0 = vcmp.gt.f32.partialorder %v7950_v23, 20.0  ;;  %5532 = vmatprep.mubr.msk.f32.mxu1 %vm2432_vm3, %v2409_v43  ;;  %v2346_v15 = vmul.f32 0.01, %v2233_v27  ;;  %vm2241_vm1 = vcmp.lt.f32.partialorder %v2240_v4, 0.0004427343 }
 0x26f   :  { %vm8278_vm2 = vcmp.lt.f32.partialorder %v2249_v28, 0.0004427343  ;;  %6020 = vlog2.f32 %v2270_v12  ;;  %v6015_v34 = vpop.eup %6014  ;;  %v2242_v25 = vsel %vm2241_vm1, %v2239_v6, %v2236_v7  ;;  %v2248_v32 = vmul.f32 %v7993_v17, %v2247_v18  ;;  %v5453_v6 = vpop.f32.mrb[0].mxu1 }
 0x270   :  { %vm8283_vm4 = vcmp.lt.f32.partialorder %v2258_v39, 0.0004427343  ;;  %v2279_v62 = vadd.f32 1.0, %v8067_v52  ;;  %v2410_v17 = vsel %vm1513_vm13, %v10194_v14, %v2346_v15  ;;  %v2347_v13 = vmul.f32 0.01, %v2242_v25  ;;  %v2701_v40 = vpop.f32.mrb[1].mxu1 }
 0x271   :  { %v2245_v8 = vmul.f32 0.6931472, %v6015_v34  ;;  %v2257_v51 = vmul.f32 %v8049_v10, %v2256_v38  ;;  %v6017_v29 = vpop.eup %6016  ;;  %vm1517_vm5 = vcmp.gt.f32.partialorder %v7925_v53, 20.0  ;;  %5533 = vmatmul.mubr.msk.f32.gmra.mrb[54].mxu1 %vm2432_vm3, %v2410_v17  ;;  %v2266_v57 = vmul.f32 %v8031_v31, %v2265_v19  ;;  %v10197_v39 = vld [vmem:[#allocation29_spill] sm:$0xff] }
 0x272   :  { %vm8309_vm6 = vcmp.lt.f32.partialorder %v2267_v42, 0.0004427343  ;;  %v2274_v58 = vadd.f32 1.0, %v2273_v45  ;;  %6022 = vlog2.f32 %v2279_v62  ;;  %v2411_v10 = vsel %vm1514_vm14, %v7894_v37, %v2347_v13  ;;  %v4041_v37 = vld [vmem:[%s9901_s7 + $0x38] sm:$0xff] }
 0x273   :  { %v2251_v41 = vsel %vm8278_vm2, %v2248_v32, %v2245_v8  ;;  %v2254_v33 = vmul.f32 0.6931472, %v6017_v29  ;;  %v5684_v60 = vpack.c.bf16 %v4037_v16, %v4036_v47  ;;  %5535 = vmatprep.mubr.msk.f32.mxu1 %vm2432_vm3, %v2411_v10  ;;  %v2282_v31 = vmul.f32 -0.5, %v8067_v52  ;;  %v10199_v29 = vld [vmem:[#allocation27_spill] sm:$0xff] }
 0x274   :  { %v2348_v4 = vmul.f32 0.01, %v2251_v41  ;;  %v5688_v3 = vpack.c.bf16 %v4039_v54, %v4038_v1  ;;  %v8322_v56 = vadd.f32 %v8214_v30, %v8304_v11  ;;  %v6019_v28 = vpop.eup %6018  ;;  %v2276_v55 = vand.u32 2147483647, %v8102_v44 }
 0x275   :  { %v2260_v9 = vsel %vm8283_vm4, %v2257_v51, %v2254_v33  ;;  %5685 = vmatprep.subr.bf16.mxu1 %v5684_v60  ;;  %v8335_v30 = vadd.f32 %v8304_v11, %v8219_v59  ;;  %v8338_v46 = vadd.f32 %v5453_v6, %v8304_v11  ;;  %v2263_v18 = vmul.f32 0.6931472, %v6019_v28  ;;  %v10198_v51 = vld [vmem:[#allocation33_spill] sm:$0xff] }
 0x276   :  { %v2412_v48 = vsel %vm1515_vm15, %v10197_v39, %v2348_v4  ;;  %v2349_v50 = vmul.f32 0.01, %v2260_v9  ;;  %5687 = vmatpush3.bf16.msra.mxu1 %v5684_v60  ;;  %v8344_v38 = vmul.f32 100.0, %v8322_v56  ;;  %v8354_v36 = vadd.f32 %v8304_v11, %v2701_v40 }
 0x277   :  { %5536 = vmatmul.mubr.msk.f32.gmra.mrb[56].mxu1 %vm2432_vm3, %v2412_v48  ;;  %5689 = vmatprep.subr.bf16.mxu1 %v5688_v3  ;;  %v8348_v59 = vmul.f32 100.0, %v8335_v30  ;;  %v8351_v20 = vmul.f32 100.0, %v8338_v46  ;;  %v5692_v63 = vpack.c.bf16 %v4041_v37, %v4040_v22  ;;  %v2269_v19 = vsel %vm8309_vm6, %v2266_v57, %v2263_v18 }
 0x278   :  { %v2413_v26 = vsel %vm1516_vm0, %v7941_v35, %v2349_v50  ;;  %v2283_v42 = vadd.f32 1.0, %v2282_v31  ;;  %v3139_v12 = vmin.f32 %v8344_v38, 20.0  ;;  %v2350_v43 = vmul.f32 0.01, %v2269_v19 }
 0x279   :  { %v6021_v24 = vpop.eup %6020  ;;  %5538 = vmatprep.mubr.msk.f32.mxu1 %vm2432_vm3, %v2413_v26  ;;  %v2275_v27 = vmul.f32 %v8102_v44, %v2274_v58  ;;  %v2285_v7 = vand.u32 2147483647, %v8067_v52  ;;  %v3138_v45 = vmin.f32 %v8348_v59, 20.0  ;;  %v3141_v35 = vmin.f32 %v8351_v20, 20.0 }
 0x27a   :  { %v2272_v47 = vmul.f32 0.6931472, %v6021_v24  ;;  %5691 = vmatpush3.bf16.msra.mxu1 %v5688_v3  ;;  %v3204_v23 = vmul.f32 1.442695, %v3139_v12  ;;  %v8368_v15 = vmul.f32 100.0, %v8354_v36  ;;  %v2414_v5 = vsel %vm1517_vm5, %v7911_v2, %v2350_v43  ;;  %v5456_v2 = vpop.f32.mrb[2].mxu1 }
 0x27b   :  { %vm2277_vm7 = vcmp.lt.f32.partialorder %v2276_v55, 0.0004427343  ;;  %v3202_v34 = vmul.f32 1.442695, %v3138_v45  ;;  %5693 = vmatprep.subr.bf16.mxu1 %v5692_v63  ;;  %5539 = vmatmul.mubr.msk.f32.gmra.mrb[58].mxu1 %vm2432_vm3, %v2414_v5  ;;  %v2284_v32 = vmul.f32 %v8067_v52, %v2283_v42  ;;  %v3208_v49 = vmul.f32 1.442695, %v3141_v35 }
 0x27c   :  { %v6023_v44 = vpop.eup %6022  ;;  %v2278_v25 = vsel %vm2277_vm7, %v2275_v27, %v2272_v47  ;;  %6024 = vpow2.f32 %v3204_v23  ;;  %v3140_v1 = vmin.f32 %v8368_v15, 20.0  ;;  %vm1518_vm8 = vcmp.gt.f32.partialorder %v7991_v21, 20.0  ;;  %v2711_v52 = vpop.f32.mrb[3].mxu1 }
 0x27d   :  { %v2351_v62 = vmul.f32 0.01, %v2278_v25  ;;  %v2281_v16 = vmul.f32 0.6931472, %v6023_v44  ;;  %6026 = vpow2.f32 %v3202_v34  ;;  %vm2286_vm9 = vcmp.lt.f32.partialorder %v2285_v7, 0.0004427343 }
 0x27e   :  { %6028 = vpow2.f32 %v3208_v49  ;;  %5695 = vmatpush3.bf16.msra.mxu1 %v5692_v63  ;;  %v3206_v14 = vmul.f32 1.442695, %v3140_v1  ;;  %v8379_v17 = vadd.f32 %v5456_v2, %v8304_v11  ;;  %v8383_v8 = vadd.f32 %v8304_v11, %v2711_v52  ;;  %v5459_v31 = vpop.f32.mrb[4].mxu1 }
 0x27f   :  { %v2415_v53 = vsel %vm1518_vm8, %v7978_v0, %v2351_v62  ;;  %v2287_v54 = vsel %vm2286_vm9, %v2284_v32, %v2281_v16  ;;  %vm1519_vm10 = vcmp.gt.f32.partialorder %v10198_v51, 20.0  ;;  %v8397_v6 = vadd.f32 %v5459_v31, %v8304_v11  ;;  %v2721_v22 = vpop.f32.mrb[5].mxu1 }
 0x280   :  { %5541 = vmatprep.mubr.msk.f32.mxu1 %vm2432_vm3, %v2415_v53  ;;  %v2352_v13 = vmul.f32 0.01, %v2287_v54  ;;  %6030 = vpow2.f32 %v3206_v14  ;;  %v8387_v21 = vmul.f32 100.0, %v8379_v17  ;;  %v8391_v57 = vmul.f32 100.0, %v8383_v8 }
 0x281   :  { %v8400_v9 = vadd.f32 %v8304_v11, %v2721_v22  ;;  %v8403_v40 = vmul.f32 100.0, %v8397_v6  ;;  %vm3074_vm12 = vcmp.gt.f32.partialorder %v8348_v59, 20.0  ;;  %vm3075_vm13 = vcmp.gt.f32.partialorder %v8344_v38, 20.0 }
 0x282   :  { %v2416_v0 = vsel %vm1519_vm10, %v10199_v29, %v2352_v13  ;;  %v3143_v61 = vmin.f32 %v8387_v21, 20.0  ;;  %v3142_v58 = vmin.f32 %v8391_v57, 20.0  ;;  %vm3077_vm1 = vcmp.gt.f32.partialorder %v8351_v20, 20.0 }
 0x283   :  { %5542 = vmatmul.mubr.msk.f32.gmra.mrb[60].mxu1 %vm2432_vm3, %v2416_v0  ;;  %v8406_v48 = vmul.f32 100.0, %v8400_v9  ;;  %v3145_v63 = vmin.f32 %v8403_v40, 20.0  ;;  %vm3076_vm2 = vcmp.gt.f32.partialorder %v8368_v15, 20.0  ;;  %vm3079_vm6 = vcmp.gt.f32.partialorder %v8387_v21, 20.0 }
 0x284   :  { %v3212_v10 = vmul.f32 1.442695, %v3143_v61  ;;  %v3210_v33 = vmul.f32 1.442695, %v3142_v58  ;;  %v5462_v7 = vpop.f32.mrb[6].mxu1  ;;  %vm3078_vm7 = vcmp.gt.f32.partialorder %v8391_v57, 20.0 }
 0x285   :  { %v3144_v19 = vmin.f32 %v8406_v48, 20.0  ;;  %v3216_v24 = vmul.f32 1.442695, %v3145_v63  ;;  %v8415_v35 = vadd.f32 %v5462_v7, %v8304_v11  ;;  %v2731_v5 = vpop.f32.mrb[7].mxu1  ;;  %vm3080_vm8 = vcmp.gt.f32.partialorder %v8406_v48, 20.0 }
 0x286   :  { %v6025_v41 = vpop.eup %6024  ;;  %6032 = vpow2.f32 %v3212_v10  ;;  %v8421_v32 = vadd.f32 %v8304_v11, %v2731_v5  ;;  %vm3081_vm10 = vcmp.gt.f32.partialorder %v8403_v40, 20.0 }
 0x287   :  { %v6027_v60 = vpop.eup %6026  ;;  %v3339_v4 = vadd.f32 1.0, %v6025_v41  ;;  %6034 = vpow2.f32 %v3210_v33  ;;  %v3342_v28 = vmul.f32 -0.5, %v6025_v41  ;;  %v3345_v18 = vand.u32 2147483647, %v6025_v41 }
 0x288   :  { %v6029_v3 = vpop.eup %6028  ;;  %v3330_v37 = vadd.f32 1.0, %v6027_v60  ;;  %v3333_v55 = vmul.f32 -0.5, %v6027_v60  ;;  %v3214_v27 = vmul.f32 1.442695, %v3144_v19  ;;  %v3336_v45 = vand.u32 2147483647, %v6027_v60 }
 0x289   :  { %6036 = vlog2.f32 %v3339_v4  ;;  %v3357_v50 = vadd.f32 1.0, %v6029_v3  ;;  %v3343_v26 = vadd.f32 1.0, %v3342_v28  ;;  %v3360_v43 = vmul.f32 -0.5, %v6029_v3 }
 0x28a   :  { %6038 = vlog2.f32 %v3330_v37  ;;  %v6031_v39 = vpop.eup %6030  ;;  %v3334_v42 = vadd.f32 1.0, %v3333_v55  ;;  %vm8410_vm11 = vcmp.lt.f32.partialorder %v3345_v18, 0.0004427343  ;;  %v8427_v16 = vmul.f32 100.0, %v8415_v35 }
 0x28b   :  { %v3348_v12 = vadd.f32 1.0, %v6031_v39  ;;  %6040 = vlog2.f32 %v3357_v50  ;;  %v3351_v47 = vmul.f32 -0.5, %v6031_v39  ;;  %v3354_v34 = vand.u32 2147483647, %v6031_v39 }
 0x28c   :  { %v3344_v25 = vmul.f32 %v6025_v41, %v3343_v26  ;;  %v3335_v49 = vmul.f32 %v6027_v60, %v3334_v42  ;;  %v3361_v1 = vadd.f32 1.0, %v3360_v43  ;;  %v3363_v2 = vand.u32 2147483647, %v6029_v3 }
 0x28d   :  { %6042 = vlog2.f32 %v3348_v12  ;;  %v8431_v14 = vmul.f32 100.0, %v8421_v32  ;;  %vm8433_vm14 = vcmp.lt.f32.partialorder %v3336_v45, 0.0004427343  ;;  %v3352_v13 = vadd.f32 1.0, %v3351_v47  ;;  %v5465_v55 = vpop.f32.mrb[8].mxu1 }
 0x28e   :  { %6044 = vpow2.f32 %v3216_v24  ;;  %v3147_v61 = vmin.f32 %v8427_v16, 20.0  ;;  %vm8439_vm15 = vcmp.lt.f32.partialorder %v3354_v34, 0.0004427343  ;;  %v3362_v31 = vmul.f32 %v6029_v3, %v3361_v1  ;;  %v2741_v19 = vpop.f32.mrb[9].mxu1 }
 0x28f   :  { %6046 = vpow2.f32 %v3214_v27  ;;  %v3146_v10 = vmin.f32 %v8431_v14, 20.0  ;;  %vm8447_vm0 = vcmp.lt.f32.partialorder %v3363_v2, 0.0004427343  ;;  %v3353_v18 = vmul.f32 %v6031_v39, %v3352_v13 }
 0x290   :  { %v8417_v44 = vpop.eup %6032  ;;  %v3220_v4 = vmul.f32 1.442695, %v3147_v61  ;;  %v8455_v26 = vadd.f32 %v5465_v55, %v8304_v11  ;;  %v8460_v43 = vadd.f32 %v8304_v11, %v2741_v19 }
 0x291   :  { %v8423_v62 = vpop.eup %6034  ;;  %v3375_v53 = vadd.f32 1.0, %v8417_v44  ;;  %v3378_v33 = vmul.f32 -0.5, %v8417_v44  ;;  %v3218_v28 = vmul.f32 1.442695, %v3146_v10  ;;  %v3381_v1 = vand.u32 2147483647, %v8417_v44 }
 0x292   :  { %v3366_v51 = vadd.f32 1.0, %v8423_v62  ;;  %v3369_v3 = vmul.f32 -0.5, %v8423_v62  ;;  %v3372_v12 = vand.u32 2147483647, %v8423_v62  ;;  %v8465_v39 = vmul.f32 100.0, %v8455_v26 }
 0x293   :  { %v6037_v54 = vpop.eup %6036  ;;  %6048 = vlog2.f32 %v3375_v53  ;;  %v3379_v7 = vadd.f32 1.0, %v3378_v33  ;;  %vm3382_vm5 = vcmp.lt.f32.partialorder %v3381_v1, 0.0004427343 }
 0x294   :  { %v6039_v29 = vpop.eup %6038  ;;  %v3341_v0 = vmul.f32 0.6931472, %v6037_v54  ;;  %6050 = vlog2.f32 %v3366_v51  ;;  %v3149_v59 = vmin.f32 %v8465_v39, 20.0  ;;  %v3370_v38 = vadd.f32 1.0, %v3369_v3 }
 0x295   :  { %v3332_v41 = vmul.f32 0.6931472, %v6039_v29  ;;  %v6041_v63 = vpop.eup %6040  ;;  %6052 = vpow2.f32 %v3218_v28  ;;  %vm8489_vm4 = vcmp.lt.f32.partialorder %v3372_v12, 0.0004427343  ;;  %v3380_v29 = vmul.f32 %v8417_v44, %v3379_v7 }
 0x296   :  { %v3347_v60 = vsel %vm8410_vm11, %v3344_v25, %v3341_v0  ;;  %v3359_v27 = vmul.f32 0.6931472, %v6041_v63  ;;  %6054 = vpow2.f32 %v3220_v4  ;;  %v8476_v25 = vmul.f32 100.0, %v8460_v43 }
 0x297   :  { %v3907_v37 = vmul.f32 0.01, %v3347_v60  ;;  %v3338_v50 = vsel %vm8433_vm14, %v3335_v49, %v3332_v41  ;;  %v6043_v24 = vpop.eup %6042  ;;  %v3224_v13 = vmul.f32 1.442695, %v3149_v59  ;;  %v5468_v41 = vpop.f32.mrb[10].mxu1  ;;  %v3371_v4 = vmul.f32 %v8423_v62, %v3370_v38 }
 0x298   :  { %v3906_v42 = vmul.f32 0.01, %v3338_v50  ;;  %v8462_v45 = vpop.eup %6044  ;;  %v3350_v23 = vmul.f32 0.6931472, %v6043_v24  ;;  %v3365_v49 = vsel %vm8447_vm0, %v3362_v31, %v3359_v27  ;;  %v8502_v44 = vadd.f32 %v5468_v41, %v8304_v11  ;;  %v2751_v31 = vpop.f32.mrb[11].mxu1 }
 0x299   :  { %v8470_v5 = vpop.eup %6046  ;;  %v3971_v34 = vsel %vm3075_vm13, %v8322_v56, %v3907_v37  ;;  %v3909_v2 = vmul.f32 0.01, %v3365_v49  ;;  %v3148_v56 = vmin.f32 %v8476_v25, 20.0  ;;  %v3393_v0 = vadd.f32 1.0, %v8462_v45 }
 0x29a   :  { %v3970_v47 = vsel %vm3074_vm12, %v8335_v30, %v3906_v42  ;;  %v3356_v30 = vsel %vm8439_vm15, %v3353_v18, %v3350_v23  ;;  %v3384_v54 = vadd.f32 1.0, %v8470_v5  ;;  %v3387_v22 = vmul.f32 -0.5, %v8470_v5 }
 0x29b   :  { %5560 = vmatprep.mubr.msk.f32.mxu1 %vm2432_vm3, %v3970_v47  ;;  %v3908_v53 = vmul.f32 0.01, %v3356_v30  ;;  %v3222_v58 = vmul.f32 1.442695, %v3148_v56  ;;  %v3973_v33 = vsel %vm3077_vm1, %v8338_v46, %v3909_v2  ;;  %v8507_v37 = vadd.f32 %v8304_v11, %v2751_v31 }
 0x29c   :  { %5561 = vmatmul.mubr.msk.f32.vlgmr.msra.gmra.mrb[62].mxu1 %vm2432_vm3, %v3971_v34  ;;  %6056 = vlog2.f32 %v3384_v54  ;;  %v8514_v28 = vmul.f32 100.0, %v8502_v44  ;;  %v3390_v3 = vand.u32 2147483647, %v8470_v5  ;;  %v3396_v12 = vmul.f32 -0.5, %v8462_v45 }
 0x29d   :  { %v6049_v52 = vpop.eup %6048  ;;  %v3972_v10 = vsel %vm3076_vm2, %v8354_v36, %v3908_v53  ;;  %6058 = vpow2.f32 %v3222_v58  ;;  %v8521_v18 = vmul.f32 100.0, %v8507_v37  ;;  %v3388_v57 = vadd.f32 1.0, %v3387_v22 }
 0x29e   :  { %v6051_v61 = vpop.eup %6050  ;;  %v3377_v15 = vmul.f32 0.6931472, %v6049_v52  ;;  %5563 = vmatprep.mubr.msk.f32.mxu1 %vm2432_vm3, %v3972_v10  ;;  %6060 = vpow2.f32 %v3224_v13  ;;  %v3151_v19 = vmin.f32 %v8514_v28, 20.0  ;;  %vm8537_vm9 = vcmp.lt.f32.partialorder %v3390_v3, 0.0004427343 }
 0x29f   :  { %v3368_v60 = vmul.f32 0.6931472, %v6051_v61  ;;  %v8511_v62 = vpop.eup %6052  ;;  %6062 = vlog2.f32 %v3393_v0  ;;  %v3150_v24 = vmin.f32 %v8521_v18, 20.0  ;;  %v5471_v47 = vpop.f32.mrb[12].mxu1  ;;  %v3389_v38 = vmul.f32 %v8470_v5, %v3388_v57 }
 0x2a0   :  { %5564 = vmatmul.mubr.msk.f32.gmra.mrb[64].mxu1 %vm2432_vm3, %v3973_v33  ;;  %v3383_v36 = vsel %vm3382_vm5, %v3380_v29, %v3377_v15  ;;  %v8516_v50 = vpop.eup %6054  ;;  %v3402_v63 = vadd.f32 1.0, %v8511_v62  ;;  %v3228_v7 = vmul.f32 1.442695, %v3151_v19  ;;  %v8535_v34 = vadd.f32 %v5471_v47, %v8304_v11  ;;  %v2761_v49 = vpop.f32.mrb[13].mxu1 }
 0x2a1   :  { %v3374_v46 = vsel %vm8489_vm4, %v3371_v4, %v3368_v60  ;;  %v3911_v20 = vmul.f32 0.01, %v3383_v36  ;;  %v3411_v27 = vadd.f32 1.0, %v8516_v50  ;;  %v3405_v59 = vmul.f32 -0.5, %v8511_v62 }
 0x2a2   :  { %v3910_v55 = vmul.f32 0.01, %v3374_v46  ;;  %6064 = vlog2.f32 %v3402_v63  ;;  %v8544_v30 = vadd.f32 %v8304_v11, %v2761_v49  ;;  %v8550_v53 = vmul.f32 100.0, %v8535_v34 }
 0x2a3   :  { %v3975_v21 = vsel %vm3079_vm6, %v8379_v17, %v3911_v20  ;;  %v3397_v17 = vadd.f32 1.0, %v3396_v12  ;;  %v3399_v54 = vand.u32 2147483647, %v8462_v45  ;;  %v3414_v52 = vmul.f32 -0.5, %v8516_v50 }
 0x2a4   :  { %v3974_v42 = vsel %vm3078_vm7, %v8383_v8, %v3910_v55  ;;  %v3226_v8 = vmul.f32 1.442695, %v3150_v24  ;;  %v8557_v51 = vmul.f32 100.0, %v8544_v30  ;;  %v3153_v61 = vmin.f32 %v8550_v53, 20.0 }
 0x2a5   :  { %5566 = vmatprep.mubr.msk.f32.mxu1 %vm2432_vm3, %v3974_v42  ;;  %v3398_v10 = vmul.f32 %v8462_v45, %v3397_v17  ;;  %v3406_v15 = vadd.f32 1.0, %v3405_v59  ;;  %v3408_v60 = vand.u32 2147483647, %v8511_v62  ;;  %vm3400_vm11 = vcmp.lt.f32.partialorder %v3399_v54, 0.0004427343 }
 0x2a6   :  { %5567 = vmatmul.mubr.msk.f32.gmra.mrb[66].mxu1 %vm2432_vm3, %v3975_v21  ;;  %v6057_v23 = vpop.eup %6056  ;;  %6066 = vpow2.f32 %v3226_v8  ;;  %v3152_v41 = vmin.f32 %v8557_v51, 20.0  ;;  %v3415_v31 = vadd.f32 1.0, %v3414_v52  ;;  %v3232_v46 = vmul.f32 1.442695, %v3153_v61 }
 0x2a7   :  { %v3386_v2 = vmul.f32 0.6931472, %v6057_v23  ;;  %v8547_v56 = vpop.eup %6058  ;;  %6068 = vlog2.f32 %v3411_v27  ;;  %vm3082_vm12 = vcmp.gt.f32.partialorder %v8431_v14, 20.0  ;;  %v3407_v48 = vmul.f32 %v8511_v62, %v3406_v15 }
 0x2a8   :  { %v8554_v13 = vpop.eup %6060  ;;  %6070 = vpow2.f32 %v3228_v7  ;;  %v3420_v5 = vadd.f32 1.0, %v8547_v56  ;;  %v3423_v36 = vmul.f32 -0.5, %v8547_v56  ;;  %v3230_v20 = vmul.f32 1.442695, %v3152_v41  ;;  %v5474_v63 = vpop.f32.mrb[14].mxu1 }
 0x2a9   :  { %v3392_v29 = vsel %vm8537_vm9, %v3389_v38, %v3386_v2  ;;  %v6063_v0 = vpop.eup %6062  ;;  %v3429_v55 = vadd.f32 1.0, %v8554_v13  ;;  %v2771_v3 = vpop.f32.mrb[15].mxu1  ;;  %vm3409_vm13 = vcmp.lt.f32.partialorder %v3408_v60, 0.0004427343  ;;  %v3417_v12 = vand.u32 2147483647, %v8516_v50 }
 0x2aa   :  { %v3912_v58 = vmul.f32 0.01, %v3392_v29  ;;  %v3395_v33 = vmul.f32 0.6931472, %v6063_v0  ;;  %6072 = vlog2.f32 %v3420_v5  ;;  %v8579_v24 = vadd.f32 %v8304_v11, %v2771_v3 }
 0x2ab   :  { %6074 = vpow2.f32 %v3230_v20  ;;  %v3416_v8 = vmul.f32 %v8516_v50, %v3415_v31  ;;  %v3424_v47 = vadd.f32 1.0, %v3423_v36  ;;  %v3432_v50 = vmul.f32 -0.5, %v8554_v13 }
 0x2ac   :  { %v3976_v4 = vsel %vm3080_vm8, %v8400_v9, %v3912_v58  ;;  %v6065_v22 = vpop.eup %6064  ;;  %v3401_v45 = vsel %vm3400_vm11, %v3398_v10, %v3395_v33  ;;  %v8575_v9 = vadd.f32 %v5474_v63, %v8304_v11  ;;  %6076 = vlog2.f32 %v3429_v55 }
 0x2ad   :  { %5569 = vmatprep.mubr.msk.f32.mxu1 %vm2432_vm3, %v3976_v4  ;;  %v3913_v19 = vmul.f32 0.01, %v3401_v45  ;;  %v3404_v42 = vmul.f32 0.6931472, %v6065_v22  ;;  %6078 = vpow2.f32 %v3232_v46  ;;  %v8592_v49 = vmul.f32 100.0, %v8579_v24 }
 0x2ae   :  { %v8587_v62 = vmul.f32 100.0, %v8575_v9  ;;  %vm3083_vm14 = vcmp.gt.f32.partialorder %v8427_v16, 20.0  ;;  %vm3418_vm15 = vcmp.lt.f32.partialorder %v3417_v12, 0.0004427343  ;;  %vm3084_vm0 = vcmp.gt.f32.partialorder %v8476_v25, 20.0 }
 0x2af   :  { %v3977_v21 = vsel %vm3081_vm10, %v8397_v6, %v3913_v19  ;;  %v3410_v57 = vsel %vm3409_vm13, %v3407_v48, %v3404_v42  ;;  %v3426_v6 = vand.u32 2147483647, %v8547_v56  ;;  %v3154_v38 = vmin.f32 %v8592_v49, 20.0 }
 0x2b0   :  { %v8584_v27 = vpop.eup %6066  ;;  %5570 = vmatmul.mubr.msk.f32.gmra.mrb[68].mxu1 %vm2432_vm3, %v3977_v21  ;;  %v3914_v7 = vmul.f32 0.01, %v3410_v57  ;;  %v3155_v17 = vmin.f32 %v8587_v62, 20.0  ;;  %v3425_v61 = vmul.f32 %v8547_v56, %v3424_v47  ;;  %v3433_v33 = vadd.f32 1.0, %v3432_v50 }
 0x2b1   :  { %v6069_v23 = vpop.eup %6068  ;;  %v3438_v40 = vadd.f32 1.0, %v8584_v27  ;;  %v3441_v5 = vmul.f32 -0.5, %v8584_v27  ;;  %v3234_v14 = vmul.f32 1.442695, %v3154_v38  ;;  %vm3427_vm1 = vcmp.lt.f32.partialorder %v3426_v6, 0.0004427343 }
 0x2b2   :  { %v8596_v1 = vpop.eup %6070  ;;  %v3978_v59 = vsel %vm3082_vm12, %v8421_v32, %v3914_v7  ;;  %v3413_v2 = vmul.f32 0.6931472, %v6069_v23  ;;  %v3236_v52 = vmul.f32 1.442695, %v3155_v17  ;;  %v3435_v31 = vand.u32 2147483647, %v8554_v13 }
 0x2b3   :  { %5572 = vmatprep.mubr.msk.f32.mxu1 %vm2432_vm3, %v3978_v59  ;;  %6080 = vlog2.f32 %v3438_v40  ;;  %v5477_v32 = vpop.f32.mrb[16].mxu1  ;;  %v3447_v58 = vadd.f32 1.0, %v8596_v1  ;;  %v3442_v46 = vadd.f32 1.0, %v3441_v5  ;;  %v3434_v63 = vmul.f32 %v8554_v13, %v3433_v33 }
 0x2b4   :  { %v6073_v54 = vpop.eup %6072  ;;  %v3419_v29 = vsel %vm3418_vm15, %v3416_v8, %v3413_v2  ;;  %v8611_v10 = vadd.f32 %v5477_v32, %v8304_v11  ;;  %v2781_v15 = vpop.f32.mrb[17].mxu1  ;;  %6082 = vpow2.f32 %v3234_v14  ;;  %v3444_v19 = vand.u32 2147483647, %v8584_v27 }
 0x2b5   :  { %v3915_v0 = vmul.f32 0.01, %v3419_v29  ;;  %v3422_v41 = vmul.f32 0.6931472, %v6073_v54  ;;  %v8614_v60 = vadd.f32 %v8304_v11, %v2781_v15  ;;  %v8620_v56 = vpop.eup %6074  ;;  %6084 = vlog2.f32 %v3447_v58 }
 0x2b6   :  { %v8623_v36 = vmul.f32 100.0, %v8611_v10  ;;  %v6077_v20 = vpop.eup %6076  ;;  %6086 = vpow2.f32 %v3236_v52  ;;  %v3450_v42 = vmul.f32 -0.5, %v8596_v1  ;;  %vm3436_vm2 = vcmp.lt.f32.partialorder %v3435_v31, 0.0004427343 }
 0x2b7   :  { %v3979_v4 = vsel %vm3083_vm14, %v8415_v35, %v3915_v0  ;;  %v3428_v22 = vsel %vm3427_vm1, %v3425_v61, %v3422_v41  ;;  %v8627_v45 = vmul.f32 100.0, %v8614_v60  ;;  %v3456_v35 = vadd.f32 1.0, %v8620_v56  ;;  %v8633_v48 = vpop.eup %6078 }
 0x2b8   :  { %5573 = vmatmul.mubr.msk.f32.gmra.mrb[70].mxu1 %vm2432_vm3, %v3979_v4  ;;  %v3916_v55 = vmul.f32 0.01, %v3428_v22  ;;  %v3431_v16 = vmul.f32 0.6931472, %v6077_v20  ;;  %v3157_v3 = vmin.f32 %v8623_v36, 20.0  ;;  %vm3085_vm4 = vcmp.gt.f32.partialorder %v8465_v39, 20.0 }
 0x2b9   :  { %v3156_v12 = vmin.f32 %v8627_v45, 20.0  ;;  %6088 = vlog2.f32 %v3456_v35  ;;  %vm3086_vm5 = vcmp.gt.f32.partialorder %v8521_v18, 20.0  ;;  %v3443_v47 = vmul.f32 %v8584_v27, %v3442_v46 }
 0x2ba   :  { %v3980_v21 = vsel %vm3084_vm0, %v8460_v43, %v3916_v55  ;;  %v3437_v13 = vsel %vm3436_vm2, %v3434_v63, %v3431_v16  ;;  %v3451_v6 = vadd.f32 1.0, %v3450_v42  ;;  %v3459_v40 = vmul.f32 -0.5, %v8620_v56 }
 0x2bb   :  { %5575 = vmatprep.mubr.msk.f32.mxu1 %vm2432_vm3, %v3980_v21  ;;  %v3238_v7 = vmul.f32 1.442695, %v3156_v12  ;;  %v3917_v8 = vmul.f32 0.01, %v3437_v13  ;;  %v3465_v43 = vadd.f32 1.0, %v8633_v48  ;;  %v5480_v17 = vpop.f32.mrb[18].mxu1 }
 0x2bc   :  { %v3240_v25 = vmul.f32 1.442695, %v3157_v3  ;;  %vm3445_vm6 = vcmp.lt.f32.partialorder %v3444_v19, 0.0004427343  ;;  %v8650_v2 = vadd.f32 %v5480_v17, %v8304_v11  ;;  %v2791_v50 = vpop.f32.mrb[19].mxu1  ;;  %v3452_v32 = vmul.f32 %v8596_v1, %v3451_v6 }
 0x2bd   :  { %v6081_v57 = vpop.eup %6080  ;;  %6090 = vpow2.f32 %v3238_v7  ;;  %v3981_v59 = vsel %vm3085_vm4, %v8455_v26, %v3917_v8  ;;  %v3453_v38 = vand.u32 2147483647, %v8596_v1  ;;  %v8657_v52 = vadd.f32 %v8304_v11, %v2791_v50 }
 0x2be   :  { %v3440_v23 = vmul.f32 0.6931472, %v6081_v57  ;;  %5576 = vmatmul.mubr.msk.f32.gmra.mrb[72].mxu1 %vm2432_vm3, %v3981_v59  ;;  %6092 = vlog2.f32 %v3465_v43  ;;  %v8654_v54 = vpop.eup %6082  ;;  %v3462_v39 = vand.u32 2147483647, %v8620_v56  ;;  %v3468_v26 = vmul.f32 -0.5, %v8633_v48 }
 0x2bf   :  { %v6085_v5 = vpop.eup %6084  ;;  %v8662_v14 = vmul.f32 100.0, %v8650_v2  ;;  %v3460_v0 = vadd.f32 1.0, %v3459_v40  ;;  %v3474_v61 = vadd.f32 1.0, %v8654_v54  ;;  %6094 = vpow2.f32 %v3240_v25 }
 0x2c0   :  { %v3446_v27 = vsel %vm3445_vm6, %v3443_v47, %v3440_v23  ;;  %v8666_v58 = vpop.eup %6086  ;;  %v8669_v15 = vmul.f32 100.0, %v8657_v52  ;;  %v3449_v33 = vmul.f32 0.6931472, %v6085_v5  ;;  %vm3087_vm7 = vcmp.gt.f32.partialorder %v8514_v28, 20.0 }
 0x2c1   :  { %v3918_v29 = vmul.f32 0.01, %v3446_v27  ;;  %v3159_v4 = vmin.f32 %v8662_v14, 20.0  ;;  %vm3454_vm8 = vcmp.lt.f32.partialorder %v3453_v38, 0.0004427343  ;;  %6096 = vlog2.f32 %v3474_v61 }
 0x2c2   :  { %v3158_v1 = vmin.f32 %v8669_v15, 20.0  ;;  %v3455_v31 = vsel %vm3454_vm8, %v3452_v32, %v3449_v33  ;;  %vm8678_vm9 = vcmp.lt.f32.partialorder %v3462_v39, 0.0004427343  ;;  %v3469_v46 = vadd.f32 1.0, %v3468_v26 }
 0x2c3   :  { %v3982_v41 = vsel %vm3086_vm5, %v8507_v37, %v3918_v29  ;;  %v6089_v20 = vpop.eup %6088  ;;  %v3244_v18 = vmul.f32 1.442695, %v3159_v4  ;;  %v5483_v37 = vpop.f32.mrb[20].mxu1  ;;  %v3919_v55 = vmul.f32 0.01, %v3455_v31  ;;  %v3461_v35 = vmul.f32 %v8620_v56, %v3460_v0 }
 0x2c4   :  { %5578 = vmatprep.mubr.msk.f32.mxu1 %vm2432_vm3, %v3982_v41  ;;  %v3483_v16 = vadd.f32 1.0, %v8666_v58  ;;  %v3242_v63 = vmul.f32 1.442695, %v3158_v1  ;;  %v8685_v19 = vadd.f32 %v5483_v37, %v8304_v11  ;;  %v2801_v42 = vpop.f32.mrb[21].mxu1  ;;  %v3458_v3 = vmul.f32 0.6931472, %v6089_v20 }
 0x2c5   :  { %v3477_v12 = vmul.f32 -0.5, %v8654_v54  ;;  %6098 = vpow2.f32 %v3244_v18  ;;  %v8689_v21 = vadd.f32 %v8304_v11, %v2801_v42  ;;  %v3983_v13 = vsel %vm3087_vm7, %v8502_v44, %v3919_v55 }
 0x2c6   :  { %v3471_v56 = vand.u32 2147483647, %v8633_v48  ;;  %6100 = vpow2.f32 %v3242_v63  ;;  %v8698_v7 = vmul.f32 100.0, %v8685_v19  ;;  %5579 = vmatmul.mubr.msk.f32.gmra.mrb[74].mxu1 %vm2432_vm3, %v3983_v13  ;;  %v3464_v8 = vsel %vm8678_vm9, %v3461_v35, %v3458_v3 }
 0x2c7   :  { %v8695_v57 = vpop.eup %6090  ;;  %vm3088_vm10 = vcmp.gt.f32.partialorder %v8557_v51, 20.0  ;;  %v8705_v23 = vmul.f32 100.0, %v8689_v21  ;;  %v3920_v44 = vmul.f32 0.01, %v3464_v8  ;;  %6102 = vlog2.f32 %v3483_v16 }
 0x2c8   :  { %v6093_v47 = vpop.eup %6092  ;;  %v3161_v28 = vmin.f32 %v8698_v7, 20.0  ;;  %v3470_v40 = vmul.f32 %v8633_v48, %v3469_v46  ;;  %v3478_v43 = vadd.f32 1.0, %v3477_v12  ;;  %vm3472_vm11 = vcmp.lt.f32.partialorder %v3471_v56, 0.0004427343 }
 0x2c9   :  { %v3467_v6 = vmul.f32 0.6931472, %v6093_v47  ;;  %v3160_v25 = vmin.f32 %v8705_v23, 20.0  ;;  %v3984_v17 = vsel %vm3088_vm10, %v8544_v30, %v3920_v44  ;;  %v3480_v59 = vand.u32 2147483647, %v8654_v54  ;;  %v8712_v50 = vpop.eup %6094 }
 0x2ca   :  { %v3248_v51 = vmul.f32 1.442695, %v3161_v28  ;;  %5581 = vmatprep.mubr.msk.f32.mxu1 %vm2432_vm3, %v3984_v17  ;;  %v3486_v38 = vmul.f32 -0.5, %v8666_v58  ;;  %v3492_v29 = vadd.f32 1.0, %v8695_v57  ;;  %vm3089_vm12 = vcmp.gt.f32.partialorder %v8550_v53, 20.0  ;;  %v5486_v26 = vpop.f32.mrb[22].mxu1 }
 0x2cb   :  { %v3473_v27 = vsel %vm3472_vm11, %v3470_v40, %v3467_v6  ;;  %v6097_v39 = vpop.eup %6096  ;;  %v3246_v48 = vmul.f32 1.442695, %v3160_v25  ;;  %v8719_v30 = vadd.f32 %v5486_v26, %v8304_v11  ;;  %v2811_v32 = vpop.f32.mrb[23].mxu1  ;;  %v3479_v61 = vmul.f32 %v8654_v54, %v3478_v43 }
 0x2cc   :  { %v3921_v5 = vmul.f32 0.01, %v3473_v27  ;;  %v3476_v0 = vmul.f32 0.6931472, %v6097_v39  ;;  %v3489_v41 = vand.u32 2147483647, %v8666_v58  ;;  %v8724_v33 = vadd.f32 %v8304_v11, %v2811_v32 }
 0x2cd   :  { %6104 = vpow2.f32 %v3246_v48  ;;  %vm3481_vm13 = vcmp.lt.f32.partialorder %v3480_v59, 0.0004427343  ;;  %v8728_v53 = vmul.f32 100.0, %v8719_v30  ;;  %v3487_v31 = vadd.f32 1.0, %v3486_v38 }
 0x2ce   :  { %v3985_v4 = vsel %vm3089_vm12, %v8535_v34, %v3921_v5  ;;  %v3482_v1 = vsel %vm3481_vm13, %v3479_v61, %v3476_v0  ;;  %6106 = vlog2.f32 %v3492_v29  ;;  %v8734_v54 = vmul.f32 100.0, %v8724_v33 }
 0x2cf   :  { %5582 = vmatmul.mubr.msk.f32.gmra.mrb[76].mxu1 %vm2432_vm3, %v3985_v4  ;;  %v8731_v22 = vpop.eup %6098  ;;  %6108 = vpow2.f32 %v3248_v51  ;;  %v3922_v46 = vmul.f32 0.01, %v3482_v1  ;;  %v3501_v20 = vadd.f32 1.0, %v8712_v50  ;;  %vm3090_vm14 = vcmp.gt.f32.partialorder %v8592_v49, 20.0 }
 0x2d0   :  { %v6101_v18 = vpop.eup %6100  ;;  %vm8738_vm15 = vcmp.lt.f32.partialorder %v3489_v41, 0.0004427343  ;;  %v3495_v37 = vmul.f32 -0.5, %v8695_v57  ;;  %v3163_v35 = vmin.f32 %v8728_v53, 20.0  ;;  %v3162_v16 = vmin.f32 %v8734_v54, 20.0 }
 0x2d1   :  { %v6103_v55 = vpop.eup %6102  ;;  %v3986_v63 = vsel %vm3090_vm14, %v8579_v24, %v3922_v46  ;;  %6110 = vlog2.f32 %v3501_v20  ;;  %v3488_v3 = vmul.f32 %v8666_v58, %v3487_v31  ;;  %v3504_v49 = vmul.f32 -0.5, %v8712_v50 }
 0x2d2   :  { %5584 = vmatprep.mubr.msk.f32.mxu1 %vm2432_vm3, %v3986_v63  ;;  %v3485_v42 = vmul.f32 0.6931472, %v6103_v55  ;;  %v3510_v12 = vadd.f32 1.0, %v6101_v18  ;;  %vm3091_vm0 = vcmp.gt.f32.partialorder %v8587_v62, 20.0  ;;  %v3250_v13 = vmul.f32 1.442695, %v3162_v16 }
 0x2d3   :  { %v3498_v56 = vand.u32 2147483647, %v8695_v57  ;;  %v3519_v8 = vadd.f32 1.0, %v8731_v22  ;;  %v3496_v44 = vadd.f32 1.0, %v3495_v37  ;;  %v3507_v28 = vand.u32 2147483647, %v8712_v50 }
 0x2d4   :  { %v5489_v47 = vpop.f32.mrb[24].mxu1  ;;  %v3491_v24 = vsel %vm8738_vm15, %v3488_v3, %v3485_v42  ;;  %v3513_v6 = vmul.f32 -0.5, %v6101_v18  ;;  %v3252_v40 = vmul.f32 1.442695, %v3163_v35  ;;  %6112 = vpow2.f32 %v3250_v13 }
 0x2d5   :  { %v8756_v58 = vadd.f32 %v5489_v47, %v8304_v11  ;;  %v2821_v43 = vpop.f32.mrb[25].mxu1  ;;  %v3923_v25 = vmul.f32 0.01, %v3491_v24  ;;  %v3505_v59 = vadd.f32 1.0, %v3504_v49  ;;  %6114 = vlog2.f32 %v3510_v12 }
 0x2d6   :  { %v8759_v17 = vadd.f32 %v8304_v11, %v2821_v43  ;;  %v3516_v51 = vand.u32 2147483647, %v6101_v18  ;;  %6116 = vlog2.f32 %v3519_v8  ;;  %v3522_v39 = vmul.f32 -0.5, %v8731_v22 }
 0x2d7   :  { %v8761_v27 = vpop.eup %6104  ;;  %v8764_v38 = vmul.f32 100.0, %v8756_v58  ;;  %v3987_v29 = vsel %vm3091_vm0, %v8575_v9, %v3923_v25  ;;  %vm3092_vm1 = vcmp.gt.f32.partialorder %v8627_v45, 20.0  ;;  %v3514_v26 = vadd.f32 1.0, %v3513_v6 }
 0x2d8   :  { %v6107_v48 = vpop.eup %6106  ;;  %v8772_v11 = vmul.f32 100.0, %v8759_v17  ;;  %5585 = vmatmul.mubr.msk.f32.gmra.mrb[78].mxu1 %vm2432_vm3, %v3987_v29  ;;  %v3528_v5 = vadd.f32 1.0, %v8761_v27  ;;  %vm3093_vm2 = vcmp.gt.f32.partialorder %v8623_v36, 20.0  ;;  %v3497_v0 = vmul.f32 %v8695_v57, %v3496_v44 }
 0x2d9   :  { %v8776_v32 = vpop.eup %6108  ;;  %v3165_v9 = vmin.f32 %v8764_v38, 20.0  ;;  %v3494_v62 = vmul.f32 0.6931472, %v6107_v48  ;;  %vm3499_vm4 = vcmp.lt.f32.partialorder %v3498_v56, 0.0004427343  ;;  %6118 = vpow2.f32 %v3252_v40 }
 0x2da   :  { %v3164_v61 = vmin.f32 %v8772_v11, 20.0  ;;  %v3506_v41 = vmul.f32 %v8712_v50, %v3505_v59  ;;  %vm8783_vm5 = vcmp.lt.f32.partialorder %v3507_v28, 0.0004427343  ;;  %vm8787_vm6 = vcmp.lt.f32.partialorder %v3516_v51, 0.0004427343 }
 0x2db   :  { %v6111_v1 = vpop.eup %6110  ;;  %v3500_v31 = vsel %vm3499_vm4, %v3497_v0, %v3494_v62  ;;  %v3523_v20 = vadd.f32 1.0, %v3522_v39  ;;  %6120 = vlog2.f32 %v3528_v5  ;;  %v3515_v55 = vmul.f32 %v6101_v18, %v3514_v26  ;;  %v8795_v50 = vld [vmem:[%s9902_s6] ss:$0 sm:$0xff] }
 0x2dc   :  { %v3254_v34 = vmul.f32 1.442695, %v3164_v61  ;;  %v5492_v57 = vpop.f32.mrb[26].mxu1  ;;  %v3924_v37 = vmul.f32 0.01, %v3500_v31  ;;  %v3537_v35 = vadd.f32 1.0, %v8776_v32 }
 0x2dd   :  { %v3256_v16 = vmul.f32 1.442695, %v3165_v9  ;;  %v8798_v63 = vadd.f32 %v8795_v50, %v5492_v57  ;;  %v2831_v42 = vpop.f32.mrb[27].mxu1  ;;  %v3503_v3 = vmul.f32 0.6931472, %v6111_v1  ;;  %v3531_v49 = vmul.f32 -0.5, %v8761_v27 }
 0x2de   :  { %vm3095_vm7 = vcmp.gt.f32.partialorder %v8662_v14, 20.0  ;;  %6122 = vpow2.f32 %v3254_v34  ;;  %v8803_v18 = vadd.f32 %v8795_v50, %v2831_v42  ;;  %v3988_v12 = vsel %vm3092_vm1, %v8614_v60, %v3924_v37  ;;  %v8809_v56 = vpop.eup %6112 }
 0x2df   :  { %v3525_v13 = vand.u32 2147483647, %v8731_v22  ;;  %v8812_v8 = vmul.f32 100.0, %v8798_v63  ;;  %5587 = vmatprep.mubr.msk.f32.mxu1 %vm2432_vm3, %v3988_v12  ;;  %v3509_v47 = vsel %vm8783_vm5, %v3506_v41, %v3503_v3  ;;  %6124 = vlog2.f32 %v3537_v35  ;;  %v6115_v44 = vpop.eup %6114 }
 0x2e0   :  { %v3540_v24 = vmul.f32 -0.5, %v8776_v32  ;;  %v8819_v28 = vmul.f32 100.0, %v8803_v18  ;;  %v3925_v60 = vmul.f32 0.01, %v3509_v47  ;;  %v3524_v45 = vmul.f32 %v8731_v22, %v3523_v20  ;;  %v6117_v40 = vpop.eup %6116 }
 0x2e1   :  { %v3546_v6 = vadd.f32 1.0, %v8809_v56  ;;  %6126 = vpow2.f32 %v3256_v16  ;;  %v3512_v43 = vmul.f32 0.6931472, %v6115_v44  ;;  %v3532_v25 = vadd.f32 1.0, %v3531_v49 }
 0x2e2   :  { %v3534_v59 = vand.u32 2147483647, %v8761_v27  ;;  %v3167_v51 = vmin.f32 %v8812_v8, 20.0  ;;  %v3166_v29 = vmin.f32 %v8819_v28, 20.0  ;;  %v3989_v39 = vsel %vm3093_vm2, %v8611_v10, %v3925_v60 }
 0x2e3   :  { %v3521_v48 = vmul.f32 0.6931472, %v6117_v40  ;;  %vm3094_vm8 = vcmp.gt.f32.partialorder %v8669_v15, 20.0  ;;  %5588 = vmatmul.mubr.msk.f32.gmra.mrb[80].mxu1 %vm2432_vm3, %v3989_v39  ;;  %v3518_v22 = vsel %vm8787_vm6, %v3515_v55, %v3512_v43  ;;  %vm3526_vm9 = vcmp.lt.f32.partialorder %v3525_v13, 0.0004427343  ;;  %v8833_v5 = vpop.eup %6118 }
 0x2e4   :  { %v3541_v26 = vadd.f32 1.0, %v3540_v24  ;;  %v3258_v9 = vmul.f32 1.442695, %v3166_v29  ;;  %v3926_v62 = vmul.f32 0.01, %v3518_v22  ;;  %6128 = vlog2.f32 %v3546_v6 }
 0x2e5   :  { %v3527_v0 = vsel %vm3526_vm9, %v3524_v45, %v3521_v48  ;;  %v6121_v61 = vpop.eup %6120  ;;  %v3533_v10 = vmul.f32 %v8761_v27, %v3532_v25  ;;  %vm8836_vm10 = vcmp.lt.f32.partialorder %v3534_v59, 0.0004427343  ;;  %v3543_v4 = vand.u32 2147483647, %v8776_v32 }
 0x2e6   :  { %v3927_v41 = vmul.f32 0.01, %v3527_v0  ;;  %v3260_v1 = vmul.f32 1.442695, %v3167_v51  ;;  %6130 = vpow2.f32 %v3258_v9  ;;  %v5495_v31 = vpop.f32.mrb[28].mxu1  ;;  %v3990_v46 = vsel %vm3094_vm8, %v8657_v52, %v3926_v62 }
 0x2e7   :  { %v3530_v20 = vmul.f32 0.6931472, %v6121_v61  ;;  %v8845_v34 = vadd.f32 %v8795_v50, %v5495_v31  ;;  %v2841_v57 = vpop.f32.mrb[29].mxu1  ;;  %5590 = vmatprep.mubr.msk.f32.mxu1 %vm2432_vm3, %v3990_v46  ;;  %v3549_v37 = vmul.f32 -0.5, %v8809_v56  ;;  %v3555_v55 = vadd.f32 1.0, %v8833_v5 }
 0x2e8   :  { %v3991_v27 = vsel %vm3095_vm7, %v8650_v2, %v3927_v41  ;;  %v8853_v35 = vpop.eup %6122  ;;  %vm3096_vm11 = vcmp.gt.f32.partialorder %v8705_v23, 20.0  ;;  %v8857_v52 = vadd.f32 %v8795_v50, %v2841_v57  ;;  %v3542_v16 = vmul.f32 %v8776_v32, %v3541_v26 }
 0x2e9   :  { %5591 = vmatmul.mubr.msk.f32.gmra.mrb[82].mxu1 %vm2432_vm3, %v3991_v27  ;;  %v3536_v15 = vsel %vm8836_vm10, %v3533_v10, %v3530_v20  ;;  %v6125_v14 = vpop.eup %6124  ;;  %v8864_v2 = vmul.f32 100.0, %v8845_v34  ;;  %vm3544_vm12 = vcmp.lt.f32.partialorder %v3543_v4, 0.0004427343  ;;  %6132 = vlog2.f32 %v3555_v55 }
 0x2ea   :  { %v3928_v42 = vmul.f32 0.01, %v3536_v15  ;;  %6134 = vpow2.f32 %v3260_v1  ;;  %v8867_v23 = vmul.f32 100.0, %v8857_v52  ;;  %v3539_v3 = vmul.f32 0.6931472, %v6125_v14 }
 0x2eb   :  { %v3552_v49 = vand.u32 2147483647, %v8809_v56  ;;  %v8870_v12 = vpop.eup %6126  ;;  %v3550_v47 = vadd.f32 1.0, %v3549_v37  ;;  %v3558_v32 = vmul.f32 -0.5, %v8833_v5  ;;  %v3564_v24 = vadd.f32 1.0, %v8853_v35 }
 0x2ec   :  { %v3992_v13 = vsel %vm3096_vm11, %v8689_v21, %v3928_v42  ;;  %v3169_v44 = vmin.f32 %v8864_v2, 20.0  ;;  %v3168_v60 = vmin.f32 %v8867_v23, 20.0  ;;  %v3545_v45 = vsel %vm3544_vm12, %v3542_v16, %v3539_v3 }
 0x2ed   :  { %5593 = vmatprep.mubr.msk.f32.mxu1 %vm2432_vm3, %v3992_v13  ;;  %v3929_v6 = vmul.f32 0.01, %v3545_v45  ;;  %6136 = vlog2.f32 %v3564_v24  ;;  %vm3097_vm13 = vcmp.gt.f32.partialorder %v8698_v7, 20.0  ;;  %vm8879_vm14 = vcmp.lt.f32.partialorder %v3552_v49, 0.0004427343 }
 0x2ee   :  { %v6129_v40 = vpop.eup %6128  ;;  %v3262_v43 = vmul.f32 1.442695, %v3168_v60  ;;  %v3573_v25 = vadd.f32 1.0, %v8870_v12  ;;  %v3551_v39 = vmul.f32 %v8809_v56, %v3550_v47  ;;  %v3559_v48 = vadd.f32 1.0, %v3558_v32 }
 0x2ef   :  { %v5498_v59 = vpop.f32.mrb[30].mxu1  ;;  %v3993_v51 = vsel %vm3097_vm13, %v8685_v19, %v3929_v6  ;;  %v3548_v29 = vmul.f32 0.6931472, %v6129_v40  ;;  %vm3099_vm15 = vcmp.gt.f32.partialorder %v8728_v53, 20.0  ;;  %v3264_v26 = vmul.f32 1.442695, %v3169_v44 }
 0x2f0   :  { %v8886_v22 = vpop.eup %6130  ;;  %6138 = vpow2.f32 %v3262_v43  ;;  %v8890_v7 = vadd.f32 %v8795_v50, %v5498_v59  ;;  %v2851_v9 = vpop.f32.mrb[31].mxu1  ;;  %5594 = vmatmul.mubr.msk.f32.gmra.mrb[84].mxu1 %vm2432_vm3, %v3993_v51  ;;  %v3567_v62 = vmul.f32 -0.5, %v8853_v35  ;;  %v3561_v0 = vand.u32 2147483647, %v8833_v5 }
 0x2f1   :  { %v8895_v19 = vadd.f32 %v8795_v50, %v2851_v9  ;;  %v3554_v56 = vsel %vm8879_vm14, %v3551_v39, %v3548_v29  ;;  %6140 = vlog2.f32 %v3573_v25  ;;  %v3570_v10 = vand.u32 2147483647, %v8853_v35 }
 0x2f2   :  { %v8901_v61 = vmul.f32 100.0, %v8890_v7  ;;  %v3930_v41 = vmul.f32 0.01, %v3554_v56  ;;  %v3576_v36 = vmul.f32 -0.5, %v8870_v12  ;;  %vm3098_vm0 = vcmp.gt.f32.partialorder %v8734_v54, 20.0 }
 0x2f3   :  { %v6133_v4 = vpop.eup %6132  ;;  %v8907_v1 = vmul.f32 100.0, %v8895_v19  ;;  %v3560_v31 = vmul.f32 %v8833_v5, %v3559_v48  ;;  %v3582_v46 = vadd.f32 1.0, %v8886_v22  ;;  %vm3100_vm1 = vcmp.gt.f32.partialorder %v8772_v11, 20.0 }
 0x2f4   :  { %v8911_v20 = vpop.eup %6134  ;;  %6142 = vpow2.f32 %v3264_v26  ;;  %v3994_v57 = vsel %vm3098_vm0, %v8724_v33, %v3930_v41  ;;  %v3557_v27 = vmul.f32 0.6931472, %v6133_v4  ;;  %v3568_v37 = vadd.f32 1.0, %v3567_v62 }
 0x2f5   :  { %v3171_v55 = vmin.f32 %v8901_v61, 20.0  ;;  %v3170_v54 = vmin.f32 %v8907_v1, 20.0  ;;  %5596 = vmatprep.mubr.msk.f32.mxu1 %vm2432_vm3, %v3994_v57  ;;  %vm3562_vm2 = vcmp.lt.f32.partialorder %v3561_v0, 0.0004427343  ;;  %6144 = vlog2.f32 %v3582_v46 }
 0x2f6   :  { %v3563_v5 = vsel %vm3562_vm2, %v3560_v31, %v3557_v27  ;;  %vm8918_vm4 = vcmp.lt.f32.partialorder %v3570_v10, 0.0004427343  ;;  %v3577_v16 = vadd.f32 1.0, %v3576_v36  ;;  %v3585_v14 = vmul.f32 -0.5, %v8886_v22 }
 0x2f7   :  { %v6137_v42 = vpop.eup %6136  ;;  %v3266_v33 = vmul.f32 1.442695, %v3170_v54  ;;  %v5501_v3 = vpop.f32.mrb[32].mxu1  ;;  %v3931_v49 = vmul.f32 0.01, %v3563_v5  ;;  %v3591_v13 = vadd.f32 1.0, %v8911_v20  ;;  %v3569_v44 = vmul.f32 %v8853_v35, %v3568_v37 }
 0x2f8   :  { %vm3101_vm5 = vcmp.gt.f32.partialorder %v8764_v38, 20.0  ;;  %v8926_v47 = vadd.f32 %v8795_v50, %v5501_v3  ;;  %v2861_v32 = vpop.f32.mrb[33].mxu1  ;;  %v3566_v24 = vmul.f32 0.6931472, %v6137_v42  ;;  %v3579_v60 = vand.u32 2147483647, %v8870_v12 }
 0x2f9   :  { %v3268_v45 = vmul.f32 1.442695, %v3171_v55  ;;  %6146 = vpow2.f32 %v3266_v33  ;;  %v8931_v6 = vadd.f32 %v8795_v50, %v2861_v32  ;;  %v3995_v40 = vsel %vm3099_vm15, %v8719_v30, %v3931_v49 }
 0x2fa   :  { %v8936_v43 = vpop.eup %6138  ;;  %v8939_v21 = vmul.f32 100.0, %v8926_v47  ;;  %5597 = vmatmul.mubr.msk.f32.gmra.mrb[86].mxu1 %vm2432_vm3, %v3995_v40  ;;  %v3572_v35 = vsel %vm8918_vm4, %v3569_v44, %v3566_v24  ;;  %v3588_v25 = vand.u32 2147483647, %v8886_v22  ;;  %6148 = vlog2.f32 %v3591_v13 }
 0x2fb   :  { %v6141_v59 = vpop.eup %6140  ;;  %v8946_v51 = vmul.f32 100.0, %v8931_v6  ;;  %v3932_v29 = vmul.f32 0.01, %v3572_v35  ;;  %v3586_v53 = vadd.f32 1.0, %v3585_v14  ;;  %v3600_v30 = vadd.f32 1.0, %v8936_v43 }
 0x2fc   :  { %v3173_v39 = vmin.f32 %v8939_v21, 20.0  ;;  %v3575_v48 = vmul.f32 0.6931472, %v6141_v59  ;;  %v3578_v26 = vmul.f32 %v8870_v12, %v3577_v16  ;;  %v3594_v9 = vmul.f32 -0.5, %v8911_v20 }
 0x2fd   :  { %6150 = vpow2.f32 %v3268_v45  ;;  %v3172_v62 = vmin.f32 %v8946_v51, 20.0  ;;  %v3996_v56 = vsel %vm3100_vm1, %v8759_v17, %v3932_v29  ;;  %vm3580_vm6 = vcmp.lt.f32.partialorder %v3579_v60, 0.0004427343 }
 0x2fe   :  { %v8956_v0 = vpop.eup %6142  ;;  %v3272_v41 = vmul.f32 1.442695, %v3173_v39  ;;  %5599 = vmatprep.mubr.msk.f32.mxu1 %vm2432_vm3, %v3996_v56  ;;  %v3581_v36 = vsel %vm3580_vm6, %v3578_v26, %v3575_v48  ;;  %vm8959_vm7 = vcmp.lt.f32.partialorder %v3588_v25, 0.0004427343  ;;  %6152 = vlog2.f32 %v3600_v30 }
 0x2ff   :  { %v5504_v10 = vpop.f32.mrb[34].mxu1  ;;  %v6145_v12 = vpop.eup %6144  ;;  %v3270_v31 = vmul.f32 1.442695, %v3172_v62  ;;  %v3933_v17 = vmul.f32 0.01, %v3581_v36  ;;  %v3587_v57 = vmul.f32 %v8886_v22, %v3586_v53  ;;  %v3595_v55 = vadd.f32 1.0, %v3594_v9 }
 0x300   :  { %v8964_v46 = vadd.f32 %v8795_v50, %v5504_v10  ;;  %v2871_v11 = vpop.f32.mrb[35].mxu1  ;;  %v3584_v37 = vmul.f32 0.6931472, %v6145_v12  ;;  %v3597_v54 = vand.u32 2147483647, %v8911_v20  ;;  %v3603_v16 = vmul.f32 -0.5, %v8936_v43 }
 0x301   :  { %v8968_v27 = vadd.f32 %v8795_v50, %v2871_v11  ;;  %6154 = vpow2.f32 %v3270_v31  ;;  %v3997_v15 = vsel %vm3101_vm5, %v8756_v58, %v3933_v17  ;;  %v3609_v42 = vadd.f32 1.0, %v8956_v0 }
 0x302   :  { %v8972_v5 = vmul.f32 100.0, %v8964_v46  ;;  %5600 = vmatmul.mubr.msk.f32.gmra.mrb[88].mxu1 %vm2432_vm3, %v3997_v15  ;;  %v3590_v22 = vsel %vm8959_vm7, %v3587_v57, %v3584_v37  ;;  %6156 = vpow2.f32 %v3272_v41  ;;  %vm3102_vm8 = vcmp.gt.f32.partialorder %v8819_v28, 20.0 }
 0x303   :  { %v8979_v14 = vmul.f32 100.0, %v8968_v27  ;;  %v8985_v33 = vpop.eup %6146  ;;  %v3934_v49 = vmul.f32 0.01, %v3590_v22  ;;  %vm8990_vm9 = vcmp.lt.f32.partialorder %v3597_v54, 0.0004427343  ;;  %6158 = vlog2.f32 %v3609_v42 }
 0x304   :  { %v3175_v3 = vmin.f32 %v8972_v5, 20.0  ;;  %v6149_v38 = vpop.eup %6148  ;;  %v3596_v44 = vmul.f32 %v8911_v20, %v3595_v55  ;;  %v3604_v60 = vadd.f32 1.0, %v3603_v16  ;;  %v3606_v35 = vand.u32 2147483647, %v8936_v43 }
 0x305   :  { %v3174_v58 = vmin.f32 %v8979_v14, 20.0  ;;  %v3998_v32 = vsel %vm3102_vm8, %v8803_v18, %v3934_v49  ;;  %v3593_v24 = vmul.f32 0.6931472, %v6149_v38  ;;  %v3618_v28 = vadd.f32 1.0, %v8985_v33 }
 0x306   :  { %5602 = vmatprep.mubr.msk.f32.mxu1 %vm2432_vm3, %v3998_v32  ;;  %v3276_v59 = vmul.f32 1.442695, %v3175_v3  ;;  %v3612_v18 = vmul.f32 -0.5, %v8956_v0  ;;  %vm3103_vm10 = vcmp.gt.f32.partialorder %v8812_v8, 20.0  ;;  %v3605_v9 = vmul.f32 %v8936_v43, %v3604_v60 }
 0x307   :  { %v3274_v45 = vmul.f32 1.442695, %v3174_v58  ;;  %v5507_v40 = vpop.f32.mrb[36].mxu1  ;;  %v8999_v25 = vpop.eup %6150  ;;  %v3599_v53 = vsel %vm8990_vm9, %v3596_v44, %v3593_v24  ;;  %vm3607_vm11 = vcmp.lt.f32.partialorder %v3606_v35, 0.0004427343  ;;  %v3621_v4 = vmul.f32 -0.5, %v8985_v33 }
 0x308   :  { %v2881_v29 = vpop.f32.mrb[37].mxu1  ;;  %v6153_v30 = vpop.eup %6152  ;;  %v3935_v39 = vmul.f32 0.01, %v3599_v53  ;;  %v9009_v48 = vadd.f32 %v8795_v50, %v5507_v40  ;;  %v3627_v8 = vadd.f32 1.0, %v8999_v25  ;;  %v3613_v36 = vadd.f32 1.0, %v3612_v18 }
 0x309   :  { %6160 = vpow2.f32 %v3274_v45  ;;  %v9006_v20 = vadd.f32 %v8795_v50, %v2881_v29  ;;  %v3602_v26 = vmul.f32 0.6931472, %v6153_v30  ;;  %v3615_v31 = vand.u32 2147483647, %v8956_v0 }
 0x30a   :  { %6162 = vlog2.f32 %v3618_v28  ;;  %v3999_v56 = vsel %vm3103_vm10, %v8798_v63, %v3935_v39  ;;  %vm3104_vm12 = vcmp.gt.f32.partialorder %v8867_v23, 20.0  ;;  %v9027_v63 = vmul.f32 100.0, %v9009_v48 }
 0x30b   :  { %v9013_v62 = vmul.f32 100.0, %v9006_v20  ;;  %v9017_v41 = vpop.eup %6154  ;;  %6164 = vpow2.f32 %v3276_v59  ;;  %5603 = vmatmul.mubr.msk.f32.gmra.mrb[90].mxu1 %vm2432_vm3, %v3999_v56  ;;  %v3608_v10 = vsel %vm3607_vm11, %v3605_v9, %v3602_v26  ;;  %v3614_v15 = vmul.f32 %v8956_v0, %v3613_v36 }
 0x30c   :  { %v3936_v12 = vmul.f32 0.01, %v3608_v10  ;;  %v9023_v11 = vpop.eup %6156  ;;  %6166 = vlog2.f32 %v3627_v8  ;;  %v3636_v55 = vadd.f32 1.0, %v9017_v41  ;;  %v3622_v16 = vadd.f32 1.0, %v3621_v4 }
 0x30d   :  { %v3176_v43 = vmin.f32 %v9013_v62, 20.0  ;;  %v6159_v17 = vpop.eup %6158  ;;  %vm3616_vm13 = vcmp.lt.f32.partialorder %v3615_v31, 0.0004427343  ;;  %v3630_v23 = vmul.f32 -0.5, %v8999_v25  ;;  %v3645_v42 = vadd.f32 1.0, %v9023_v11 }
 0x30e   :  { %v4000_v37 = vsel %vm3104_vm12, %v8857_v52, %v3936_v12  ;;  %v3611_v54 = vmul.f32 0.6931472, %v6159_v17  ;;  %v3177_v3 = vmin.f32 %v9027_v63, 20.0  ;;  %v3624_v52 = vand.u32 2147483647, %v8985_v33 }
 0x30f   :  { %v3278_v57 = vmul.f32 1.442695, %v3176_v43  ;;  %5605 = vmatprep.mubr.msk.f32.mxu1 %vm2432_vm3, %v4000_v37  ;;  %6168 = vlog2.f32 %v3636_v55  ;;  %v3633_v32 = vand.u32 2147483647, %v8999_v25  ;;  %vm3105_vm14 = vcmp.gt.f32.partialorder %v8864_v2, 20.0 }
 0x310   :  { %v3617_v38 = vsel %vm3616_vm13, %v3614_v15, %v3611_v54  ;;  %v3623_v44 = vmul.f32 %v8985_v33, %v3622_v16  ;;  %v3639_v60 = vmul.f32 -0.5, %v9017_v41  ;;  %v3631_v35 = vadd.f32 1.0, %v3630_v23 }
 0x311   :  { %6170 = vpow2.f32 %v3278_v57  ;;  %v3937_v0 = vmul.f32 0.01, %v3617_v38  ;;  %vm3106_vm15 = vcmp.gt.f32.partialorder %v8907_v1, 20.0  ;;  %vm3625_vm0 = vcmp.lt.f32.partialorder %v3624_v52, 0.0004427343 }
 0x312   :  { %v5510_v22 = vpop.f32.mrb[38].mxu1  ;;  %6172 = vlog2.f32 %v3645_v42  ;;  %v3648_v2 = vmul.f32 -0.5, %v9023_v11  ;;  %v3280_v33 = vmul.f32 1.442695, %v3177_v3  ;;  %vm9056_vm1 = vcmp.lt.f32.partialorder %v3633_v32, 0.0004427343 }
 0x313   :  { %v2891_v49 = vpop.f32.mrb[39].mxu1  ;;  %v9037_v58 = vpop.eup %6160  ;;  %v4001_v45 = vsel %vm3105_vm14, %v8845_v34, %v3937_v0  ;;  %v3640_v26 = vadd.f32 1.0, %v3639_v60  ;;  %v3642_v9 = vand.u32 2147483647, %v9017_v41  ;;  %v9062_v56 = vadd.f32 %v8795_v50, %v5510_v22 }
 0x314   :  { %v9040_v13 = vadd.f32 %v8795_v50, %v2891_v49  ;;  %v6163_v24 = vpop.eup %6162  ;;  %v3654_v28 = vadd.f32 1.0, %v9037_v58  ;;  %5606 = vmatmul.mubr.msk.f32.gmra.mrb[92].mxu1 %vm2432_vm3, %v4001_v45  ;;  %v3632_v36 = vmul.f32 %v8999_v25, %v3631_v35  ;;  %v3649_v31 = vadd.f32 1.0, %v3648_v2 }
 0x315   :  { %v3620_v40 = vmul.f32 0.6931472, %v6163_v24  ;;  %v9048_v59 = vpop.eup %6164  ;;  %v3651_v17 = vand.u32 2147483647, %v9023_v11  ;;  %vm3107_vm2 = vcmp.gt.f32.partialorder %v8901_v61, 20.0  ;;  %v3657_v25 = vmul.f32 -0.5, %v9037_v58 }
 0x316   :  { %v9052_v29 = vmul.f32 100.0, %v9040_v13  ;;  %6174 = vlog2.f32 %v3654_v28  ;;  %v6167_v18 = vpop.eup %6166  ;;  %v3663_v4 = vadd.f32 1.0, %v9048_v59  ;;  %vm3109_vm4 = vcmp.gt.f32.partialorder %v8939_v21, 20.0 }
 0x317   :  { %v3626_v53 = vsel %vm3625_vm0, %v3623_v44, %v3620_v40  ;;  %v3629_v10 = vmul.f32 0.6931472, %v6167_v18  ;;  %6176 = vpow2.f32 %v3280_v33  ;;  %v3641_v1 = vmul.f32 %v9017_v41, %v3640_v26 }
 0x318   :  { %v3938_v39 = vmul.f32 0.01, %v3626_v53  ;;  %v3178_v43 = vmin.f32 %v9052_v29, 20.0  ;;  %6178 = vlog2.f32 %v3663_v4  ;;  %v9081_v54 = vmul.f32 100.0, %v9062_v56 }
 0x319   :  { %v5513_v30 = vpop.f32.mrb[40].mxu1  ;;  %v3635_v57 = vsel %vm9056_vm1, %v3632_v36, %v3629_v10  ;;  %v6169_v37 = vpop.eup %6168  ;;  %vm3643_vm5 = vcmp.lt.f32.partialorder %v3642_v9, 0.0004427343  ;;  %v3650_v3 = vmul.f32 %v9023_v11, %v3649_v31  ;;  %vm9090_vm6 = vcmp.lt.f32.partialorder %v3651_v17, 0.0004427343 }
 0x31a   :  { %v2901_v8 = vpop.f32.mrb[41].mxu1  ;;  %v4002_v12 = vsel %vm3106_vm15, %v8895_v19, %v3938_v39  ;;  %v3939_v55 = vmul.f32 0.01, %v3635_v57  ;;  %v3638_v16 = vmul.f32 0.6931472, %v6169_v37  ;;  %v3658_v0 = vadd.f32 1.0, %v3657_v25 }
 0x31b   :  { %5608 = vmatprep.mubr.msk.f32.mxu1 %vm2432_vm3, %v4002_v12  ;;  %v9078_v19 = vpop.eup %6170  ;;  %v9084_v15 = vadd.f32 %v8795_v50, %v2901_v8  ;;  %v3282_v23 = vmul.f32 1.442695, %v3178_v43  ;;  %v3666_v32 = vmul.f32 -0.5, %v9048_v59  ;;  %v3660_v60 = vand.u32 2147483647, %v9037_v58 }
 0x31c   :  { %v6173_v22 = vpop.eup %6172  ;;  %v4003_v42 = vsel %vm3107_vm2, %v8890_v7, %v3939_v55  ;;  %v3644_v38 = vsel %vm3643_vm5, %v3641_v1, %v3638_v16  ;;  %v3672_v7 = vadd.f32 1.0, %v9078_v19  ;;  %vm3108_vm7 = vcmp.gt.f32.partialorder %v8946_v51, 20.0 }
 0x31d   :  { %5609 = vmatmul.mubr.msk.f32.gmra.mrb[94].mxu1 %vm2432_vm3, %v4003_v42  ;;  %v3647_v52 = vmul.f32 0.6931472, %v6173_v22  ;;  %v3940_v44 = vmul.f32 0.01, %v3644_v38  ;;  %v3179_v11 = vmin.f32 %v9081_v54, 20.0  ;;  %v9101_v45 = vmul.f32 100.0, %v9084_v15 }
 0x31e   :  { %6180 = vpow2.f32 %v3282_v23  ;;  %v9106_v35 = vadd.f32 %v8795_v50, %v5513_v30  ;;  %v3659_v53 = vmul.f32 %v9037_v58, %v3658_v0  ;;  %v3667_v34 = vadd.f32 1.0, %v3666_v32 }
 0x31f   :  { %v3653_v40 = vsel %vm9090_vm6, %v3650_v3, %v3647_v52  ;;  %v4004_v28 = vsel %vm3108_vm7, %v8931_v6, %v3940_v44  ;;  %vm3661_vm8 = vcmp.lt.f32.partialorder %v3660_v60, 0.0004427343  ;;  %v3669_v30 = vand.u32 2147483647, %v9048_v59 }
 0x320   :  { %v6175_v61 = vpop.eup %6174  ;;  %v3941_v2 = vmul.f32 0.01, %v3653_v40  ;;  %5611 = vmatprep.mubr.msk.f32.mxu1 %vm2432_vm3, %v4004_v28  ;;  %6182 = vlog2.f32 %v3672_v7  ;;  %v3284_v26 = vmul.f32 1.442695, %v3179_v11  ;;  %v3180_v9 = vmin.f32 %v9101_v45, 20.0 }
 0x321   :  { %v5516_v49 = vpop.f32.mrb[42].mxu1  ;;  %v3656_v51 = vmul.f32 0.6931472, %v6175_v61  ;;  %v9118_v6 = vpop.eup %6176  ;;  %vm3110_vm9 = vcmp.gt.f32.partialorder %v8979_v14, 20.0  ;;  %v9124_v36 = vmul.f32 100.0, %v9106_v35  ;;  %v3668_v12 = vmul.f32 %v9048_v59, %v3667_v34 }
 0x322   :  { %v2911_v24 = vpop.f32.mrb[43].mxu1  ;;  %v9110_v33 = vadd.f32 %v8795_v50, %v5516_v49  ;;  %v4005_v39 = vsel %vm3109_vm4, %v8926_v47, %v3941_v2  ;;  %v6179_v58 = vpop.eup %6178  ;;  %v3675_v31 = vmul.f32 -0.5, %v9078_v19  ;;  %vm3670_vm10 = vcmp.lt.f32.partialorder %v3669_v30, 0.0004427343 }
 0x323   :  { %5612 = vmatmul.mubr.msk.f32.gmra.mrb[96].mxu1 %vm2432_vm3, %v4005_v39  ;;  %v3662_v10 = vsel %vm3661_vm8, %v3659_v53, %v3656_v51  ;;  %v9127_v47 = vadd.f32 %v8795_v50, %v2911_v24  ;;  %v3665_v43 = vmul.f32 0.6931472, %v6179_v58  ;;  %v3681_v14 = vadd.f32 1.0, %v9118_v6 }
 0x324   :  { %v3942_v21 = vmul.f32 0.01, %v3662_v10  ;;  %v9130_v4 = vmul.f32 100.0, %v9110_v33  ;;  %6184 = vpow2.f32 %v3284_v26  ;;  %v3286_v57 = vmul.f32 1.442695, %v3180_v9 }
 0x325   :  { %v3671_v55 = vsel %vm3670_vm10, %v3668_v12, %v3665_v43  ;;  %v3181_v1 = vmin.f32 %v9124_v36, 20.0  ;;  %v9142_v59 = vmul.f32 100.0, %v9127_v47  ;;  %vm3111_vm11 = vcmp.gt.f32.partialorder %v8972_v5, 20.0 }
 0x326   :  { %v4006_v17 = vsel %vm3110_vm9, %v8968_v27, %v3942_v21  ;;  %v3943_v22 = vmul.f32 0.01, %v3671_v55  ;;  %v3183_v23 = vmin.f32 %v9130_v4, 20.0  ;;  %v3676_v42 = vadd.f32 1.0, %v3675_v31 }
 0x327   :  { %v5519_v18 = vpop.f32.mrb[44].mxu1  ;;  %5614 = vmatprep.mubr.msk.f32.mxu1 %vm2432_vm3, %v4006_v17  ;;  %v3678_v38 = vand.u32 2147483647, %v9078_v19  ;;  %6186 = vlog2.f32 %v3681_v14  ;;  %v3288_v24 = vmul.f32 1.442695, %v3181_v1  ;;  %v3182_v44 = vmin.f32 %v9142_v59, 20.0 }
 0x328   :  { %v2921_v8 = vpop.f32.mrb[45].mxu1  ;;  %v9137_v25 = vadd.f32 %v8795_v50, %v5519_v18  ;;  %v9149_v3 = vpop.eup %6180  ;;  %v4007_v49 = vsel %vm3111_vm11, %v8964_v46, %v3943_v22  ;;  %6188 = vpow2.f32 %v3286_v57  ;;  %v3677_v11 = vmul.f32 %v9078_v19, %v3676_v42 }
 0x329   :  { %v9145_v16 = vadd.f32 %v8795_v50, %v2921_v8  ;;  %5615 = vmatmul.mubr.msk.f32.gmra.mrb[98].mxu1 %vm2432_vm3, %v4007_v49  ;;  %v3684_v40 = vmul.f32 -0.5, %v9118_v6  ;;  %v3292_v28 = vmul.f32 1.442695, %v3183_v23  ;;  %vm3679_vm12 = vcmp.lt.f32.partialorder %v3678_v38, 0.0004427343 }
 0x32a   :  { %v9157_v52 = vmul.f32 100.0, %v9137_v25  ;;  %v6183_v32 = vpop.eup %6182  ;;  %v3690_v18 = vadd.f32 1.0, %v9149_v3  ;;  %6190 = vpow2.f32 %v3288_v24  ;;  %v3290_v39 = vmul.f32 1.442695, %v3182_v44 }
 0x32b   :  { %v9165_v60 = vmul.f32 100.0, %v9145_v16  ;;  %v3674_v61 = vmul.f32 0.6931472, %v6183_v32  ;;  %vm3112_vm13 = vcmp.gt.f32.partialorder %v9013_v62, 20.0  ;;  %v3685_v58 = vadd.f32 1.0, %v3684_v40 }
 0x32c   :  { %v5522_v37 = vpop.f32.mrb[46].mxu1  ;;  %v3185_v51 = vmin.f32 %v9157_v52, 20.0  ;;  %6192 = vpow2.f32 %v3292_v28  ;;  %v3687_v31 = vand.u32 2147483647, %v9118_v6  ;;  %v3693_v38 = vmul.f32 -0.5, %v9149_v3 }
 0x32d   :  { %v2931_v27 = vpop.f32.mrb[47].mxu1  ;;  %v9152_v41 = vadd.f32 %v8795_v50, %v5522_v37  ;;  %v3680_v34 = vsel %vm3679_vm12, %v3677_v11, %v3674_v61  ;;  %v3184_v9 = vmin.f32 %v9165_v60, 20.0  ;;  %6194 = vlog2.f32 %v3690_v18 }
 0x32e   :  { %v9160_v0 = vadd.f32 %v8795_v50, %v2931_v27  ;;  %v3944_v19 = vmul.f32 0.01, %v3680_v34  ;;  %v9183_v26 = vpop.eup %6184  ;;  %v3296_v17 = vmul.f32 1.442695, %v3185_v51  ;;  %6196 = vpow2.f32 %v3290_v39 }
 0x32f   :  { %v9173_v2 = vmul.f32 100.0, %v9152_v41  ;;  %v3294_v27 = vmul.f32 1.442695, %v3184_v9  ;;  %v3686_v42 = vmul.f32 %v9118_v6, %v3685_v58  ;;  %vm3688_vm14 = vcmp.lt.f32.partialorder %v3687_v31, 0.0004427343 }
 0x330   :  { %v9177_v53 = vmul.f32 100.0, %v9160_v0  ;;  %v4008_v12 = vsel %vm3112_vm13, %v9006_v20, %v3944_v19  ;;  %v3699_v20 = vadd.f32 1.0, %v9183_v26  ;;  %vm3113_vm15 = vcmp.gt.f32.partialorder %v9027_v63, 20.0 }
 0x331   :  { %v5525_v5 = vpop.f32.mrb[48].mxu1  ;;  %v3187_v21 = vmin.f32 %v9173_v2, 20.0  ;;  %5617 = vmatprep.mubr.msk.f32.mxu1 %vm2432_vm3, %v4008_v12  ;;  %v6187_v57 = vpop.eup %6186  ;;  %v3696_v28 = vand.u32 2147483647, %v9149_v3  ;;  %v3694_v39 = vadd.f32 1.0, %v3693_v38  ;;  %v3702_v19 = vmul.f32 -0.5, %v9183_v26 }
 0x332   :  { %v2941_v46 = vpop.f32.mrb[49].mxu1  ;;  %v9168_v7 = vadd.f32 %v8795_v50, %v5525_v5  ;;  %v3186_v14 = vmin.f32 %v9177_v53, 20.0  ;;  %v9205_v1 = vpop.eup %6188  ;;  %v3683_v23 = vmul.f32 0.6931472, %v6187_v57  ;;  %6198 = vlog2.f32 %v3699_v20 }
 0x333   :  { %v9181_v30 = vadd.f32 %v8795_v50, %v2941_v46  ;;  %v3300_v49 = vmul.f32 1.442695, %v3187_v21  ;;  %6200 = vpow2.f32 %v3296_v17  ;;  %v3708_v11 = vadd.f32 1.0, %v9205_v1 }
 0x334   :  { %v9188_v8 = vmul.f32 100.0, %v9168_v7  ;;  %v3298_v5 = vmul.f32 1.442695, %v3186_v14  ;;  %v3689_v24 = vsel %vm3688_vm14, %v3686_v42, %v3683_v23  ;;  %6202 = vpow2.f32 %v3294_v27  ;;  %v9220_v51 = vpop.eup %6190 }
 0x335   :  { %v9199_v37 = vmul.f32 100.0, %v9181_v30  ;;  %v3945_v61 = vmul.f32 0.01, %v3689_v24  ;;  %6204 = vpow2.f32 %v3300_v49  ;;  %vm3114_vm0 = vcmp.gt.f32.partialorder %v9052_v29, 20.0 }
 0x336   :  { %v3189_v22 = vmin.f32 %v9188_v8, 20.0  ;;  %6206 = vpow2.f32 %v3298_v5  ;;  %v9232_v58 = vpop.eup %6192  ;;  %vm9236_vm1 = vcmp.lt.f32.partialorder %v3696_v28, 0.0004427343  ;;  %v3705_v17 = vand.u32 2147483647, %v9183_v26 }
 0x337   :  { %v5528_v10 = vpop.f32.mrb[50].mxu1  ;;  %v3188_v44 = vmin.f32 %v9199_v37, 20.0  ;;  %v4009_v18 = vsel %vm3113_vm15, %v9009_v48, %v3945_v61  ;;  %6208 = vlog2.f32 %v3708_v11  ;;  %v3717_v14 = vadd.f32 1.0, %v9220_v51 }
 0x338   :  { %v2951_v43 = vpop.f32.mrb[51].mxu1  ;;  %v9195_v62 = vadd.f32 %v8795_v50, %v5528_v10  ;;  %v3304_v6 = vmul.f32 1.442695, %v3189_v22  ;;  %5618 = vmatmul.mubr.msk.f32.gmra.mrb[100].mxu1 %vm2432_vm3, %v4009_v18  ;;  %vm3115_vm2 = vcmp.gt.f32.partialorder %v9081_v54, 20.0  ;;  %v3695_v23 = vmul.f32 %v9149_v3, %v3694_v39 }
 0x339   :  { %v9202_v55 = vadd.f32 %v8795_v50, %v2951_v43  ;;  %v3302_v21 = vmul.f32 1.442695, %v3188_v44  ;;  %v6195_v43 = vpop.eup %6194  ;;  %v3703_v42 = vadd.f32 1.0, %v3702_v19  ;;  %v3711_v24 = vmul.f32 -0.5, %v9205_v1 }
 0x33a   :  { %v9211_v32 = vmul.f32 100.0, %v9195_v62  ;;  %6210 = vpow2.f32 %v3304_v6  ;;  %v9242_v57 = vpop.eup %6196  ;;  %v3692_v22 = vmul.f32 0.6931472, %v6195_v43  ;;  %vm9263_vm4 = vcmp.lt.f32.partialorder %v3705_v17, 0.0004427343 }
 0x33b   :  { %v9215_v46 = vmul.f32 100.0, %v9202_v55  ;;  %6212 = vlog2.f32 %v3717_v14  ;;  %v3712_v14 = vadd.f32 1.0, %v3711_v24  ;;  %vm3117_vm6 = vcmp.gt.f32.partialorder %v9124_v36, 20.0 }
 0x33c   :  { %v3191_v9 = vmin.f32 %v9211_v32, 20.0  ;;  %v6199_v44 = vpop.eup %6198  ;;  %v3698_v6 = vsel %vm9236_vm1, %v3695_v23, %v3692_v22  ;;  %6214 = vpow2.f32 %v3302_v21  ;;  %vm3116_vm7 = vcmp.gt.f32.partialorder %v9101_v45, 20.0 }
 0x33d   :  { %v3190_v48 = vmin.f32 %v9215_v46, 20.0  ;;  %v9261_v3 = vpop.eup %6200  ;;  %v3701_v19 = vmul.f32 0.6931472, %v6199_v44  ;;  %v3735_v45 = vadd.f32 1.0, %v9232_v58  ;;  %vm3118_vm9 = vcmp.gt.f32.partialorder %v9142_v59, 20.0 }
 0x33e   :  { %v3308_v49 = vmul.f32 1.442695, %v3191_v9  ;;  %v3704_v9 = vmul.f32 %v9183_v26, %v3703_v42  ;;  %v9273_v43 = vpop.eup %6202  ;;  %vm3119_vm11 = vcmp.gt.f32.partialorder %v9130_v4, 20.0  ;;  %vm3120_vm12 = vcmp.gt.f32.partialorder %v9165_v60, 20.0 }
 0x33f   :  { %v3306_v61 = vmul.f32 1.442695, %v3190_v48  ;;  %v3720_v48 = vmul.f32 -0.5, %v9220_v51  ;;  %vm3122_vm1 = vcmp.gt.f32.partialorder %v9177_v53, 20.0 }
 0x340   :  { %v5531_v40 = vpop.f32.mrb[52].mxu1  ;;  %6216 = vpow2.f32 %v3308_v49  ;;  %v3707_v23 = vsel %vm9263_vm4, %v3704_v9, %v3701_v19  ;;  %vm3123_vm4 = vcmp.gt.f32.partialorder %v9173_v2, 20.0 }
 0x341   :  { %v2961_v34 = vpop.f32.mrb[53].mxu1  ;;  %v9226_v10 = vadd.f32 %v8795_v50, %v5531_v40  ;;  %v3946_v40 = vmul.f32 0.01, %v3698_v6  ;;  %6218 = vpow2.f32 %v3306_v61  ;;  %v3947_v49 = vmul.f32 0.01, %v3707_v23 }
 0x342   :  { %v9229_v63 = vadd.f32 %v8795_v50, %v2961_v34  ;;  %v3714_v34 = vand.u32 2147483647, %v9205_v1  ;;  %v3721_v29 = vadd.f32 1.0, %v3720_v48  ;;  %v6282_v48 = vld [vmem:[%s9902_s6] ss:$0 sm:$0xff] }
 0x343   :  { %v9250_v38 = vmul.f32 100.0, %v9226_v10  ;;  %v4010_v26 = vsel %vm3114_vm0, %v9040_v13, %v3946_v40  ;;  %v3726_v40 = vadd.f32 1.0, %v9242_v57  ;;  %v4011_v9 = vsel %vm3115_vm2, %v9062_v56, %v3947_v49 }
 0x344   :  { %v5534_v12 = vpop.f32.mrb[54].mxu1  ;;  %v9253_v5 = vmul.f32 100.0, %v9229_v63  ;;  %5620 = vmatprep.mubr.msk.f32.mxu1 %vm2432_vm3, %v4010_v26  ;;  %vm9300_vm5 = vcmp.lt.f32.partialorder %v3714_v34, 0.0004427343  ;;  %vm3121_vm0 = vcmp.gt.f32.partialorder %v9157_v52, 20.0 }
 0x345   :  { %v9246_v20 = vadd.f32 %v8795_v50, %v5534_v12  ;;  %v2971_v27 = vpop.f32.mrb[55].mxu1  ;;  %v3193_v21 = vmin.f32 %v9250_v38, 20.0  ;;  %5621 = vmatmul.mubr.msk.f32.gmra.mrb[102].mxu1 %vm2432_vm3, %v4011_v9  ;;  %6220 = vlog2.f32 %v3726_v40 }
 0x346   :  { %v9257_v11 = vadd.f32 %v8795_v50, %v2971_v27  ;;  %v3192_v12 = vmin.f32 %v9253_v5, 20.0  ;;  %v9280_v27 = vpop.eup %6204 }
 0x347   :  { %10236 = vst [vmem:[#allocation32_spill] sm:$0xff] %v9246_v20  ;;  %v9269_v18 = vmul.f32 100.0, %v9246_v20  ;;  %v9290_v42 = vpop.eup %6206  ;;  %v3312_v28 = vmul.f32 1.442695, %v3193_v21  ;;  %v3774_v59 = vmul.f32 -0.5, %v9280_v27 }
 0x348   :  { %10237 = vst [vmem:[#allocation36_spill] sm:$0xff] %v9257_v11  ;;  %v9283_v22 = vmul.f32 100.0, %v9257_v11  ;;  %v6209_v6 = vpop.eup %6208 }
 0x349   :  { %v9305_v61 = vpop.eup %6210  ;;  %v3710_v21 = vmul.f32 0.6931472, %v6209_v6  ;;  %v3722_v6 = vmul.f32 %v9220_v51, %v3721_v29  ;;  %6222 = vpow2.f32 %v3312_v28 }
 0x34a   :  { %v5537_v39 = vpop.f32.mrb[56].mxu1  ;;  %v3194_v34 = vmin.f32 %v9283_v22, 20.0 }
 0x34b   :  { %v9278_v31 = vadd.f32 %v8795_v50, %v5537_v39  ;;  %v2981_v17 = vpop.f32.mrb[57].mxu1  ;;  %v3195_v39 = vmin.f32 %v9269_v18, 20.0 }
 0x34c   :  { %v9296_v24 = vadd.f32 %v8795_v50, %v2981_v17  ;;  %v3310_v50 = vmul.f32 1.442695, %v3192_v12  ;;  %v3713_v17 = vmul.f32 %v9205_v1, %v3712_v14  ;;  %v3723_v12 = vand.u32 2147483647, %v9220_v51  ;;  %v6213_v1 = vpop.eup %6212 }
 0x34d   :  { %10240 = vst [vmem:[#allocation30_spill] sm:$0xff] %v9278_v31  ;;  %v9293_v44 = vmul.f32 100.0, %v9278_v31  ;;  %v3316_v14 = vmul.f32 1.442695, %v3195_v39  ;;  %v9332_v9 = vpop.eup %6214  ;;  %v3719_v11 = vmul.f32 0.6931472, %v6213_v1 }
 0x34e   :  { %10241 = vst [vmem:[#allocation40_spill] sm:$0xff] %v9296_v24  ;;  %v5540_v19 = vpop.f32.mrb[58].mxu1  ;;  %v9322_v56 = vmul.f32 100.0, %v9296_v24  ;;  %v3314_v39 = vmul.f32 1.442695, %v3194_v34  ;;  %v9341_v29 = vpop.eup %6216  ;;  %6224 = vpow2.f32 %v3310_v50 }
 0x34f   :  { %v9316_v26 = vadd.f32 %v6282_v48, %v5540_v19  ;;  %v2991_v23 = vpop.f32.mrb[59].mxu1  ;;  %v3197_v31 = vmin.f32 %v9293_v44, 20.0  ;;  %v3716_v19 = vsel %vm9300_vm5, %v3713_v17, %v3710_v21  ;;  %vm3724_vm8 = vcmp.lt.f32.partialorder %v3723_v12, 0.0004427343  ;;  %v9346_v28 = vpop.eup %6218 }
 0x350   :  { %v9324_v54 = vadd.f32 %v6282_v48, %v2991_v23  ;;  %v3948_v24 = vmul.f32 0.01, %v3716_v19  ;;  %v3729_v23 = vmul.f32 -0.5, %v9242_v57  ;;  %v3196_v13 = vmin.f32 %v9322_v56, 20.0 }
 0x351   :  { %10244 = vst [vmem:[#allocation35_spill] sm:$0xff] %v9316_v26  ;;  %v9327_v49 = vmul.f32 100.0, %v9316_v26  ;;  %v3320_v40 = vmul.f32 1.442695, %v3197_v31  ;;  %v3725_v51 = vsel %vm3724_vm8, %v3722_v6, %v3719_v11  ;;  %6226 = vpow2.f32 %v3316_v14 }
 0x352   :  { %v9335_v20 = vmul.f32 100.0, %v9324_v54  ;;  %v4012_v17 = vsel %vm3116_vm7, %v9084_v15, %v3948_v24  ;;  %v3949_v1 = vmul.f32 0.01, %v3725_v51  ;;  %v3730_v11 = vadd.f32 1.0, %v3729_v23 }
 0x353   :  { %10245 = vst [vmem:[#allocation38_spill] sm:$0xff] %v9327_v49  ;;  %v3199_v21 = vmin.f32 %v9327_v49, 20.0  ;;  %5623 = vmatprep.mubr.msk.f32.mxu1 %vm2432_vm3, %v4012_v17  ;;  %6228 = vpow2.f32 %v3314_v39  ;;  %v3318_v12 = vmul.f32 1.442695, %v3196_v13  ;;  %v3732_v14 = vand.u32 2147483647, %v9242_v57  ;;  %v6221_v39 = vpop.eup %6220 }
 0x354   :  { %v3198_v31 = vmin.f32 %v9335_v20, 20.0  ;;  %v4013_v50 = vsel %vm3117_vm6, %v9106_v35, %v3949_v1  ;;  %6230 = vpow2.f32 %v3320_v40  ;;  %v3731_v36 = vmul.f32 %v9242_v57, %v3730_v11 }
 0x355   :  { %5624 = vmatmul.mubr.msk.f32.gmra.mrb[104].mxu1 %vm2432_vm3, %v4013_v50  ;;  %v3324_v17 = vmul.f32 1.442695, %v3199_v21  ;;  %6232 = vlog2.f32 %v3735_v45  ;;  %v3738_v40 = vmul.f32 -0.5, %v9232_v58  ;;  %v3747_v21 = vmul.f32 -0.5, %v9273_v43 }
 0x356   :  { %v5543_v19 = vpop.f32.mrb[60].mxu1  ;;  %v3322_v51 = vmul.f32 1.442695, %v3198_v31  ;;  %vm3733_vm10 = vcmp.lt.f32.partialorder %v3732_v14, 0.0004427343  ;;  %v3753_v45 = vadd.f32 1.0, %v9261_v3 }
 0x357   :  { %v9349_v34 = vadd.f32 %v6282_v48, %v5543_v19  ;;  %v3001_v15 = vpop.f32.mrb[61].mxu1  ;;  %v3728_v19 = vmul.f32 0.6931472, %v6221_v39  ;;  %v3741_v50 = vand.u32 2147483647, %v9232_v58  ;;  %v3756_v57 = vmul.f32 -0.5, %v9261_v3 }
 0x358   :  { %v9352_v24 = vadd.f32 %v6282_v48, %v3001_v15  ;;  %v3744_v48 = vadd.f32 1.0, %v9273_v43  ;;  %v9372_v15 = vpop.eup %6222  ;;  %v3739_v39 = vadd.f32 1.0, %v3738_v40  ;;  %v3750_v14 = vand.u32 2147483647, %v9273_v43 }
 0x359   :  { %10246 = vst [vmem:[#allocation7_spill] sm:$0xff] %v9349_v34  ;;  %v9358_v6 = vmul.f32 100.0, %v9349_v34  ;;  %v3734_v31 = vsel %vm3733_vm10, %v3731_v36, %v3728_v19  ;;  %v3757_v40 = vadd.f32 1.0, %v3756_v57  ;;  %v3771_v19 = vadd.f32 1.0, %v9280_v27 }
 0x35a   :  { %10247 = vst [vmem:[#allocation34_spill] sm:$0xff] %v9352_v24  ;;  %v9363_v23 = vmul.f32 100.0, %v9352_v24  ;;  %6234 = vlog2.f32 %v3744_v48  ;;  %v3950_v34 = vmul.f32 0.01, %v3734_v31  ;;  %v9376_v48 = vpop.eup %6224  ;;  %vm9395_vm13 = vcmp.lt.f32.partialorder %v3741_v50, 0.0004427343 }
 0x35b   :  { %10248 = vst [vmem:[#allocation2_spill] sm:$0xff] %v9358_v6  ;;  %v3201_v35 = vmin.f32 %v9358_v6, 20.0  ;;  %6236 = vpow2.f32 %v3318_v12  ;;  %v3748_v12 = vadd.f32 1.0, %v3747_v21  ;;  %v9380_v24 = vpop.eup %6226  ;;  %vm9403_vm14 = vcmp.lt.f32.partialorder %v3750_v14, 0.0004427343 }
 0x35c   :  { %10249 = vst [vmem:[#allocation39_spill] sm:$0xff] %v9363_v23  ;;  %v3200_v13 = vmin.f32 %v9363_v23, 20.0  ;;  %6238 = vpow2.f32 %v3324_v17  ;;  %v4014_v17 = vsel %vm3118_vm9, %v9127_v47, %v3950_v34  ;;  %v3780_v34 = vadd.f32 1.0, %v9332_v9 }
 0x35d   :  { %v3328_v1 = vmul.f32 1.442695, %v3201_v35  ;;  %6240 = vpow2.f32 %v3322_v51  ;;  %v3762_v35 = vadd.f32 1.0, %v9290_v42  ;;  %v3759_v51 = vand.u32 2147483647, %v9261_v3  ;;  %v9387_v36 = vpop.eup %6228  ;;  %5626 = vmatprep.mubr.msk.f32.mxu1 %vm2432_vm3, %v4014_v17 }
 0x35e   :  { %v3326_v11 = vmul.f32 1.442695, %v3200_v13  ;;  %v3765_v13 = vmul.f32 -0.5, %v9290_v42  ;;  %v9392_v21 = vpop.eup %6230  ;;  %v3749_v31 = vmul.f32 %v9273_v43, %v3748_v12  ;;  %v3768_v50 = vand.u32 2147483647, %v9290_v42 }
 0x35f   :  { %6242 = vpow2.f32 %v3328_v1  ;;  %v6233_v1 = vpop.eup %6232  ;;  %v3758_v6 = vmul.f32 %v9261_v3, %v3757_v40  ;;  %vm9410_vm15 = vcmp.lt.f32.partialorder %v3759_v51, 0.0004427343  ;;  %v3789_v43 = vadd.f32 1.0, %v9305_v61 }
 0x360   :  { %6244 = vlog2.f32 %v3753_v45  ;;  %v3740_v45 = vmul.f32 %v9232_v58, %v3739_v39  ;;  %v3766_v58 = vadd.f32 1.0, %v3765_v13  ;;  %v3786_v51 = vand.u32 2147483647, %v9332_v9 }
 0x361   :  { %6246 = vlog2.f32 %v3762_v35  ;;  %v3737_v35 = vmul.f32 0.6931472, %v6233_v1  ;;  %v3798_v40 = vadd.f32 1.0, %v9346_v28  ;;  %vm9430_vm2 = vcmp.lt.f32.partialorder %v3768_v50, 0.0004427343 }
 0x362   :  { %6248 = vpow2.f32 %v3326_v11  ;;  %v3783_v11 = vmul.f32 -0.5, %v9332_v9  ;;  %v3795_v26 = vand.u32 2147483647, %v9305_v61  ;;  %v3801_v50 = vmul.f32 -0.5, %v9346_v28 }
 0x363   :  { %6250 = vlog2.f32 %v3771_v19  ;;  %v3743_v12 = vsel %vm9395_vm13, %v3740_v45, %v3737_v35  ;;  %v3775_v19 = vadd.f32 1.0, %v3774_v59  ;;  %v3792_v35 = vmul.f32 -0.5, %v9305_v61 }
 0x364   :  { %6252 = vlog2.f32 %v3780_v34  ;;  %v6235_v17 = vpop.eup %6234  ;;  %v3777_v34 = vand.u32 2147483647, %v9280_v27  ;;  %v3951_v3 = vmul.f32 0.01, %v3743_v12  ;;  %v3784_v45 = vadd.f32 1.0, %v3783_v11 }
 0x365   :  { %v9415_v39 = vpop.eup %6236  ;;  %v3746_v14 = vmul.f32 0.6931472, %v6235_v17  ;;  %6254 = vlog2.f32 %v3789_v43  ;;  %v3807_v4 = vadd.f32 1.0, %v9341_v29  ;;  %vm3124_vm6 = vcmp.gt.f32.partialorder %v9199_v37, 20.0 }
 0x366   :  { %v9420_v1 = vpop.eup %6238  ;;  %v4015_v43 = vsel %vm3119_vm11, %v9110_v33, %v3951_v3  ;;  %6256 = vlog2.f32 %v3798_v40  ;;  %vm9444_vm5 = vcmp.lt.f32.partialorder %v3777_v34, 0.0004427343  ;;  %v3776_v3 = vmul.f32 %v9280_v27, %v3775_v19 }
 0x367   :  { %v9425_v13 = vpop.eup %6240  ;;  %v3752_v47 = vsel %vm9403_vm14, %v3749_v31, %v3746_v14  ;;  %5627 = vmatmul.mubr.msk.f32.gmra.mrb[106].mxu1 %vm2432_vm3, %v4015_v43  ;;  %v3767_v31 = vmul.f32 %v9290_v42, %v3766_v58  ;;  %vm9455_vm7 = vcmp.lt.f32.partialorder %v3786_v51, 0.0004427343  ;;  %v3785_v40 = vmul.f32 %v9332_v9, %v3784_v45 }
 0x368   :  { %v3952_v12 = vmul.f32 0.01, %v3752_v47  ;;  %v3793_v47 = vadd.f32 1.0, %v3792_v35  ;;  %6258 = vlog2.f32 %v3807_v4  ;;  %vm9465_vm8 = vcmp.lt.f32.partialorder %v3795_v26, 0.0004427343 }
 0x369   :  { %v9435_v17 = vpop.eup %6242  ;;  %v3804_v27 = vand.u32 2147483647, %v9346_v28  ;;  %v3802_v45 = vadd.f32 1.0, %v3801_v50  ;;  %vm3125_vm9 = vcmp.gt.f32.partialorder %v9188_v8, 20.0  ;;  %v3810_v23 = vmul.f32 -0.5, %v9341_v29 }
 0x36a   :  { %v6245_v49 = vpop.eup %6244  ;;  %v4016_v11 = vsel %vm3120_vm12, %v9145_v16, %v3952_v12  ;;  %vm3126_vm10 = vcmp.gt.f32.partialorder %v9215_v46, 20.0  ;;  %v3794_v50 = vmul.f32 %v9305_v61, %v3793_v47  ;;  %v3819_v61 = vmul.f32 -0.5, %v9376_v48 }
 0x36b   :  { %v6247_v33 = vpop.eup %6246  ;;  %v3755_v14 = vmul.f32 0.6931472, %v6245_v49  ;;  %5629 = vmatprep.mubr.msk.f32.mxu1 %vm2432_vm3, %v4016_v11  ;;  %v3816_v49 = vadd.f32 1.0, %v9376_v48  ;;  %vm3127_vm11 = vcmp.gt.f32.partialorder %v9211_v32, 20.0  ;;  %v3803_v53 = vmul.f32 %v9346_v28, %v3802_v45 }
 0x36c   :  { %v9459_v58 = vpop.eup %6248  ;;  %v3764_v34 = vmul.f32 0.6931472, %v6247_v33  ;;  %v3825_v33 = vadd.f32 1.0, %v9372_v15  ;;  %v3811_v42 = vadd.f32 1.0, %v3810_v23  ;;  %vm3805_vm12 = vcmp.lt.f32.partialorder %v3804_v27, 0.0004427343 }
 0x36d   :  { %v6251_v43 = vpop.eup %6250  ;;  %v3761_v16 = vsel %vm9410_vm15, %v3758_v6, %v3755_v14  ;;  %6260 = vlog2.f32 %v3816_v49  ;;  %vm3128_vm14 = vcmp.gt.f32.partialorder %v9253_v5, 20.0  ;;  %v3820_v37 = vadd.f32 1.0, %v3819_v61 }
 0x36e   :  { %v6253_v19 = vpop.eup %6252  ;;  %v3953_v51 = vmul.f32 0.01, %v3761_v16  ;;  %v3770_v12 = vsel %vm9430_vm2, %v3767_v31, %v3764_v34  ;;  %v3773_v9 = vmul.f32 0.6931472, %v6251_v43  ;;  %6262 = vlog2.f32 %v3825_v33 }
 0x36f   :  { %v9473_v35 = vpop.f32.mrb[62].mxu1  ;;  %v3954_v6 = vmul.f32 0.01, %v3770_v12  ;;  %v3782_v26 = vmul.f32 0.6931472, %v6253_v19  ;;  %v6255_v11 = vpop.eup %6254  ;;  %v3837_v60 = vmul.f32 -0.5, %v9387_v36  ;;  %v3812_v27 = vmul.f32 %v9341_v29, %v3811_v42 }
 0x370   :  { %v9477_v4 = vpop.f32.mrb[63].mxu1  ;;  %v4017_v59 = vsel %vm3121_vm0, %v9137_v25, %v3953_v51  ;;  %v3779_v31 = vsel %vm9444_vm5, %v3776_v3, %v3773_v9  ;;  %v3813_v25 = vand.u32 2147483647, %v9341_v29  ;;  %v3791_v57 = vmul.f32 0.6931472, %v6255_v11  ;;  %v6257_v3 = vpop.eup %6256 }
 0x371   :  { %5630 = vmatmul.mubr.msk.f32.gmra.mrb[108].mxu1 %vm2432_vm3, %v4017_v59  ;;  %v4018_v14 = vsel %vm3122_vm1, %v9160_v0, %v3954_v6  ;;  %v3955_v34 = vmul.f32 0.01, %v3779_v31  ;;  %v3788_v43 = vsel %vm9455_vm7, %v3785_v40, %v3782_v26  ;;  %v3834_v40 = vadd.f32 1.0, %v9387_v36 }
 0x372   :  { %5632 = vmatprep.mubr.msk.f32.mxu1 %vm2432_vm3, %v4018_v14  ;;  %v3956_v52 = vmul.f32 0.01, %v3788_v43  ;;  %v3797_v49 = vsel %vm9465_vm8, %v3794_v50, %v3791_v57  ;;  %v3800_v19 = vmul.f32 0.6931472, %v6257_v3  ;;  %v3828_v51 = vmul.f32 -0.5, %v9372_v15  ;;  %v6259_v28 = vpop.eup %6258 }
 0x373   :  { %v4019_v0 = vsel %vm3123_vm4, %v9152_v41, %v3955_v34  ;;  %v9502_v47 = vpop.f32.mrb[64].mxu1  ;;  %v3957_v41 = vmul.f32 0.01, %v3797_v49  ;;  %vm9513_vm13 = vcmp.lt.f32.partialorder %v3813_v25, 0.0004427343  ;;  %6264 = vlog2.f32 %v3834_v40 }
 0x374   :  { %v4020_v16 = vsel %vm3124_vm6, %v9181_v30, %v3956_v52  ;;  %v9510_v12 = vpop.f32.mrb[65].mxu1  ;;  %v3806_v30 = vsel %vm3805_vm12, %v3803_v53, %v3800_v19  ;;  %v3843_v9 = vadd.f32 1.0, %v9380_v24  ;;  %v3809_v6 = vmul.f32 0.6931472, %v6259_v28 }
 0x375   :  { %5633 = vmatmul.mubr.msk.f32.gmra.mrb[110].mxu1 %vm2432_vm3, %v4019_v0  ;;  %v3958_v45 = vmul.f32 0.01, %v3806_v30  ;;  %v3822_v26 = vand.u32 2147483647, %v9376_v48  ;;  %v4021_v23 = vsel %vm3125_vm9, %v9168_v7, %v3957_v41  ;;  %v3829_v59 = vadd.f32 1.0, %v3828_v51 }
 0x376   :  { %5635 = vmatprep.mubr.msk.f32.mxu1 %vm2432_vm3, %v4020_v16  ;;  %6266 = vlog2.f32 %v3843_v9  ;;  %v3846_v31 = vmul.f32 -0.5, %v9380_v24  ;;  %vm3129_vm15 = vcmp.gt.f32.partialorder %v9250_v38, 20.0  ;;  %v3815_v29 = vsel %vm9513_vm13, %v3812_v27, %v3809_v6 }
 0x377   :  { %v6261_v50 = vpop.eup %6260  ;;  %v4022_v33 = vsel %vm3126_vm10, %v9202_v55, %v3958_v45  ;;  %v3831_v11 = vand.u32 2147483647, %v9372_v15  ;;  %v3852_v7 = vadd.f32 1.0, %v9415_v39  ;;  %v3959_v14 = vmul.f32 0.01, %v3815_v29 }
 0x378   :  { %v3818_v34 = vmul.f32 0.6931472, %v6261_v50  ;;  %v3821_v43 = vmul.f32 %v9376_v48, %v3820_v37  ;;  %v3838_v25 = vadd.f32 1.0, %v3837_v60  ;;  %vm3823_vm0 = vcmp.lt.f32.partialorder %v3822_v26, 0.0004427343  ;;  %v6263_v57 = vpop.eup %6262 }
 0x379   :  { %5636 = vmatmul.mubr.msk.f32.gmra.mrb[112].mxu1 %vm2432_vm3, %v4021_v23  ;;  %v9536_v8 = vpop.f32.mrb[66].mxu1  ;;  %v3840_v46 = vand.u32 2147483647, %v9387_v36  ;;  %6268 = vlog2.f32 %v3852_v7  ;;  %v3861_v55 = vadd.f32 1.0, %v9392_v21  ;;  %vm3130_vm1 = vcmp.gt.f32.partialorder %v9283_v22, 20.0 }
 0x37a   :  { %5638 = vmatprep.mubr.msk.f32.mxu1 %vm2432_vm3, %v4022_v33  ;;  %v9542_v52 = vpop.f32.mrb[67].mxu1  ;;  %v4023_v61 = vsel %vm3127_vm11, %v9195_v62, %v3959_v14  ;;  %v3824_v3 = vsel %vm3823_vm0, %v3821_v43, %v3818_v34  ;;  %v3830_v0 = vmul.f32 %v9372_v15, %v3829_v59  ;;  %v3847_v48 = vadd.f32 1.0, %v3846_v31  ;;  %v10268_v59 = vld [vmem:[#allocation36_spill] sm:$0xff] }
 0x37b   :  { %v3960_v53 = vmul.f32 0.01, %v3824_v3  ;;  %v3827_v42 = vmul.f32 0.6931472, %v6263_v57  ;;  %v3855_v40 = vmul.f32 -0.5, %v9415_v39  ;;  %6270 = vlog2.f32 %v3861_v55  ;;  %v10271_v57 = vld [vmem:[#allocation32_spill] sm:$0xff] }
 0x37c   :  { %vm3832_vm2 = vcmp.lt.f32.partialorder %v3831_v11, 0.0004427343  ;;  %v3839_v16 = vmul.f32 %v9387_v36, %v3838_v25  ;;  %v3864_v49 = vmul.f32 -0.5, %v9392_v21  ;;  %v3870_v19 = vadd.f32 1.0, %v9425_v13  ;;  %v9594_v55 = vld [vmem:[%s9903_s8] ss:$0 sm:$0xff] }
 0x37d   :  { %5639 = vmatmul.mubr.msk.f32.gmra.mrb[114].mxu1 %vm2432_vm3, %v4023_v61  ;;  %v6265_v32 = vpop.eup %6264  ;;  %vm3131_vm4 = vcmp.gt.f32.partialorder %v9269_v18, 20.0  ;;  %v4024_v62 = vsel %vm3128_vm14, %v9229_v63, %v3960_v53  ;;  %v3833_v15 = vsel %vm3832_vm2, %v3830_v0, %v3827_v42  ;;  %v3849_v51 = vand.u32 2147483647, %v9380_v24 }
 0x37e   :  { %v3873_v41 = vmul.f32 -0.5, %v9425_v13  ;;  %5641 = vmatprep.mubr.msk.f32.mxu1 %vm2432_vm3, %v4024_v62  ;;  %v3961_v2 = vmul.f32 0.01, %v3833_v15  ;;  %v3836_v36 = vmul.f32 0.6931472, %v6265_v32  ;;  %6272 = vlog2.f32 %v3870_v19  ;;  %v10272_v32 = vld [vmem:[#allocation40_spill] sm:$0xff] }
 0x37f   :  { %v3858_v28 = vand.u32 2147483647, %v9415_v39  ;;  %vm3841_vm5 = vcmp.lt.f32.partialorder %v3840_v46, 0.0004427343  ;;  %v3848_v30 = vmul.f32 %v9380_v24, %v3847_v48  ;;  %v3856_v37 = vadd.f32 1.0, %v3855_v40 }
 0x380   :  { %v3879_v60 = vadd.f32 1.0, %v9420_v1  ;;  %v6267_v5 = vpop.eup %6266  ;;  %v4025_v63 = vsel %vm3129_vm15, %v9226_v10, %v3961_v2  ;;  %v3842_v9 = vsel %vm3841_vm5, %v3839_v16, %v3836_v36  ;;  %v3865_v45 = vadd.f32 1.0, %v3864_v49  ;;  %v10273_v2 = vld [vmem:[#allocation30_spill] sm:$0xff] }
 0x381   :  { %v3867_v6 = vand.u32 2147483647, %v9392_v21  ;;  %5642 = vmatmul.mubr.msk.f32.gmra.mrb[116].mxu1 %vm2432_vm3, %v4025_v63  ;;  %v3962_v27 = vmul.f32 0.01, %v3842_v9  ;;  %v3845_v26 = vmul.f32 0.6931472, %v6267_v5  ;;  %v3857_v14 = vmul.f32 %v9415_v39, %v3856_v37 }
 0x382   :  { %v3874_v23 = vadd.f32 1.0, %v3873_v41  ;;  %6274 = vlog2.f32 %v3879_v60  ;;  %vm3133_vm6 = vcmp.gt.f32.partialorder %v9293_v44, 20.0  ;;  %vm3132_vm7 = vcmp.gt.f32.partialorder %v9322_v56, 20.0 }
 0x383   :  { %vm3850_vm8 = vcmp.lt.f32.partialorder %v3849_v51, 0.0004427343  ;;  %vm9571_vm9 = vcmp.lt.f32.partialorder %v3858_v28, 0.0004427343  ;;  %v3888_v10 = vadd.f32 1.0, %v9459_v58  ;;  %v6269_v38 = vpop.eup %6268  ;;  %v4026_v31 = vsel %vm3130_vm1, %v10268_v59, %v3962_v27  ;;  %v5571_v39 = vpop.f32.mrb[68].mxu1 }
 0x384   :  { %v3851_v50 = vsel %vm3850_vm8, %v3848_v30, %v3845_v26  ;;  %v3882_v33 = vmul.f32 -0.5, %v9420_v1  ;;  %v3897_v29 = vadd.f32 1.0, %v9435_v17  ;;  %5644 = vmatprep.mubr.msk.f32.mxu1 %vm2432_vm3, %v4026_v31  ;;  %v3854_v7 = vmul.f32 0.6931472, %v6269_v38  ;;  %v4337_v0 = vpop.f32.mrb[69].mxu1  ;;  %v10274_v38 = vld [vmem:[#allocation38_spill] sm:$0xff] }
 0x385   :  { %v3963_v11 = vmul.f32 0.01, %v3851_v50  ;;  %v3876_v34 = vand.u32 2147483647, %v9425_v13  ;;  %v6271_v43 = vpop.eup %6270  ;;  %vm3134_vm10 = vcmp.gt.f32.partialorder %v9335_v20, 20.0  ;;  %v3866_v25 = vmul.f32 %v9392_v21, %v3865_v45 }
 0x386   :  { %vm9586_vm11 = vcmp.lt.f32.partialorder %v3867_v6, 0.0004427343  ;;  %v3875_v46 = vmul.f32 %v9425_v13, %v3874_v23  ;;  %6276 = vlog2.f32 %v3888_v10  ;;  %v3860_v21 = vsel %vm9571_vm9, %v3857_v14, %v3854_v7  ;;  %v10276_v14 = vld [vmem:[#allocation39_spill] sm:$0xff] }
 0x387   :  { %v4027_v61 = vsel %vm3131_vm4, %v10271_v57, %v3963_v11  ;;  %v3863_v3 = vmul.f32 0.6931472, %v6271_v43  ;;  %6278 = vlog2.f32 %v3897_v29  ;;  %v3964_v13 = vmul.f32 0.01, %v3860_v21  ;;  %v10277_v43 = vld [vmem:[#allocation2_spill] sm:$0xff] }
 0x388   :  { %5645 = vmatmul.mubr.msk.f32.gmra.mrb[118].mxu1 %vm2432_vm3, %v4027_v61  ;;  %v3883_v48 = vadd.f32 1.0, %v3882_v33  ;;  %v3885_v53 = vand.u32 2147483647, %v9420_v1  ;;  %v3891_v42 = vmul.f32 -0.5, %v9459_v58  ;;  %v6273_v40 = vpop.eup %6272  ;;  %v4313_v18 = vadd.f32 %v9473_v35, %v9594_v55 }
 0x389   :  { %v3869_v16 = vsel %vm9586_vm11, %v3866_v25, %v3863_v3  ;;  %v4308_v49 = vadd.f32 %v9594_v55, %v9477_v4  ;;  %v4323_v19 = vadd.f32 %v9502_v47, %v9594_v55  ;;  %v4028_v62 = vsel %vm3132_vm7, %v10272_v32, %v3964_v13  ;;  %v10278_v25 = vld [vmem:[#allocation34_spill] sm:$0xff] }
 0x38a   :  { %v3965_v15 = vmul.f32 0.01, %v3869_v16  ;;  %v3872_v51 = vmul.f32 0.6931472, %v6273_v40  ;;  %v3900_v41 = vmul.f32 -0.5, %v9435_v17  ;;  %5647 = vmatprep.mubr.msk.f32.mxu1 %vm2432_vm3, %v4028_v62  ;;  %4627 = vst [vmem:[%s9904_s9 + $0x8] sm:$0xff] %v4313_v18  ;;  %v4318_v56 = vadd.f32 %v9594_v55, %v9510_v12 }
 0x38b   :  { %vm3877_vm12 = vcmp.lt.f32.partialorder %v3876_v34, 0.0004427343  ;;  %4626 = vst [vmem:[%s9904_s9] sm:$0xff] %v4308_v49  ;;  %4629 = vst [vmem:[%s9904_s9 + $0x18] sm:$0xff] %v4323_v19  ;;  %v4333_v35 = vadd.f32 %v9536_v8, %v9594_v55  ;;  %v4328_v4 = vadd.f32 %v9594_v55, %v9542_v52  ;;  %v4343_v30 = vadd.f32 %v5571_v39, %v9594_v55  ;;  %v5574_v44 = vpop.f32.mrb[70].mxu1 }
 0x38c   :  { %v6275_v47 = vpop.eup %6274  ;;  %v4029_v36 = vsel %vm3133_vm6, %v10273_v2, %v3965_v15  ;;  %v3878_v28 = vsel %vm3877_vm12, %v3875_v46, %v3872_v51  ;;  %v4338_v37 = vadd.f32 %v9594_v55, %v4337_v0  ;;  %v3884_v5 = vmul.f32 %v9420_v1, %v3883_v48  ;;  %4628 = vst [vmem:[%s9904_s9 + $0x10] sm:$0xff] %v4318_v56  ;;  %v4347_v9 = vpop.f32.mrb[71].mxu1 }
 0x38d   :  { %5648 = vmatmul.mubr.msk.f32.gmra.mrb[120].mxu1 %vm2432_vm3, %v4029_v36  ;;  %v3966_v60 = vmul.f32 0.01, %v3878_v28  ;;  %v3881_v12 = vmul.f32 0.6931472, %v6275_v47  ;;  %v3892_v8 = vadd.f32 1.0, %v3891_v42  ;;  %4631 = vst [vmem:[%s9904_s9 + $0x28] sm:$0xff] %v4333_v35  ;;  %v4353_v1 = vadd.f32 %v5574_v44, %v9594_v55 }
 0x38e   :  { %4630 = vst [vmem:[%s9904_s9 + $0x20] sm:$0xff] %v4328_v4  ;;  %vm3886_vm13 = vcmp.lt.f32.partialorder %v3885_v53, 0.0004427343  ;;  %v3894_v52 = vand.u32 2147483647, %v9459_v58  ;;  %v3901_v63 = vadd.f32 1.0, %v3900_v41  ;;  %v4348_v26 = vadd.f32 %v9594_v55, %v4347_v9 }
 0x38f   :  { %4633 = vst [vmem:[%s9904_s9 + $0x38] sm:$0xff] %v4343_v30  ;;  %4632 = vst [vmem:[%s9904_s9 + $0x30] sm:$0xff] %v4338_v37  ;;  %v4030_v45 = vsel %vm3134_vm10, %v9324_v54, %v3966_v60  ;;  %v3887_v6 = vsel %vm3886_vm13, %v3884_v5, %v3881_v12  ;;  %v3903_v27 = vand.u32 2147483647, %v9435_v17  ;;  %vm3135_vm14 = vcmp.gt.f32.partialorder %v10274_v38, 20.0  ;;  %v10275_v54 = vld [vmem:[#allocation35_spill] sm:$0xff] }
 0x390   :  { %v6277_v23 = vpop.eup %6276  ;;  %5650 = vmatprep.mubr.msk.f32.mxu1 %vm2432_vm3, %v4030_v45  ;;  %v3967_v24 = vmul.f32 0.01, %v3887_v6  ;;  %4635 = vst [vmem:[%s9904_s9 + $0x48] sm:$0xff] %v4353_v1  ;;  %v3893_v20 = vmul.f32 %v9459_v58, %v3892_v8  ;;  %4634 = vst [vmem:[%s9904_s9 + $0x40] sm:$0xff] %v4348_v26  ;;  %vm3895_vm15 = vcmp.lt.f32.partialorder %v3894_v52, 0.0004427343  ;;  %v3902_v33 = vmul.f32 %v9435_v17, %v3901_v63 }
 0x391   :  { %v6279_v10 = vpop.eup %6278  ;;  %v3890_v59 = vmul.f32 0.6931472, %v6277_v23  ;;  %vm3904_vm0 = vcmp.lt.f32.partialorder %v3903_v27, 0.0004427343  ;;  %vm3136_vm1 = vcmp.gt.f32.partialorder %v10276_v14, 20.0  ;;  %v5577_v58 = vpop.f32.mrb[72].mxu1 }
 0x392   :  { %v4031_v31 = vsel %vm3135_vm14, %v10275_v54, %v3967_v24  ;;  %v3899_v50 = vmul.f32 0.6931472, %v6279_v10  ;;  %vm3137_vm2 = vcmp.gt.f32.partialorder %v10277_v43, 20.0  ;;  %v4363_v46 = vadd.f32 %v5577_v58, %v9594_v55  ;;  %v4357_v39 = vpop.f32.mrb[73].mxu1  ;;  %v10279_v17 = vld [vmem:[#allocation7_spill] sm:$0xff] }
 0x393   :  { %5651 = vmatmul.mubr.msk.f32.gmra.mrb[122].mxu1 %vm2432_vm3, %v4031_v31  ;;  %v3896_v29 = vsel %vm3895_vm15, %v3893_v20, %v3890_v59  ;;  %v4358_v61 = vadd.f32 %v9594_v55, %v4357_v39 }
 0x394   :  { %v3968_v11 = vmul.f32 0.01, %v3896_v29  ;;  %v3905_v7 = vsel %vm3904_vm0, %v3902_v33, %v3899_v50  ;;  %4637 = vst [vmem:[%s9904_s9 + $0x58] sm:$0xff] %v4363_v46 }
 0x395   :  { %v3969_v34 = vmul.f32 0.01, %v3905_v7  ;;  %4636 = vst [vmem:[%s9904_s9 + $0x50] sm:$0xff] %v4358_v61 }
 0x396   :  { %v4032_v22 = vsel %vm3136_vm1, %v10278_v25, %v3968_v11 }
 0x397   :  { %5653 = vmatprep.mubr.msk.f32.mxu1 %vm2432_vm3, %v4032_v22  ;;  %v4033_v57 = vsel %vm3137_vm2, %v10279_v17, %v3969_v34 }
 0x398   :  { %5654 = vmatmul.mubr.msk.f32.gmra.mrb[124].mxu1 %vm2432_vm3, %v4033_v57 }
 0x399   :  { %v5580_v21 = vpop.f32.mrb[74].mxu1 }
 0x39a   :  { %v4373_v3 = vadd.f32 %v5580_v21, %v9594_v55  ;;  %v4367_v0 = vpop.f32.mrb[75].mxu1 }
 0x39b   :  { %v4368_v13 = vadd.f32 %v9594_v55, %v4367_v0 }
 0x39c   :  { %4639 = vst [vmem:[%s9904_s9 + $0x68] sm:$0xff] %v4373_v3 }
 0x39d   :  { %4638 = vst [vmem:[%s9904_s9 + $0x60] sm:$0xff] %v4368_v13 }
 0x3a2   :  { %v5583_v48 = vpop.f32.mrb[76].mxu1 }
 0x3a3   :  { %v4383_v53 = vadd.f32 %v5583_v48, %v9594_v55  ;;  %v4377_v42 = vpop.f32.mrb[77].mxu1 }
 0x3a4   :  { %v4378_v40 = vadd.f32 %v9594_v55, %v4377_v42 }
 0x3a5   :  { %4641 = vst [vmem:[%s9904_s9 + $0x78] sm:$0xff] %v4383_v53 }
 0x3a6   :  { %4640 = vst [vmem:[%s9904_s9 + $0x70] sm:$0xff] %v4378_v40 }
 0x3ab   :  { %v5586_v16 = vpop.f32.mrb[78].mxu1 }
 0x3ac   :  { %v4393_v18 = vadd.f32 %v5586_v16, %v9594_v55  ;;  %v4387_v49 = vpop.f32.mrb[79].mxu1 }
 0x3ad   :  { %v4388_v19 = vadd.f32 %v9594_v55, %v4387_v49 }
 0x3ae   :  { %4643 = vst [vmem:[%s9904_s9 + $0x88] sm:$0xff] %v4393_v18 }
 0x3af   :  { %4642 = vst [vmem:[%s9904_s9 + $0x80] sm:$0xff] %v4388_v19 }
 0x3b6   :  { %v5589_v32 = vpop.f32.mrb[80].mxu1 }
 0x3b7   :  { %v4403_v62 = vadd.f32 %v5589_v32, %v9594_v55  ;;  %v4397_v15 = vpop.f32.mrb[81].mxu1 }
 0x3b8   :  { %v4398_v51 = vadd.f32 %v9594_v55, %v4397_v15 }
 0x3b9   :  { %4645 = vst [vmem:[%s9904_s9 + $0x98] sm:$0xff] %v4403_v62 }
 0x3ba   :  { %4644 = vst [vmem:[%s9904_s9 + $0x90] sm:$0xff] %v4398_v51 }
 0x3bc   :  { %v5592_v41 = vpop.f32.mrb[82].mxu1 }
 0x3bd   :  { %v4413_v56 = vadd.f32 %v5592_v41, %v9594_v55  ;;  %v4407_v35 = vpop.f32.mrb[83].mxu1 }
 0x3be   :  { %v4408_v4 = vadd.f32 %v9594_v55, %v4407_v35 }
 0x3bf   :  { %4647 = vst [vmem:[%s9904_s9 + $0xa8] sm:$0xff] %v4413_v56 }
 0x3c0   :  { %4646 = vst [vmem:[%s9904_s9 + $0xa0] sm:$0xff] %v4408_v4 }
 0x3c3   :  { %v5595_v47 = vpop.f32.mrb[84].mxu1 }
 0x3c4   :  { %v4423_v2 = vadd.f32 %v5595_v47, %v9594_v55  ;;  %v4417_v36 = vpop.f32.mrb[85].mxu1 }
 0x3c5   :  { %v4418_v28 = vadd.f32 %v9594_v55, %v4417_v36 }
 0x3c6   :  { %4649 = vst [vmem:[%s9904_s9 + $0xb8] sm:$0xff] %v4423_v2 }
 0x3c7   :  { %4648 = vst [vmem:[%s9904_s9 + $0xb0] sm:$0xff] %v4418_v28 }
 0x3cd   :  { %v5598_v30 = vpop.f32.mrb[86].mxu1 }
 0x3ce   :  { %v4433_v37 = vadd.f32 %v5598_v30, %v9594_v55  ;;  %v4427_v60 = vpop.f32.mrb[87].mxu1 }
 0x3cf   :  { %v4428_v12 = vadd.f32 %v9594_v55, %v4427_v60 }
 0x3d0   :  { %4651 = vst [vmem:[%s9904_s9 + $0xc8] sm:$0xff] %v4433_v37 }
 0x3d1   :  { %4650 = vst [vmem:[%s9904_s9 + $0xc0] sm:$0xff] %v4428_v12 }
 0x3d5   :  { %v5601_v5 = vpop.f32.mrb[88].mxu1 }
 0x3d6   :  { %v4443_v8 = vadd.f32 %v5601_v5, %v9594_v55  ;;  %v4437_v44 = vpop.f32.mrb[89].mxu1 }
 0x3d7   :  { %v4438_v52 = vadd.f32 %v9594_v55, %v4437_v44 }
 0x3d8   :  { %4653 = vst [vmem:[%s9904_s9 + $0xd8] sm:$0xff] %v4443_v8 }
 0x3d9   :  { %4652 = vst [vmem:[%s9904_s9 + $0xd0] sm:$0xff] %v4438_v52 }
 0x3de   :  { %v5604_v63 = vpop.f32.mrb[90].mxu1 }
 0x3df   :  { %v4453_v1 = vadd.f32 %v5604_v63, %v9594_v55  ;;  %v4447_v9 = vpop.f32.mrb[91].mxu1 }
 0x3e0   :  { %v4448_v45 = vadd.f32 %v9594_v55, %v4447_v9 }
 0x3e1   :  { %4655 = vst [vmem:[%s9904_s9 + $0xe8] sm:$0xff] %v4453_v1 }
 0x3e2   :  { %4654 = vst [vmem:[%s9904_s9 + $0xe0] sm:$0xff] %v4448_v45 }
 0x3e7   :  { %v5607_v6 = vpop.f32.mrb[92].mxu1 }
 0x3e8   :  { %v4463_v27 = vadd.f32 %v5607_v6, %v9594_v55  ;;  %v4457_v26 = vpop.f32.mrb[93].mxu1 }
 0x3e9   :  { %v4458_v23 = vadd.f32 %v9594_v55, %v4457_v26 }
 0x3ea   :  { %4657 = vst [vmem:[%s9904_s9 + $0xf8] sm:$0xff] %v4463_v27 }
 0x3eb   :  { %4656 = vst [vmem:[%s9904_s9 + $0xf0] sm:$0xff] %v4458_v23 }
 0x3f0   :  { %v5610_v24 = vpop.f32.mrb[94].mxu1 }
 0x3f1   :  { %v4473_v10 = vadd.f32 %v5610_v24, %v9594_v55  ;;  %v4467_v38 = vpop.f32.mrb[95].mxu1 }
 0x3f2   :  { %v4468_v59 = vadd.f32 %v9594_v55, %v4467_v38 }
 0x3f3   :  { %4659 = vst [vmem:[%s9904_s9 + $0x108] sm:$0xff] %v4473_v10 }
 0x3f4   :  { %4658 = vst [vmem:[%s9904_s9 + $0x100] sm:$0xff] %v4468_v59 }
 0x3f6   :  { %v5613_v20 = vpop.f32.mrb[96].mxu1 }
 0x3f7   :  { %v4483_v54 = vadd.f32 %v5613_v20, %v9594_v55  ;;  %v4477_v31 = vpop.f32.mrb[97].mxu1 }
 0x3f8   :  { %v4478_v50 = vadd.f32 %v9594_v55, %v4477_v31 }
 0x3f9   :  { %4661 = vst [vmem:[%s9904_s9 + $0x118] sm:$0xff] %v4483_v54 }
 0x3fa   :  { %4660 = vst [vmem:[%s9904_s9 + $0x110] sm:$0xff] %v4478_v50 }
 0x3fc   :  { %v5616_v33 = vpop.f32.mrb[98].mxu1 }
 0x3fd   :  { %v4493_v29 = vadd.f32 %v5616_v33, %v9594_v55  ;;  %v4487_v11 = vpop.f32.mrb[99].mxu1 }
 0x3fe   :  { %v4488_v7 = vadd.f32 %v9594_v55, %v4487_v11 }
 0x3ff   :  { %4663 = vst [vmem:[%s9904_s9 + $0x128] sm:$0xff] %v4493_v29 }
 0x400   :  { %4662 = vst [vmem:[%s9904_s9 + $0x120] sm:$0xff] %v4488_v7 }
 0x40b   :  { %v5619_v14 = vpop.f32.mrb[100].mxu1 }
 0x40c   :  { %v4503_v34 = vadd.f32 %v5619_v14, %v9594_v55  ;;  %v4497_v58 = vpop.f32.mrb[101].mxu1 }
 0x40d   :  { %v4498_v43 = vadd.f32 %v9594_v55, %v4497_v58 }
 0x40e   :  { %4665 = vst [vmem:[%s9904_s9 + $0x138] sm:$0xff] %v4503_v34 }
 0x40f   :  { %4664 = vst [vmem:[%s9904_s9 + $0x130] sm:$0xff] %v4498_v43 }
 0x418   :  { %v5622_v25 = vpop.f32.mrb[102].mxu1 }
 0x419   :  { %v4513_v22 = vadd.f32 %v5622_v25, %v9594_v55  ;;  %v4507_v46 = vpop.f32.mrb[103].mxu1 }
 0x41a   :  { %v4508_v39 = vadd.f32 %v9594_v55, %v4507_v46 }
 0x41b   :  { %4667 = vst [vmem:[%s9904_s9 + $0x148] sm:$0xff] %v4513_v22 }
 0x41c   :  { %4666 = vst [vmem:[%s9904_s9 + $0x140] sm:$0xff] %v4508_v39 }
 0x428   :  { %v5625_v17 = vpop.f32.mrb[104].mxu1 }
 0x429   :  { %v4523_v57 = vadd.f32 %v5625_v17, %v9594_v55  ;;  %v4517_v61 = vpop.f32.mrb[105].mxu1 }
 0x42a   :  { %v4518_v21 = vadd.f32 %v9594_v55, %v4517_v61 }
 0x42b   :  { %4669 = vst [vmem:[%s9904_s9 + $0x158] sm:$0xff] %v4523_v57 }
 0x42c   :  { %4668 = vst [vmem:[%s9904_s9 + $0x150] sm:$0xff] %v4518_v21 }
 0x43a   :  { %v5628_v3 = vpop.f32.mrb[106].mxu1 }
 0x43b   :  { %v4533_v0 = vadd.f32 %v5628_v3, %v9594_v55  ;;  %v4527_v13 = vpop.f32.mrb[107].mxu1 }
 0x43c   :  { %v4528_v48 = vadd.f32 %v9594_v55, %v4527_v13 }
 0x43d   :  { %4671 = vst [vmem:[%s9904_s9 + $0x168] sm:$0xff] %v4533_v0 }
 0x43e   :  { %4670 = vst [vmem:[%s9904_s9 + $0x160] sm:$0xff] %v4528_v48 }
 0x444   :  { %v5631_v53 = vpop.f32.mrb[108].mxu1 }
 0x445   :  { %v4543_v42 = vadd.f32 %v5631_v53, %v9594_v55  ;;  %v4537_v40 = vpop.f32.mrb[109].mxu1 }
 0x446   :  { %v4538_v16 = vadd.f32 %v9594_v55, %v4537_v40 }
 0x447   :  { %4673 = vst [vmem:[%s9904_s9 + $0x178] sm:$0xff] %v4543_v42 }
 0x448   :  { %4672 = vst [vmem:[%s9904_s9 + $0x170] sm:$0xff] %v4538_v16  ;;  %v5634_v18 = vpop.f32.mrb[110].mxu1 }
 0x449   :  { %v4553_v49 = vadd.f32 %v5634_v18, %v9594_v55  ;;  %v4547_v19 = vpop.f32.mrb[111].mxu1 }
 0x44a   :  { %v4548_v32 = vadd.f32 %v9594_v55, %v4547_v19 }
 0x44b   :  { %4675 = vst [vmem:[%s9904_s9 + $0x188] sm:$0xff] %v4553_v49 }
 0x44c   :  { %4674 = vst [vmem:[%s9904_s9 + $0x180] sm:$0xff] %v4548_v32  ;;  %v5637_v62 = vpop.f32.mrb[112].mxu1 }
 0x44d   :  { %v4563_v15 = vadd.f32 %v5637_v62, %v9594_v55  ;;  %v4557_v51 = vpop.f32.mrb[113].mxu1 }
 0x44e   :  { %v4558_v41 = vadd.f32 %v9594_v55, %v4557_v51 }
 0x44f   :  { %4677 = vst [vmem:[%s9904_s9 + $0x198] sm:$0xff] %v4563_v15 }
 0x450   :  { %4676 = vst [vmem:[%s9904_s9 + $0x190] sm:$0xff] %v4558_v41  ;;  %v5640_v56 = vpop.f32.mrb[114].mxu1 }
 0x451   :  { %v4573_v35 = vadd.f32 %v5640_v56, %v9594_v55  ;;  %v4567_v4 = vpop.f32.mrb[115].mxu1 }
 0x452   :  { %v4568_v47 = vadd.f32 %v9594_v55, %v4567_v4 }
 0x453   :  { %4679 = vst [vmem:[%s9904_s9 + $0x1a8] sm:$0xff] %v4573_v35 }
 0x454   :  { %4678 = vst [vmem:[%s9904_s9 + $0x1a0] sm:$0xff] %v4568_v47  ;;  %v5643_v2 = vpop.f32.mrb[116].mxu1 }
 0x455   :  { %v4583_v36 = vadd.f32 %v5643_v2, %v9594_v55  ;;  %v4577_v28 = vpop.f32.mrb[117].mxu1 }
 0x456   :  { %v4578_v30 = vadd.f32 %v9594_v55, %v4577_v28 }
 0x457   :  { %4681 = vst [vmem:[%s9904_s9 + $0x1b8] sm:$0xff] %v4583_v36 }
 0x458   :  { %4680 = vst [vmem:[%s9904_s9 + $0x1b0] sm:$0xff] %v4578_v30 }
 0x45b   :  { %v5646_v37 = vpop.f32.mrb[118].mxu1 }
 0x45c   :  { %v4593_v60 = vadd.f32 %v5646_v37, %v9594_v55  ;;  %v4587_v12 = vpop.f32.mrb[119].mxu1 }
 0x45d   :  { %v4588_v5 = vadd.f32 %v9594_v55, %v4587_v12 }
 0x45e   :  { %4683 = vst [vmem:[%s9904_s9 + $0x1c8] sm:$0xff] %v4593_v60 }
 0x45f   :  { %4682 = vst [vmem:[%s9904_s9 + $0x1c0] sm:$0xff] %v4588_v5 }
 0x460   :  { %v5649_v8 = vpop.f32.mrb[120].mxu1 }
 0x461   :  { %v4603_v44 = vadd.f32 %v5649_v8, %v9594_v55  ;;  %v4597_v52 = vpop.f32.mrb[121].mxu1 }
 0x462   :  { %v4598_v63 = vadd.f32 %v9594_v55, %v4597_v52 }
 0x463   :  { %4685 = vst [vmem:[%s9904_s9 + $0x1d8] sm:$0xff] %v4603_v44 }
 0x464   :  { %4684 = vst [vmem:[%s9904_s9 + $0x1d0] sm:$0xff] %v4598_v63 }
 0x466   :  { %v5652_v1 = vpop.f32.mrb[122].mxu1 }
 0x467   :  { %v4613_v9 = vadd.f32 %v5652_v1, %v9594_v55  ;;  %v4607_v45 = vpop.f32.mrb[123].mxu1 }
 0x468   :  { %v4608_v6 = vadd.f32 %v9594_v55, %v4607_v45 }
 0x469   :  { %4687 = vst [vmem:[%s9904_s9 + $0x1e8] sm:$0xff] %v4613_v9 }
 0x46a   :  { %4686 = vst [vmem:[%s9904_s9 + $0x1e0] sm:$0xff] %v4608_v6 }
 0x46b   :  { %v5655_v27 = vpop.f32.mrb[124].mxu1 }
 0x46c   :  { %v4623_v26 = vadd.f32 %v5655_v27, %v9594_v55  ;;  %v4617_v23 = vpop.f32.mrb[125].mxu1 }
 0x46d   :  { %v4618_v24 = vadd.f32 %v9594_v55, %v4617_v23 }
 0x46e   :  { %4689 = vst [vmem:[%s9904_s9 + $0x1f8] sm:$0xff] %v4623_v26 }
 0x46f   :  { %4688 = vst [vmem:[%s9904_s9 + $0x1f0] sm:$0xff] %v4618_v24 }

</bundles_post_ra>
